<compile_context>
chip_gen: v7x
topology: tpu7x:2x2x1
jax: 0.10.0
libtpu: 0.0.40
codegen_flags: <defaults>
</compile_context>

<pallas_src>
import functools

import jax
import jax.numpy as jnp
from jax.experimental import pallas as pl
from jax.experimental.pallas import tpu as pltpu


def _la_pool_kernel(x_ref, len_ref, wfa_ref, bfa_ref, w1a_ref, w1b_ref, b1_ref,
                    w2_ref, b2_ref, out_ref, xp_ref, *, kernel_size, fuse_im2col):
    K = kernel_size
    pad = K // 2
    TB, L, H = x_ref.shape
    mxu_dtype = jnp.bfloat16

    # "same" zero padding built in a bf16 VMEM scratch (bf16 = MXU operand dtype).
    # The scratch is fully (re)initialized every step, so it is correct under any
    # megacore grid sharding.
    # TODO(synk): the interior copy (one extra tile store) could be elided by
    # masking the first/last taps' out-of-range rows instead.
    if pad > 0:
        edge = jnp.zeros((TB, pad, H), mxu_dtype)
        xp_ref[:, :pad, :] = edge
        xp_ref[:, pad + L:, :] = edge
    xp_ref[:, pad:pad + L, :] = x_ref[...].astype(mxu_dtype)

    # Both convolutions fused into one [*, 2H]-wide output; bf16 MXU operands,
    # f32 accumulation.
    if fuse_im2col:
        # Small H: lane-concat the K shifted windows so the contraction dim (K*H)
        # fills the MXU.
        xs = jnp.concatenate(
            [xp_ref[:, k:k + L, :].reshape(TB * L, H) for k in range(K)], axis=-1)
        oa = jnp.dot(xs, wfa_ref[...], preferred_element_type=jnp.float32)
    else:
        # H >= 128: per-tap accumulated matmuls, windows sliced from the scratch
        # ref (no K-times materialized im2col buffer, no value-slice shuffles).
        oa = jnp.zeros((TB * L, 2 * H), jnp.float32)
        for k in range(K):
            win = xp_ref[:, k:k + L, :].reshape(TB * L, H)
            oa = oa + jnp.dot(win, wfa_ref[k * H:(k + 1) * H, :],
                              preferred_element_type=jnp.float32)
    oa = (oa + bfa_ref[...]).reshape(TB, L, 2 * H)
    o = oa[:, :, :H]                                   # feature-conv output
    a = oa[:, :, H:]                                   # attention-conv output

    # Padding mask rebuilt in-kernel from per-sequence lengths (prefix mask):
    # equivalent to masked_fill(mask == False, -1e9).
    pos = jax.lax.broadcasted_iota(jnp.int32, (TB, L, H), 1)
    a = jnp.where(pos < len_ref[...], a, jnp.float32(-1e9))

    # Masked softmax over the sequence axis (f32; EUP approx reciprocal for the
    # normalization -- free bundle slot).
    amax = jnp.max(a, axis=1, keepdims=True)
    p = jnp.exp(a - amax)
    attn = p * pl.reciprocal(jnp.sum(p, axis=1, keepdims=True), approx=True)

    o1 = jnp.sum(o * attn, axis=1)                     # attention-pooled [TB, H]
    o2 = jnp.max(o, axis=1)                            # max-pooled       [TB, H]

    # Linear(2H, 32) without the lane concat (two H-row halves); Dropout = identity;
    # ReLU; eval-mode BatchNorm1d folded into w2/b2 on the host.
    h = (jnp.dot(o1.astype(mxu_dtype), w1a_ref[...], preferred_element_type=jnp.float32)
         + jnp.dot(o2.astype(mxu_dtype), w1b_ref[...], preferred_element_type=jnp.float32)
         + b1_ref[...])
    h = jnp.maximum(h, 0.0)
    logits = (jnp.dot(h.astype(mxu_dtype), w2_ref[...],
                      preferred_element_type=jnp.float32)
              + b2_ref[...])
    out_ref[...] = logits[jnp.newaxis].astype(out_ref.dtype)


def _pick_batch_tile(B, L, H, K, NLp, x_itemsize, weight_vmem, vmem_budget):
    """VMEM-budget-driven batch tile (maximizing per-step DMA size)."""
    pad = K // 2
    per_row = (2 * L * H * x_itemsize          # x block, double-buffered
               + 2 * H * 4                     # lengths block, double-buffered
               + (L + 2 * pad) * H * 2         # bf16 padded-window scratch
               + L * 2 * H * 4                 # f32 fused-conv accumulator
               + 3 * L * H * 4                 # softmax / attention temporaries
               + 2 * NLp * 4)                  # output block, double-buffered
    avail = vmem_budget - weight_vmem - (4 << 20)      # fixed headroom
    tb = max(1, int(avail // per_row))                  # round DOWN (no 8x blow-up)
    tb = min(tb, B)
    # Keep >= 2 grid steps so v7x's two TensorCores both get work; cheap on the
    # single-TC v5e/v6e (one extra ~0.35us grid step).
    if B >= 8:
        tb = min(tb, max(1, B // 2))
    return tb


def light_attention_pooling_head(x, mask, params, *, kernel_size):
    """x: [B, L, H] float, mask: [B, L] bool zero-padding mask -> [B, num_labels]."""
    B, L, H = x.shape
    K = kernel_size
    pad = K // 2
    hid = params["w_lin"].shape[1]                       # 32
    NL = params["w_out"].shape[1]
    NLp = ((NL + 127) // 128) * 128                      # lane-dense output width

    # The module's mask is a zero-padding mask (False == padding): represent it as
    # per-sequence lengths so the mask is rebuilt in-kernel from an iota compare.
    # TODO(synk): arbitrary non-prefix masks would need the boolean mask streamed.
    lengths = jnp.sum(mask.astype(jnp.int32), axis=-1)

    # ---- host-side weight fusion / folding (tiny, one-time) ---------------------
    # Fused conv weight: PyTorch Conv1d weight [C_out, C_in, K] -> per-tap
    # [K, C_in, C_out]; feature & attention outputs concatenated -> [K*H, 2H] bf16.
    # TODO(synk): at H ~ 512+ on v7x (64 MiB VMEM) this resident weight must be
    # tiled over a K grid axis with an accumulator (init/finalize via pl.when).
    wf = jnp.transpose(params["w_feat"], (2, 1, 0))
    wa = jnp.transpose(params["w_attn"], (2, 1, 0))
    wfa = jnp.concatenate([wf, wa], axis=-1).reshape(K * H, 2 * H).astype(jnp.bfloat16)
    bfa = jnp.concatenate([params["b_feat"], params["b_attn"]]
                          ).reshape(1, 2 * H).astype(jnp.float32)

    w1 = params["w_lin"].astype(jnp.bfloat16)            # [2H, 32]
    w1a, w1b = w1[:H], w1[H:]                            # split: avoids lane concat
    b1 = params["b_lin"].reshape(1, hid).astype(jnp.float32)

    # Eval-mode BatchNorm1d folded into the output Linear:
    #   BN(relu(h)) @ w_out + b_out == relu(h) @ (s[:,None]*w_out) + (t@w_out + b_out)
    eps = 1e-5
    s = params["bn_gamma"] / jnp.sqrt(params["bn_var"] + eps)
    t = params["bn_beta"] - params["bn_mean"] * s
    w2 = s[:, None] * params["w_out"]                    # [32, NL]
    b2 = params["b_out"] + t @ params["w_out"]           # [NL]
    # Pad the label axis to 128 lanes (full-width stores); sliced off on host.
    w2 = jnp.pad(w2, ((0, 0), (0, NLp - NL))).astype(jnp.bfloat16)
    b2 = jnp.pad(b2, (0, NLp - NL)).reshape(1, NLp).astype(jnp.float32)

    weight_vmem = int(sum(a.size * a.dtype.itemsize
                          for a in (wfa, bfa, w1a, w1b, b1, w2, b2)))
    # Scoped-VMEM limit set explicitly (defaults are 16/32 MiB). 56 MiB leaves
    # headroom under v7x's 64 MiB physical VMEM; grows for large resident weights
    # (v6e/v5e have 128 MiB physical -- on v7x large H needs the K-tiling TODO).
    vmem_budget = int(min(100 << 20, max(56 << 20, weight_vmem + (24 << 20))))

    TB = _pick_batch_tile(B, L, H, K, NLp, x.dtype.itemsize, weight_vmem, vmem_budget)
    G = pl.cdiv(B, TB)
    Bp = G * TB
    if Bp != B:
        # Only taken when TB does not divide B.
        # TODO(synk): a clamped/overlapping last block would avoid this extra HBM
        # pass over x.
        x = jnp.pad(x, ((0, Bp - B), (0, 0), (0, 0)))
        lengths = jnp.pad(lengths, (0, Bp - B))

    # Lengths lane-broadcast to [Bp, 1, H] so the in-kernel mask is one vectorized
    # iota-vs-int compare (tiny DMA per step).
    lens3 = jnp.broadcast_to(lengths.astype(jnp.int32)[:, None, None], (Bp, 1, H))

    fuse_im2col = H < 128
    kernel = functools.partial(_la_pool_kernel, kernel_size=K,
                               fuse_im2col=fuse_im2col)

    # Constant operands: whole-array VMEM resident (single copy, no double buffer).
    const_vmem = pl.BlockSpec(memory_space=pltpu.MemorySpace.VMEM)

    cost = pl.CostEstimate(
        flops=int(2 * Bp * L * (K * H) * (2 * H)
                  + 2 * Bp * (2 * H) * hid + 2 * Bp * hid * NLp),
        transcendentals=int(Bp * L * H),
        bytes_accessed=int(x.size * x.dtype.itemsize + lens3.size * 4
                           + weight_vmem + Bp * NLp * 4))

    out = pl.pallas_call(
        kernel,
        out_shape=jax.ShapeDtypeStruct((G, TB, NLp), jnp.float32),
        grid_spec=pltpu.PrefetchScalarGridSpec(
            num_scalar_prefetch=0,
            grid=(G,),
            in_specs=[
                pl.BlockSpec((TB, L, H), lambda b: (b, 0, 0)),   # x tile (streamed)
                pl.BlockSpec((TB, 1, H), lambda b: (b, 0, 0)),   # lengths tile
                const_vmem,                                      # fused conv W (bf16)
                const_vmem,                                      # fused conv bias (f32)
                const_vmem,                                      # w1 (o1 half, bf16)
                const_vmem,                                      # w1 (o2 half, bf16)
                const_vmem,                                      # b1 (f32)
                const_vmem,                                      # w2, BN folded (bf16)
                const_vmem,                                      # b2, BN folded (f32)
            ],
            out_specs=pl.BlockSpec((1, TB, NLp), lambda b: (b, 0, 0)),
            scratch_shapes=[pltpu.VMEM((TB, L + 2 * pad, H), jnp.bfloat16)],
        ),
        compiler_params=pltpu.CompilerParams(
            dimension_semantics=("parallel",),
            vmem_limit_bytes=vmem_budget),
        cost_estimate=cost,
    )(x, lens3, wfa, bfa, w1a, w1b, b1, w2, b2)
    return out.reshape(Bp, NLp)[:B, :NL]


def _reference(x, mask, params, *, kernel_size):
    """Plain-JAX f32 reference of the same math (eval mode)."""
    B, L, H = x.shape
    K = kernel_size
    pad = K // 2
    xpad = jnp.pad(x, ((0, 0), (pad, pad), (0, 0)))
    wf = jnp.transpose(params["w_feat"], (2, 1, 0))
    wa = jnp.transpose(params["w_attn"], (2, 1, 0))
    o = sum(jnp.einsum("blh,hj->blj", xpad[:, k:k + L, :], wf[k]) for k in range(K))
    a = sum(jnp.einsum("blh,hj->blj", xpad[:, k:k + L, :], wa[k]) for k in range(K))
    o = o + params["b_feat"]
    a = a + params["b_attn"]
    a = jnp.where(mask[:, :, None], a, -1e9)
    attn = jax.nn.softmax(a, axis=1)
    o1 = jnp.sum(o * attn, axis=1)
    o2 = jnp.max(o, axis=1)
    feat = jnp.concatenate([o1, o2], axis=-1)
    h = jnp.maximum(feat @ params["w_lin"] + params["b_lin"], 0.0)
    eps = 1e-5
    h = (h - params["bn_mean"]) / jnp.sqrt(params["bn_var"] + eps)
    h = h * params["bn_gamma"] + params["bn_beta"]
    return h @ params["w_out"] + params["b_out"]


if __name__ == "__main__":
    NUM_LABELS = 11
    KSIZE = 9

    def make_params(key, H, K, NL, hid=32):
        ks = jax.random.split(key, 12)

        def w(k, shape, fan_in):
            return (0.5 / (fan_in ** 0.5)) * jax.random.normal(k, shape, jnp.float32)

        return {
            "w_feat": w(ks[0], (H, H, K), H * K),        # Conv1d weight [C_out, C_in, K]
            "b_feat": 0.05 * jax.random.normal(ks[1], (H,), jnp.float32),
            "w_attn": w(ks[2], (H, H, K), H * K),
            "b_attn": 0.05 * jax.random.normal(ks[3], (H,), jnp.float32),
            "w_lin": w(ks[4], (2 * H, hid), 2 * H),      # Linear weight, pre-transposed
            "b_lin": 0.05 * jax.random.normal(ks[5], (hid,), jnp.float32),
            "bn_gamma": 1.0 + 0.1 * jax.random.normal(ks[6], (hid,), jnp.float32),
            "bn_beta": 0.1 * jax.random.normal(ks[7], (hid,), jnp.float32),
            "bn_mean": 0.1 * jax.random.normal(ks[8], (hid,), jnp.float32),
            "bn_var": 1.0 + 0.5 * jax.random.uniform(ks[9], (hid,), jnp.float32),
            "w_out": w(ks[10], (hid, NL), hid),
            "b_out": 0.05 * jax.random.normal(ks[11], (NL,), jnp.float32),
        }

    key = jax.random.PRNGKey(0)
    # Two small configs: H < 128 exercises the fused im2col path, H = 128 the
    # per-tap accumulated-matmul path; both use a 2-step batch grid.
    for (B, L, H) in [(16, 16, 32), (8, 16, 128)]:
        kp, kx, kl, key = jax.random.split(key, 4)
        params = make_params(kp, H, KSIZE, NUM_LABELS)
        x = jax.random.normal(kx, (B, L, H), jnp.float32)
        lengths = jax.random.randint(kl, (B,), 1, L + 1).at[0].set(L)
        mask = jnp.arange(L)[None, :] < lengths[:, None]     # [B, L] padding mask

        out = light_attention_pooling_head(x, mask, params, kernel_size=KSIZE)
        out = jax.block_until_ready(out)
        ref = _reference(x, mask, params, kernel_size=KSIZE)

        assert out.shape == (B, NUM_LABELS)
        # Tolerance covers bf16 MXU operands and the EUP approximate reciprocal.
        assert jnp.allclose(out, ref, atol=5e-2, rtol=5e-2), (B, L, H, out, ref)

    print("KERNEL_OK")
</pallas_src>

<mosaic_0001>
module attributes {stable_mosaic.version = 11 : i64} {
  func.func @_la_pool_kernel(%arg0: i32, %arg1: memref<8x16x32xf32, #tpu.memory_space<vmem>>, %arg2: memref<8x1x32xi32, #tpu.memory_space<vmem>>, %arg3: memref<288x64xbf16, #tpu.memory_space<vmem>>, %arg4: memref<1x64xf32, #tpu.memory_space<vmem>>, %arg5: memref<32x32xbf16, #tpu.memory_space<vmem>>, %arg6: memref<32x32xbf16, #tpu.memory_space<vmem>>, %arg7: memref<1x32xf32, #tpu.memory_space<vmem>>, %arg8: memref<32x128xbf16, #tpu.memory_space<vmem>>, %arg9: memref<1x128xf32, #tpu.memory_space<vmem>>, %arg10: memref<1x8x128xf32, #tpu.memory_space<vmem>>, %arg11: memref<8x24x32xbf16, #tpu.memory_space<vmem>>) attributes {dimension_semantics = [#tpu.dimension_semantics<parallel>], iteration_bounds = array<i64: 2>, scalar_prefetch = 0 : i64, scratch_operands = 1 : i64, tpu.core_type = #tpu.core_type<tc>, window_params = [{transform_indices = @transform_0, window_bounds = array<i64: 8, 16, 32>}, {transform_indices = @transform_1, window_bounds = array<i64: 8, 1, 32>}, {pipeline_mode = #tpu.pipeline_mode<synchronous>, transform_indices = @transform_2, window_bounds = array<i64: 288, 64>}, {pipeline_mode = #tpu.pipeline_mode<synchronous>, transform_indices = @transform_3, window_bounds = array<i64: 1, 64>}, {pipeline_mode = #tpu.pipeline_mode<synchronous>, transform_indices = @transform_4, window_bounds = array<i64: 32, 32>}, {pipeline_mode = #tpu.pipeline_mode<synchronous>, transform_indices = @transform_5, window_bounds = array<i64: 32, 32>}, {pipeline_mode = #tpu.pipeline_mode<synchronous>, transform_indices = @transform_6, window_bounds = array<i64: 1, 32>}, {pipeline_mode = #tpu.pipeline_mode<synchronous>, transform_indices = @transform_7, window_bounds = array<i64: 32, 128>}, {pipeline_mode = #tpu.pipeline_mode<synchronous>, transform_indices = @transform_8, window_bounds = array<i64: 1, 128>}, {transform_indices = @transform_9, window_bounds = array<i64: 1, 8, 128>}]} {
    %cst = arith.constant 0.000000e+00 : bf16
    %0 = vector.broadcast %cst : bf16 to vector<8x4x32xbf16>
    %c0 = arith.constant 0 : index
    %c0_0 = arith.constant 0 : index
    %c0_1 = arith.constant 0 : index
    %1 = vector.load %arg11[%c0, %c0_0, %c0_1] : memref<8x24x32xbf16, #tpu.memory_space<vmem>>, vector<8x4x32xbf16>
    tpu.vector_store %arg11[%c0, %c0_0, %c0_1], %0 {strides = array<i32>} : memref<8x24x32xbf16, #tpu.memory_space<vmem>>, vector<8x4x32xbf16>,
    %c0_2 = arith.constant 0 : index
    %c20 = arith.constant 20 : index
    %c0_3 = arith.constant 0 : index
    %2 = vector.load %arg11[%c0_2, %c20, %c0_3] : memref<8x24x32xbf16, #tpu.memory_space<vmem>>, vector<8x4x32xbf16>
    tpu.vector_store %arg11[%c0_2, %c20, %c0_3], %0 {strides = array<i32>} : memref<8x24x32xbf16, #tpu.memory_space<vmem>>, vector<8x4x32xbf16>,
    %c0_4 = arith.constant 0 : index
    %c0_5 = arith.constant 0 : index
    %c0_6 = arith.constant 0 : index
    %3 = vector.load %arg1[%c0_4, %c0_5, %c0_6] : memref<8x16x32xf32, #tpu.memory_space<vmem>>, vector<8x16x32xf32>
    %4 = arith.truncf %3 : vector<8x16x32xf32> to vector<8x16x32xbf16>
    %c0_7 = arith.constant 0 : index
    %c4 = arith.constant 4 : index
    %c0_8 = arith.constant 0 : index
    %5 = vector.load %arg11[%c0_7, %c4, %c0_8] : memref<8x24x32xbf16, #tpu.memory_space<vmem>>, vector<8x16x32xbf16>
    tpu.vector_store %arg11[%c0_7, %c4, %c0_8], %4 {strides = array<i32>} : memref<8x24x32xbf16, #tpu.memory_space<vmem>>, vector<8x16x32xbf16>,
    %c0_9 = arith.constant 0 : index
    %c0_10 = arith.constant 0 : index
    %c0_11 = arith.constant 0 : index
    %6 = vector.load %arg11[%c0_9, %c0_10, %c0_11] : memref<8x24x32xbf16, #tpu.memory_space<vmem>>, vector<8x16x32xbf16>
    %7 = vector.shape_cast %6 : vector<8x16x32xbf16> to vector<128x32xbf16>
    %c0_12 = arith.constant 0 : index
    %c1 = arith.constant 1 : index
    %c0_13 = arith.constant 0 : index
    %8 = vector.load %arg11[%c0_12, %c1, %c0_13] : memref<8x24x32xbf16, #tpu.memory_space<vmem>>, vector<8x16x32xbf16>
    %9 = vector.shape_cast %8 : vector<8x16x32xbf16> to vector<128x32xbf16>
    %c0_14 = arith.constant 0 : index
    %c2 = arith.constant 2 : index
    %c0_15 = arith.constant 0 : index
    %10 = vector.load %arg11[%c0_14, %c2, %c0_15] : memref<8x24x32xbf16, #tpu.memory_space<vmem>>, vector<8x16x32xbf16>
    %11 = vector.shape_cast %10 : vector<8x16x32xbf16> to vector<128x32xbf16>
    %c0_16 = arith.constant 0 : index
    %c3 = arith.constant 3 : index
    %c0_17 = arith.constant 0 : index
    %12 = vector.load %arg11[%c0_16, %c3, %c0_17] : memref<8x24x32xbf16, #tpu.memory_space<vmem>>, vector<8x16x32xbf16>
    %13 = vector.shape_cast %12 : vector<8x16x32xbf16> to vector<128x32xbf16>
    %c0_18 = arith.constant 0 : index
    %c4_19 = arith.constant 4 : index
    %c0_20 = arith.constant 0 : index
    %14 = vector.load %arg11[%c0_18, %c4_19, %c0_20] : memref<8x24x32xbf16, #tpu.memory_space<vmem>>, vector<8x16x32xbf16>
    %15 = vector.shape_cast %14 : vector<8x16x32xbf16> to vector<128x32xbf16>
    %c0_21 = arith.constant 0 : index
    %c5 = arith.constant 5 : index
    %c0_22 = arith.constant 0 : index
    %16 = vector.load %arg11[%c0_21, %c5, %c0_22] : memref<8x24x32xbf16, #tpu.memory_space<vmem>>, vector<8x16x32xbf16>
    %17 = vector.shape_cast %16 : vector<8x16x32xbf16> to vector<128x32xbf16>
    %c0_23 = arith.constant 0 : index
    %c6 = arith.constant 6 : index
    %c0_24 = arith.constant 0 : index
    %18 = vector.load %arg11[%c0_23, %c6, %c0_24] : memref<8x24x32xbf16, #tpu.memory_space<vmem>>, vector<8x16x32xbf16>
    %19 = vector.shape_cast %18 : vector<8x16x32xbf16> to vector<128x32xbf16>
    %c0_25 = arith.constant 0 : index
    %c7 = arith.constant 7 : index
    %c0_26 = arith.constant 0 : index
    %20 = vector.load %arg11[%c0_25, %c7, %c0_26] : memref<8x24x32xbf16, #tpu.memory_space<vmem>>, vector<8x16x32xbf16>
    %21 = vector.shape_cast %20 : vector<8x16x32xbf16> to vector<128x32xbf16>
    %c0_27 = arith.constant 0 : index
    %c8 = arith.constant 8 : index
    %c0_28 = arith.constant 0 : index
    %22 = vector.load %arg11[%c0_27, %c8, %c0_28] : memref<8x24x32xbf16, #tpu.memory_space<vmem>>, vector<8x16x32xbf16>
    %23 = vector.shape_cast %22 : vector<8x16x32xbf16> to vector<128x32xbf16>
    %24 = tpu.concatenate %7, %9, %11, %13, %15, %17, %19, %21, %23 in 1 : vector<128x32xbf16>, vector<128x32xbf16>, vector<128x32xbf16>, vector<128x32xbf16>, vector<128x32xbf16>, vector<128x32xbf16>, vector<128x32xbf16>, vector<128x32xbf16>, vector<128x32xbf16> -> vector<128x288xbf16>
    %c0_29 = arith.constant 0 : index
    %c0_30 = arith.constant 0 : index
    %25 = vector.load %arg3[%c0_29, %c0_30] : memref<288x64xbf16, #tpu.memory_space<vmem>>, vector<288x64xbf16>
    %cst_31 = arith.constant dense<0.000000e+00> : vector<128x64xf32>
    %26 = tpu.matmul %24, %25, %cst_31 {dimension_numbers = #tpu.dot_dimension_numbers<[1], [0], [0], [1], [0, 0, 1, 1], [], []>} : vector<128x288xbf16>, vector<288x64xbf16>, vector<128x64xf32> -> vector<128x64xf32>
    %c0_32 = arith.constant 0 : index
    %c0_33 = arith.constant 0 : index
    %27 = vector.load %arg4[%c0_32, %c0_33] : memref<1x64xf32, #tpu.memory_space<vmem>>, vector<1x64xf32>
    %28 = vector.broadcast %27 : vector<1x64xf32> to vector<128x64xf32>
    %29 = arith.addf %26, %28 : vector<128x64xf32>
    %30 = vector.shape_cast %29 : vector<128x64xf32> to vector<8x16x64xf32>
    %31 = vector.extract_strided_slice %30 {offsets = [0, 0, 0], sizes = [8, 16, 32], strides = [1, 1, 1]} : vector<8x16x64xf32> to vector<8x16x32xf32>
    %32 = vector.extract_strided_slice %30 {offsets = [0, 0, 32], sizes = [8, 16, 32], strides = [1, 1, 1]} : vector<8x16x64xf32> to vector<8x16x32xf32>
    %33 = tpu.iota {dimensions = array<i32: 1>} : vector<8x16x32xi32>
    %c0_34 = arith.constant 0 : index
    %c0_35 = arith.constant 0 : index
    %c0_36 = arith.constant 0 : index
    %34 = vector.load %arg2[%c0_34, %c0_35, %c0_36] : memref<8x1x32xi32, #tpu.memory_space<vmem>>, vector<8x1x32xi32>
    %35 = vector.broadcast %34 : vector<8x1x32xi32> to vector<8x16x32xi32>
    %36 = arith.cmpi slt, %33, %35 : vector<8x16x32xi32>
    %cst_37 = arith.constant -1.000000e+09 : f32
    %37 = vector.broadcast %cst_37 : f32 to vector<8x16x32xf32>
    %38 = arith.select %36, %32, %37 : vector<8x16x32xi1>, vector<8x16x32xf32>
    %cst_38 = arith.constant dense<0xFF800000> : vector<8x32xf32>
    %39 = vector.multi_reduction <maximumf>, %38, %cst_38 [1] : vector<8x16x32xf32> to vector<8x32xf32>
    %40 = vector.shape_cast %39 : vector<8x32xf32> to vector<8x1x32xf32>
    %41 = vector.broadcast %40 : vector<8x1x32xf32> to vector<8x16x32xf32>
    %42 = arith.subf %38, %41 : vector<8x16x32xf32>
    %43 = math.exp %42 : vector<8x16x32xf32>
    %cst_39 = arith.constant dense<0.000000e+00> : vector<8x32xf32>
    %44 = vector.multi_reduction <add>, %43, %cst_39 [1] : vector<8x16x32xf32> to vector<8x32xf32>
    %45 = vector.shape_cast %44 : vector<8x32xf32> to vector<8x1x32xf32>
    %46 = tpu.reciprocal %45 {approx = true} : vector<8x1x32xf32> -> vector<8x1x32xf32>
    %47 = vector.broadcast %46 : vector<8x1x32xf32> to vector<8x16x32xf32>
    %48 = arith.mulf %43, %47 : vector<8x16x32xf32>
    %49 = arith.mulf %31, %48 : vector<8x16x32xf32>
    %cst_40 = arith.constant dense<0.000000e+00> : vector<8x32xf32>
    %50 = vector.multi_reduction <add>, %49, %cst_40 [1] : vector<8x16x32xf32> to vector<8x32xf32>
    %cst_41 = arith.constant dense<0xFF800000> : vector<8x32xf32>
    %51 = vector.multi_reduction <maximumf>, %31, %cst_41 [1] : vector<8x16x32xf32> to vector<8x32xf32>
    %52 = arith.truncf %50 : vector<8x32xf32> to vector<8x32xbf16>
    %c0_42 = arith.constant 0 : index
    %c0_43 = arith.constant 0 : index
    %53 = vector.load %arg5[%c0_42, %c0_43] : memref<32x32xbf16, #tpu.memory_space<vmem>>, vector<32x32xbf16>
    %cst_44 = arith.constant dense<0.000000e+00> : vector<8x32xf32>
    %54 = tpu.matmul %52, %53, %cst_44 {dimension_numbers = #tpu.dot_dimension_numbers<[1], [0], [0], [1], [0, 0, 1, 1], [], []>} : vector<8x32xbf16>, vector<32x32xbf16>, vector<8x32xf32> -> vector<8x32xf32>
    %55 = arith.truncf %51 : vector<8x32xf32> to vector<8x32xbf16>
    %c0_45 = arith.constant 0 : index
    %c0_46 = arith.constant 0 : index
    %56 = vector.load %arg6[%c0_45, %c0_46] : memref<32x32xbf16, #tpu.memory_space<vmem>>, vector<32x32xbf16>
    %cst_47 = arith.constant dense<0.000000e+00> : vector<8x32xf32>
    %57 = tpu.matmul %55, %56, %cst_47 {dimension_numbers = #tpu.dot_dimension_numbers<[1], [0], [0], [1], [0, 0, 1, 1], [], []>} : vector<8x32xbf16>, vector<32x32xbf16>, vector<8x32xf32> -> vector<8x32xf32>
    %58 = arith.addf %54, %57 : vector<8x32xf32>
    %c0_48 = arith.constant 0 : index
    %c0_49 = arith.constant 0 : index
    %59 = vector.load %arg7[%c0_48, %c0_49] : memref<1x32xf32, #tpu.memory_space<vmem>>, vector<1x32xf32>
    %60 = vector.broadcast %59 : vector<1x32xf32> to vector<8x32xf32>
    %61 = arith.addf %58, %60 : vector<8x32xf32>
    %cst_50 = arith.constant 0.000000e+00 : f32
    %62 = vector.broadcast %cst_50 : f32 to vector<8x32xf32>
    %63 = arith.maximumf %61, %62 : vector<8x32xf32>
    %64 = arith.truncf %63 : vector<8x32xf32> to vector<8x32xbf16>
    %c0_51 = arith.constant 0 : index
    %c0_52 = arith.constant 0 : index
    %65 = vector.load %arg8[%c0_51, %c0_52] : memref<32x128xbf16, #tpu.memory_space<vmem>>, vector<32x128xbf16>
    %cst_53 = arith.constant dense<0.000000e+00> : vector<8x128xf32>
    %66 = tpu.matmul %64, %65, %cst_53 {dimension_numbers = #tpu.dot_dimension_numbers<[1], [0], [0], [1], [0, 0, 1, 1], [], []>} : vector<8x32xbf16>, vector<32x128xbf16>, vector<8x128xf32> -> vector<8x128xf32>
    %c0_54 = arith.constant 0 : index
    %c0_55 = arith.constant 0 : index
    %67 = vector.load %arg9[%c0_54, %c0_55] : memref<1x128xf32, #tpu.memory_space<vmem>>, vector<1x128xf32>
    %68 = vector.broadcast %67 : vector<1x128xf32> to vector<8x128xf32>
    %69 = arith.addf %66, %68 : vector<8x128xf32>
    %70 = vector.shape_cast %69 : vector<8x128xf32> to vector<1x8x128xf32>
    %c0_56 = arith.constant 0 : index
    %c0_57 = arith.constant 0 : index
    %c0_58 = arith.constant 0 : index
    %71 = vector.load %arg10[%c0_56, %c0_57, %c0_58] : memref<1x8x128xf32, #tpu.memory_space<vmem>>, vector<1x8x128xf32>
    tpu.vector_store %arg10[%c0_56, %c0_57, %c0_58], %70 {strides = array<i32>} : memref<1x8x128xf32, #tpu.memory_space<vmem>>, vector<1x8x128xf32>,
    return
  }
  func.func @transform_0(%arg0: i32) -> (i32, i32, i32) {
    %c0_i32 = arith.constant 0 : i32
    %c0_i32_0 = arith.constant 0 : i32
    %c0_i32_1 = arith.constant 0 : i32
    return %arg0, %c0_i32, %c0_i32_0 : i32, i32, i32
  }
  func.func @transform_1(%arg0: i32) -> (i32, i32, i32) {
    %c0_i32 = arith.constant 0 : i32
    %c0_i32_0 = arith.constant 0 : i32
    %c0_i32_1 = arith.constant 0 : i32
    return %arg0, %c0_i32, %c0_i32_0 : i32, i32, i32
  }
  func.func @transform_2(%arg0: i32) -> (i32, i32) {
    %c0_i32 = arith.constant 0 : i32
    %c0_i32_0 = arith.constant 0 : i32
    %c0_i32_1 = arith.constant 0 : i32
    return %c0_i32, %c0_i32_0 : i32, i32
  }
  func.func @transform_3(%arg0: i32) -> (i32, i32) {
    %c0_i32 = arith.constant 0 : i32
    %c0_i32_0 = arith.constant 0 : i32
    %c0_i32_1 = arith.constant 0 : i32
    return %c0_i32, %c0_i32_0 : i32, i32
  }
  func.func @transform_4(%arg0: i32) -> (i32, i32) {
    %c0_i32 = arith.constant 0 : i32
    %c0_i32_0 = arith.constant 0 : i32
    %c0_i32_1 = arith.constant 0 : i32
    return %c0_i32, %c0_i32_0 : i32, i32
  }
  func.func @transform_5(%arg0: i32) -> (i32, i32) {
    %c0_i32 = arith.constant 0 : i32
    %c0_i32_0 = arith.constant 0 : i32
    %c0_i32_1 = arith.constant 0 : i32
    return %c0_i32, %c0_i32_0 : i32, i32
  }
  func.func @transform_6(%arg0: i32) -> (i32, i32) {
    %c0_i32 = arith.constant 0 : i32
    %c0_i32_0 = arith.constant 0 : i32
    %c0_i32_1 = arith.constant 0 : i32
    return %c0_i32, %c0_i32_0 : i32, i32
  }
  func.func @transform_7(%arg0: i32) -> (i32, i32) {
    %c0_i32 = arith.constant 0 : i32
    %c0_i32_0 = arith.constant 0 : i32
    %c0_i32_1 = arith.constant 0 : i32
    return %c0_i32, %c0_i32_0 : i32, i32
  }
  func.func @transform_8(%arg0: i32) -> (i32, i32) {
    %c0_i32 = arith.constant 0 : i32
    %c0_i32_0 = arith.constant 0 : i32
    %c0_i32_1 = arith.constant 0 : i32
    return %c0_i32, %c0_i32_0 : i32, i32
  }
  func.func @transform_9(%arg0: i32) -> (i32, i32, i32) {
    %c0_i32 = arith.constant 0 : i32
    %c0_i32_0 = arith.constant 0 : i32
    %c0_i32_1 = arith.constant 0 : i32
    return %arg0, %c0_i32, %c0_i32_0 : i32, i32, i32
  }
}

</mosaic_0001>

<bundles_post_ra>
// kernel: tpu_custom_call.1
= control target key start
LH: loop header
LB: loop body
LE: loop exit
PB: predicated region body
PF: predicated region fallthrough
CT: control target
= control target key end

     0   :  { %14 = vsyncpa [#allocation4], 0  ;;  %s5385_s0 = inlined_call_operand.hbm [shape: f32[16,16,32], index: 0, kind: input, shape index: {}]   ;;  %s5386_s1 = inlined_call_operand.vmem [shape: s32[16,1,32], index: 1, kind: input, shape index: {}]   ;;  %s5387_s2 = inlined_call_operand.vmem [shape: bf16[288,64], index: 2, kind: input, shape index: {}]   ;;  %s5388_s3 = inlined_call_operand.vmem [shape: f32[1,64], index: 3, kind: input, shape index: {}]   ;;  %s5389_s4 = inlined_call_operand.vmem [shape: bf16[32,32], index: 4, kind: input, shape index: {}]   ;;  %s5390_s5 = inlined_call_operand.vmem [shape: bf16[32,32], index: 5, kind: input, shape index: {}]   ;;  %s5391_s6 = inlined_call_operand.vmem [shape: f32[1,32], index: 6, kind: input, shape index: {}]   ;;  %s5392_s7 = inlined_call_operand.vmem [shape: bf16[32,128], index: 7, kind: input, shape index: {}]   ;;  %s5393_s8 = inlined_call_operand.vmem [shape: f32[1,128], index: 8, kind: input, shape index: {}]   ;;  %s5394_s9 = inlined_call_operand.hbm [shape: f32[2,8,128], index: 9, kind: output, shape index: {}]  }
   0x1   :  { %16 = vsyncpa [#allocation4 + $0x1], 0 }
   0x2   :  { %17 = vsyncpa [#allocation5], 0 }
   0x3   :  { %19 = vsyncpa [#allocation5 + $0x1], 0  ;;  %s3885_s30 = smov 0   ;;  %s3887_s10 = smov 0  }
   0x4   :  { %s3889_s11 = smov 0   ;;  %s3891_s12 = smov 0  }
   0x5 LB: > { %s3906_s13 = sadd.s32 4294967295, %s3823_s12   ;;  %s3251_s14 = sadd.s32 4294967294, %s3823_s12   ;;  %s3823_s12 = sphi %s3891_s12, %s5452_s12   ;;  %s3819_s11 = sphi %s3889_s11, %s5451_s11   ;;  %s3815_s10 = sphi %s3887_s10, %s5450_s10   ;;  %s3811_s30 = sphi %s3885_s30, %s5449_s30  }
   0x6   : > { %s3910_s15 = sadd.s32 1, %s3823_s12   ;;  %s32_s16 = sadd.s32 1, %s3819_s11 }
   0x7   : > { %s29_s17 = ssub.s32 %s3823_s12, %s3910_s15  ;;  %p39_p0 = scmp.ne.s32.totalorder %s3819_s11, %s3815_s10 }
   0x8   : > { %p30_p1 = scmp.eq.s32.totalorder %s29_s17, 0  ;;  %p40_p2 = scmp.eq.s32.totalorder %s3823_s12, 0 }
   0x9   : > { %p45_p3 = scmp.ne.s32.totalorder %s3815_s10, %s3811_s30  ;;  %p46_p4 = scmp.eq.s32.totalorder %s3906_s13, 0 }
   0xa   : > { %s3922_s18 = scalar_select %p30_p1, %s3819_s11, %s32_s16  }
   0xb   : > { %p3924_p5 = por %p40_p2, %p39_p0  ;;  %p3928_p6 = por %p46_p4, %p45_p3 }
   0xc   : > { %p242_p7 = scmp.eq.s32.totalorder %s3906_s13, 1  ;;  %p248_p8 = scmp.eq.s32.totalorder %s3251_s14, 1 }
   0xd   : > { %p3589_p10 = scmp.lt.s32.totalorder %s3823_s12, 2  ;;  %s289_s23 = sand.u32 1, %s3819_s11  }
   0xe   : > { %p3935_p11 = por %p242_p7, %p39_p0  ;;  %p3939_p12 = por %p248_p8, %p45_p3 }
   0xf   : > { %s3433_s24 = sshll.u32 %s3823_s12, 11  ;;  %s3254_s25 = sshll.u32 %s289_s23, 7 }
  0x10   : > { %s5408_s21 = scalar_select %p3935_p11, 1, 0 }
  0x11   : > { %s5409_s22 = scalar_select %p3939_p12, 1, 0 }
  0x12   : > { %s3948_s28 = scalar_lea.hbm %s5385_s0, %s3433_s24  ;;  %s293_s29 = scalar_lea.vmem [#allocation3], %s3254_s25 }
  0x13   : > { %s301_s14 = sshll.u32 %s293_s29, 4  ;;  %p3952_p13 = pnand %p3589_p10, %p3924_p5  ;;  %s3956_s14 = int_to_ptr.vmem [resolvable:$true] %s301_s14 }
  0x14   : > { %s3958_s17 = scalar_lea.sflag [#allocation4], %s289_s23  ;;  %s3727_s26 = scalar_lea.hbm %s3948_s28, 2048 }
  0x15   : > { %p3728_p0 = scmp.ne.s32.totalorder %s3948_s28, %s3727_s26  ;;  %p3729_p1 = pneg %p3952_p13 }
  0x16   : > { %s3732_s25 = scalar_lea.hbm %s5385_s0, 4096  ;;  %p3733_p4 = scmp.lt.u32.totalorder %s3948_s28, %s5385_s0 }
  0x17   : > { %p3730_p2 = pnand %p3729_p1, %p3728_p0  ;;  %p3734_p5 = scmp.lt.u32.totalorder %s3732_s25, %s3727_s26 }
  0x18   : > { %p3736_p8 = scmp.lt.u32.totalorder %s3727_s26, %s3948_s28 }
  0x19   : > { %p3731_p3 = pneg %p3730_p2  ;;  %p3735_p7 = por %p3734_p5, %p3733_p4 }
  0x1b   : > { %p3737_p10 = por %p3736_p8, %p3735_p7 }
  0x1d   : > { %p3738_p9 = pnand %p3737_p10, %p3731_p3 }
  0x1f   : > { %3741 = shalt.err (!%p3738_p9)
}
  0x20   : > { %s3742_s23 = scalar_lea.vmem %s3956_s14, 2048  ;;  %s3825_s24 = smov [#allocation3]  }
  0x21   : > { %p3743_p0 = scmp.ne.s32.totalorder %s3956_s14, %s3742_s23  ;;  %s3747_s19 = sshll.u32 %s3825_s24, 4  ;;  %s3748_s19 = int_to_ptr.vmem [resolvable:$false] %s3747_s19 }
  0x22   : > { %s3749_s27 = scalar_lea.vmem %s3748_s19, 4096  ;;  %p3750_p11 = scmp.lt.s32.totalorder %s3956_s14, %s3748_s19 }
  0x23   : > { %p3745_p2 = pnand %p3743_p0, %p3729_p1  ;;  %p3751_p4 = scmp.lt.s32.totalorder %s3749_s27, %s3742_s23 }
  0x25   : > { %p3746_p12 = pneg %p3745_p2  ;;  %p3752_p5 = por %p3751_p4, %p3750_p11 }
  0x27   : > { %p3753_p7 = pnand %p3752_p5, %p3746_p12 }
  0x29   : > { %3756 = shalt.err (!%p3753_p7)
}
  0x2a   : > { %s3826_s26 = smov 128   ;;  %s3827_s25 = smov 8  }
  0x2b   : > { %3584 = dma.hbm_to_vmem [thread:$0]  (!%p3952_p13), %s3948_s28, 2048, %s3956_s14, %s3958_s17, %s3826_s26, %s3826_s26, %s3827_s25  }
  0x2c   : > { %p3258_p9 = scmp.ge.s32.totalorder %s3823_s12, 1  ;;  %p317_p1 = scmp.lt.s32.totalorder %s3823_s12, 3 }
  0x2e   : > { %p318_p3 = pnand %p3258_p9, %p317_p1 }
  0x30   : > { %321 = sbr.rel (%p318_p3) target bundleno = 1243 (0x4db), region = 56 }
  0x37   : > { %s3989_s29 = sand.u32 1, %s3815_s10  }
  0x38   : > { %s3259_s23 = sshll.u32 %s3989_s29, 7  ;;  %s324_s24 = scalar_lea.sflag [#allocation4], %s3989_s29 }
  0x39   : > { %s3993_s19 = scalar_lea.vmem [#allocation3], %s3259_s23 }
  0x3a   : > { %3802 = dma.done.wait (%p3928_p6), %s324_s24, 2048  }
  0x3b   : > { %3804 = vsyncadd (%p3928_p6), %s324_s24, 4294965248  ;;  %vm373_vm0 = vcmask 254976   ;;  %vm382_vm1 = vcmask 257026   ;;  %v3828_v0 = vmov 0   ;;  %v393_v1 = vld [vmem:[%s3993_s19 + $0x10] sm:$0xff]  ;;  %v394_v2 = vld [vmem:[%s3993_s19 + $0x18] sm:$0xff] }
  0x3c   : > { %384 = vst.msk [vmem:[#allocation2 + $0x14] sm:$0xc] %vm382_vm1, %v3828_v0  ;;  %383 = vst.msk [vmem:[#allocation2 + $0x8] sm:$0xc] %vm382_vm1, %v3828_v0  ;;  %vm455_vm2 = vcmask 1041408   ;;  %vm456_vm3 = vcmask 1045508   ;;  %v3436_v4 = vpack.c.bf16 %v393_v1, %v393_v1  ;;  %v3437_v5 = vpack.c.bf16 %v394_v2, %v394_v2 }
  0x3d   : > { %374 = vst.msk [vmem:[#allocation2] sm:$0x3] %vm373_vm0, %v3828_v0  ;;  %375 = vst.msk [vmem:[#allocation2 + $0xc] sm:$0x3] %vm373_vm0, %v3828_v0  ;;  %v391_v3 = vld [vmem:[%s3993_s19] sm:$0xff]  ;;  %v392_v6 = vld [vmem:[%s3993_s19 + $0x8] sm:$0xff] }
  0x3e   : > { %376 = vst.msk [vmem:[#allocation2 + $0x18] sm:$0x3] %vm373_vm0, %v3828_v0  ;;  %377 = vst.msk [vmem:[#allocation2 + $0x24] sm:$0x3] %vm373_vm0, %v3828_v0  ;;  %v3434_v7 = vpack.c.bf16 %v391_v3, %v391_v3  ;;  %v395_v8 = vld [vmem:[%s3993_s19 + $0x20] sm:$0xff]  ;;  %v396_v9 = vld [vmem:[%s3993_s19 + $0x28] sm:$0xff]  ;;  %v3435_v10 = vpack.c.bf16 %v392_v6, %v392_v6 }
  0x3f   : > { %378 = vst.msk [vmem:[#allocation2 + $0x30] sm:$0x3] %vm373_vm0, %v3828_v0  ;;  %379 = vst.msk [vmem:[#allocation2 + $0x3c] sm:$0x3] %vm373_vm0, %v3828_v0  ;;  %vm523_vm4 = vcmask 257024   ;;  %v3438_v11 = vpack.c.bf16 %v395_v8, %v395_v8  ;;  %v3439_v12 = vpack.c.bf16 %v396_v9, %v396_v9  ;;  %v397_v13 = vld [vmem:[%s3993_s19 + $0x30] sm:$0xff] }
  0x40   : > { %380 = vst.msk [vmem:[#allocation2 + $0x48] sm:$0x3] %vm373_vm0, %v3828_v0  ;;  %381 = vst.msk [vmem:[#allocation2 + $0x54] sm:$0x3] %vm373_vm0, %v3828_v0  ;;  %v398_v14 = vld [vmem:[%s3993_s19 + $0x38] sm:$0xff]  ;;  %v463_v16 = vrot.slane %v3436_v4, 6  ;;  %v3440_v19 = vpack.c.bf16 %v397_v13, %v397_v13 }
  0x41   : > { %385 = vst.msk [vmem:[#allocation2 + $0x20] sm:$0xc] %vm382_vm1, %v3828_v0  ;;  %386 = vst.msk [vmem:[#allocation2 + $0x2c] sm:$0xc] %vm382_vm1, %v3828_v0  ;;  %v465_v17 = vrot.slane %v3437_v5, 6  ;;  %v458_v18 = vrot.slane %v3434_v7, 6  ;;  %v3441_v23 = vpack.c.bf16 %v398_v14, %v398_v14 }
  0x42   : > { %387 = vst.msk [vmem:[#allocation2 + $0x38] sm:$0xc] %vm382_vm1, %v3828_v0  ;;  %388 = vst.msk [vmem:[#allocation2 + $0x44] sm:$0xc] %vm382_vm1, %v3828_v0  ;;  %v460_v20 = vrot.slane %v3435_v10, 6  ;;  %v468_v21 = vrot.slane %v3438_v11, 6 }
  0x43   : > { %389 = vst.msk [vmem:[#allocation2 + $0x50] sm:$0xc] %vm382_vm1, %v3828_v0  ;;  %390 = vst.msk [vmem:[#allocation2 + $0x5c] sm:$0xc] %vm382_vm1, %v3828_v0  ;;  %v470_v22 = vrot.slane %v3439_v12, 6  ;;  %v399_v24 = vld [vmem:[%s3993_s19 + $0x40] sm:$0xff] }
  0x44   : > { %vm4024_vm5 = vmor %vm455_vm2, %vm456_vm3  ;;  %v400_v25 = vld [vmem:[%s3993_s19 + $0x48] sm:$0xff]  ;;  %v401_v26 = vld [vmem:[%s3993_s19 + $0x50] sm:$0xff]  ;;  %v464_v27 = vrot.slane %v463_v16, 4  ;;  %v467_v28 = vrot.slane %v465_v17, 4  ;;  %526 = vst.msk [vmem:[#allocation2 + $0xc] sm:$0xc] %vm382_vm1, %v463_v16  ;;  %v3442_v40 = vpack.c.bf16 %v399_v24, %v399_v24 }
  0x45   : > { %v459_v29 = vrot.slane %v458_v18, 4  ;;  %522 = vst.msk [vmem:[#allocation2] sm:$0xc] %vm382_vm1, %v458_v18  ;;  %v473_v30 = vrot.slane %v3440_v19, 6  ;;  %v402_v31 = vld [vmem:[%s3993_s19 + $0x58] sm:$0xff]  ;;  %v403_v32 = vld [vmem:[%s3993_s19 + $0x60] sm:$0xff]  ;;  %v3443_v43 = vpack.c.bf16 %v400_v25, %v400_v25  ;;  %v3444_v44 = vpack.c.bf16 %v401_v26, %v401_v26 }
  0x46   : > { %v462_v33 = vrot.slane %v460_v20, 4  ;;  %v469_v34 = vrot.slane %v468_v21, 4  ;;  %v472_v35 = vrot.slane %v470_v22, 4  ;;  %529 = vst.msk [vmem:[#allocation2 + $0x18] sm:$0xc] %vm382_vm1, %v468_v21  ;;  %v475_v36 = vrot.slane %v3441_v23, 6 }
  0x47   : > { %v466_v37 = vsel %vm4024_vm5, %v464_v27, %v465_v17  ;;  %528 = vst.msk [vmem:[#allocation2 + $0x14] sm:$0x3] %vm373_vm0, %v467_v28  ;;  %v461_v38 = vsel %vm4024_vm5, %v459_v29, %v460_v20  ;;  %v474_v39 = vrot.slane %v473_v30, 4  ;;  %v478_v46 = vrot.slane %v3442_v40, 6  ;;  %v4082_v2 = vld [vmem:[%s3993_s19 + $0x68] sm:$0xff]  ;;  %s3829_s20 = smov 64  }
  0x48   : > { %532 = vst.msk [vmem:[#allocation2 + $0x24] sm:$0xc] %vm382_vm1, %v473_v30  ;;  %v471_v41 = vsel %vm4024_vm5, %v469_v34, %v470_v22  ;;  %v477_v42 = vrot.slane %v475_v36, 4  ;;  %v3445_v47 = vpack.c.bf16 %v402_v31, %v402_v31  ;;  %v3446_v48 = vpack.c.bf16 %v403_v32, %v403_v32  ;;  %s3830_s28 = smov 96   ;;  %s3831_s14 = smov 32  }
  0x49   : > { %527 = vst.msk [vmem:[#allocation2 + $0x10] sm:$0xf] %vm523_vm4, %v466_v37  ;;  %524 = vst.msk [vmem:[#allocation2 + $0x4] sm:$0xf] %vm523_vm4, %v461_v38  ;;  %v476_v45 = vsel %vm4024_vm5, %v474_v39, %v475_v36  ;;  %vm1351_vm6 = vcmask 1040384   ;;  %vm1352_vm7 = vcmask 1044484   ;;  %v3447_v25 = vpack.c.bf16 %v4082_v2, %v4082_v2 }
  0x4a   : > { %525 = vst.msk [vmem:[#allocation2 + $0x8] sm:$0x3] %vm373_vm0, %v462_v33  ;;  %531 = vst.msk [vmem:[#allocation2 + $0x20] sm:$0x3] %vm373_vm0, %v472_v35  ;;  %v4053_v49 = vrot.slane %v3443_v43, 6  ;;  %v4055_v50 = vrot.slane %v3444_v44, 6 }
  0x4b   : > { %530 = vst.msk [vmem:[#allocation2 + $0x1c] sm:$0xf] %vm523_vm4, %v471_v41  ;;  %533 = vst.msk [vmem:[#allocation2 + $0x28] sm:$0xf] %vm523_vm4, %v476_v45  ;;  %vm798_vm8 = vcmask 1042432   ;;  %vm799_vm9 = vcmask 1046532  }
  0x4c   : > { %534 = vst.msk [vmem:[#allocation2 + $0x2c] sm:$0x3] %vm373_vm0, %v477_v42  ;;  %v479_v51 = vrot.slane %v478_v46, 4  ;;  %v4058_v52 = vrot.slane %v3446_v48, 6  ;;  %v4060_v53 = vld [vmem:[#allocation2 + $0xc] sm:$0x8]  ;;  %vm4088_vm12 = vmor %vm1351_vm6, %vm1352_vm7 }
  0x4d   : > { %535 = vst.msk [vmem:[#allocation2 + $0x30] sm:$0xc] %vm382_vm1, %v478_v46  ;;  %v1327_v54 = vld [vmem:[#allocation2] sm:$0x8]  ;;  %538 = vst.msk [vmem:[#allocation2 + $0x3c] sm:$0xc] %vm382_vm1, %v4055_v50 }
  0x4e   : > { %v4062_v55 = vld [vmem:[#allocation2] sm:$0xe]  ;;  %v3295_v56 = vrot.slane %v4060_v53, 11  ;;  %v1439_v57 = vshrl.u32 %v4060_v53, 16  ;;  %v1422_v58 = vshrl.u32 %v1327_v54, 16  ;;  %v4070_v60 = vrot.slane %v3445_v47, 6  ;;  %vm4116_vm13 = vmor %vm798_vm8, %vm799_vm9 }
  0x4f   : > { %v4068_v59 = vld [vmem:[#allocation2 + $0x18] sm:$0x8]  ;;  %541 = vst.msk [vmem:[#allocation2 + $0x48] sm:$0xc] %vm382_vm1, %v4058_v52  ;;  %v4074_v61 = vld [vmem:[#allocation2 + $0x14] sm:$0x7]  ;;  %v481_v1 = vsel %vm4024_vm5, %v479_v51, %v4053_v49 }
  0x50   : > { %v3294_v62 = vrot.slane %v1327_v54, 11  ;;  %v3296_v63 = vrot.slane %v4068_v59, 11  ;;  %v3278_v0 = vrot.slane %v4062_v55, 9  ;;  %vm1418_vm10 = vsmask.f32 256  ;;  %s3159_s25 = scalar_lea.sflag [#allocation5], %s3989_s29 }
  0x51   : > { %vm1419_vm11 = vsmask.f32 4368  ;;  %v4084_v3 = vld [vmem:[#allocation2 + $0x10] sm:$0xf]  ;;  %v1366_v5 = vrot.slane %v4074_v61, 7  ;;  %v1181_v6 = vshrl.u32 %v4074_v61, 16 }
  0x52   : > { %v1184_v7 = vshll.u32 %v4074_v61, 16  ;;  %v4095_v8 = vrot.slane %v1422_v58, 11  ;;  %536 = vst.msk [vmem:[#allocation2 + $0x34] sm:$0xf] %vm523_vm4, %v481_v1  ;;  %v1363_v9 = vrot.slane %v4084_v3, 7  ;;  %v810_v12 = vrot.slane %v4084_v3, 5  ;;  %vm4152_vm14 = vmor %vm1418_vm10, %vm1419_vm11 }
  0x53   : > { %v548_v10 = vld [vmem:[#allocation2 + $0x4] sm:$0xf]  ;;  %v4099_v11 = vld [vmem:[#allocation2 + $0x8] sm:$0x7]  ;;  %v4105_v18 = vld [vmem:[#allocation2 + $0x1c] sm:$0xf] }
  0x54   : > { %v1356_v13 = vrot.slane %v548_v10, 7  ;;  %v1359_v14 = vrot.slane %v4099_v11, 7  ;;  %v1158_v16 = vshrl.u32 %v4099_v11, 16  ;;  %v1161_v17 = vshll.u32 %v4099_v11, 16  ;;  %v4109_v21 = vld [vmem:[#allocation2 + $0x20] sm:$0x7] }
  0x55   : > { %v1364_v19 = vsel %vm4088_vm12, %v3295_v56, %v1363_v9  ;;  %v1365_v20 = vrot.slane %v1363_v9, 4  ;;  %v1370_v22 = vrot.slane %v4105_v18, 7  ;;  %v4112_v23 = vld [vmem:[#allocation2 + $0x8] sm:$0x1]  ;;  %v1373_v28 = vrot.slane %v4109_v21, 7  ;;  %p5446_p12 = scmp.ne.s32.totalorder %s5408_s21, 0 }
  0x56   : > { %v1357_v26 = vsel %vm4088_vm12, %v3294_v62, %v1356_v13  ;;  %v1358_v27 = vrot.slane %v1356_v13, 4  ;;  %v803_v29 = vrot.slane %v548_v10, 5  ;;  %v806_v33 = vrot.slane %v4112_v23, 5  ;;  %v1410_v34 = vld [vmem:[#allocation2 + $0x8] sm:$0xf]  ;;  %s3834_s23 = smov [#allocation6]  }
  0x57   : > { %v1367_v30 = vsel %vm4088_vm12, %v1365_v20, %v1366_v5  ;;  %v1371_v31 = vsel %vm4088_vm12, %v3296_v63, %v1370_v22  ;;  %v1372_v32 = vrot.slane %v1370_v22, 4  ;;  %v4134_v39 = vld [vmem:[#allocation2 + $0xc] sm:$0xe]  ;;  %v4138_v42 = vshll.u32 %v548_v10, 16  ;;  %v4142_v44 = vld [vmem:[#allocation2 + $0x14] sm:$0x1] }
  0x58   : > { %v3359_v35 = vcombine.low %v1364_v19, %v1367_v30  ;;  %v1360_v36 = vsel %vm4088_vm12, %v1358_v27, %v1359_v14  ;;  %v804_v37 = vsel %vm4116_vm13, %v3278_v0, %v803_v29  ;;  %v805_v38 = vrot.slane %v803_v29, 4  ;;  %v1411_v62 = vld [vmem:[#allocation2 + $0x14] sm:$0xf] }
  0x59   : > { %v3358_v40 = vcombine.low %v1357_v26, %v1360_v36  ;;  %v1374_v41 = vsel %vm4088_vm12, %v1372_v32, %v1373_v28  ;;  %v4140_v43 = vshrl.u32 %v548_v10, 16  ;;  %v1431_v47 = vshrl.u32 %v1410_v34, 16  ;;  %v4163_v10 = vld [vmem:[#allocation2 + $0x18] sm:$0xe]  ;;  %v4174_v28 = vld [vmem:[#allocation2 + $0x20] sm:$0x1] }
  0x5a   : > { %1799 = vrot.lane.b32.xlu0 %v3359_v35, %s3829_s20  ;;  %v3360_v45 = vcombine.low %v1371_v31, %v1374_v41  ;;  %v807_v46 = vsel %vm4116_vm13, %v805_v38, %v806_v33  ;;  %v1434_v48 = vshll.u32 %v1410_v34, 16  ;;  %v3279_v56 = vrot.slane %v4134_v39, 9  ;;  %v1412_v34 = vld [vmem:[#allocation2 + $0x20] sm:$0xf] }
  0x5b   : > { %1797 = vrot.lane.b32.xlu1 %v3358_v40, %s3829_s20  ;;  %v3326_v51 = vcombine.low %v804_v37, %v807_v46  ;;  %v1426_v54 = vrot.slane %v4140_v43, 7  ;;  %v812_v58 = vrot.slane %v810_v12, 4  ;;  %v1433_v0 = vrot.slane %v1431_v47, 7 }
  0x5c   : > { %v813_v1 = vrot.slane %v4142_v44, 5  ;;  %v4158_v5 = vshll.u32 %v4084_v3, 16  ;;  %v4161_v9 = vshrl.u32 %v4084_v3, 16  ;;  %v811_v19 = vsel %vm4116_vm13, %v3279_v56, %v810_v12 }
  0x5d   : > { %v1427_v13 = vor.u32 %v1426_v54, %v4138_v42  ;;  %v1429_v14 = vrot.slane %v1426_v54, 4  ;;  %v3303_v20 = vrot.slane %v1439_v57, 11  ;;  %v1436_v22 = vor.u32 %v1434_v48, %v1433_v0 }
  0x5e   : > { %1801 = vrot.lane.b32.xlu0 %v3360_v45, %s3829_s20  ;;  %v814_v26 = vsel %vm4116_vm13, %v812_v58, %v813_v1  ;;  %v1443_v3 = vrot.slane %v4161_v9, 7  ;;  %v1448_v27 = vshrl.u32 %v1411_v62, 16  ;;  %v1451_v53 = vshll.u32 %v1411_v62, 16  ;;  %v857_v1 = vld [vmem:[#allocation2 + $0x8] sm:$0x3] }
  0x5f   : > { %1653 = vrot.lane.b32.xlu1 %v3326_v51, %s3829_s20  ;;  %v1428_v12 = vsel %vm4152_vm14, %v4095_v8, %v1427_v13  ;;  %v3327_v29 = vcombine.low %v811_v19, %v814_v26  ;;  %v3280_v57 = vrot.slane %v4163_v10, 9  ;;  %vm865_vm15 = vsmask.f32 2304 }
  0x60   : > { %vm866_vm2 = vsmask.f32 6416  ;;  %v1437_v30 = vsel %vm4152_vm14, %v1429_v14, %v1436_v22  ;;  %v1444_v31 = vor.u32 %v1443_v3, %v4158_v5  ;;  %v1446_v32 = vrot.slane %v1443_v3, 4  ;;  %v1052_v14 = vld [vmem:[#allocation2] sm:$0xc] }
  0x61   : > { %v1450_v33 = vrot.slane %v1448_v27, 7  ;;  %v3366_v35 = vcombine.low %v1428_v12, %v1437_v30  ;;  %v817_v36 = vrot.slane %v4105_v18, 5  ;;  %v820_v37 = vrot.slane %v4174_v28, 5  ;;  %vm4217_vm10 = vmor %vm865_vm15, %vm866_vm2 }
  0x62   : > { %v4187_v8 = vshll.u32 %v4105_v18, 16  ;;  %v1445_v38 = vsel %vm4152_vm14, %v3303_v20, %v1444_v31  ;;  %v4192_v41 = vshrl.u32 %v4105_v18, 16  ;;  %v1456_v45 = vshrl.u32 %v4068_v59, 16 }
  0x63   : > { %v1453_v40 = vor.u32 %v1451_v53, %v1450_v33  ;;  %1837 = vrot.lane.b32.xlu0 %v3366_v35, %s3830_s28  ;;  %1655 = vrot.lane.b32.xlu1 %v3327_v29, %s3829_s20  ;;  %v818_v46 = vsel %vm4116_vm13, %v3280_v57, %v817_v36  ;;  %v819_v47 = vrot.slane %v817_v36, 4  ;;  %v1465_v48 = vshrl.u32 %v1412_v34, 16 }
  0x64   : > { %v1468_v51 = vshll.u32 %v1412_v34, 16  ;;  %vm1140_vm3 = vsmask.f32 1280  ;;  %vm1141_vm6 = vsmask.f32 5392  ;;  %v3304_v18 = vrot.slane %v1456_v45, 11 }
  0x65   : > { %v1454_v54 = vsel %vm4152_vm14, %v1446_v32, %v1453_v40  ;;  %v1460_v56 = vrot.slane %v4192_v41, 7  ;;  %v869_v59 = vshrl.u32 %v4062_v55, 16  ;;  %v821_v62 = vsel %vm4116_vm13, %v819_v47, %v820_v37  ;;  %v549_v45 = vld [vmem:[#allocation2 + $0xc] sm:$0xf]  ;;  %vm4234_vm11 = vmor %vm1140_vm3, %vm1141_vm6 }
  0x66   : > { %v3367_v58 = vcombine.low %v1445_v38, %v1454_v54  ;;  %v1467_v0 = vrot.slane %v1465_v48, 7  ;;  %v872_v13 = vshll.u32 %v4062_v55, 16  ;;  %v3328_v19 = vcombine.low %v818_v46, %v821_v62 }
  0x67   : > { %v1461_v20 = vor.u32 %v1460_v56, %v4187_v8  ;;  %v1463_v22 = vrot.slane %v1460_v56, 4  ;;  %v871_v26 = vrot.slane %v869_v59, 5  ;;  %v877_v12 = vrot.slane %v4140_v43, 5 }
  0x68   : > { %1839 = vrot.lane.b32.xlu0 %v3367_v58, %s3830_s28  ;;  %v1470_v3 = vor.u32 %v1468_v51, %v1467_v0  ;;  %v874_v27 = vrot.slane %v872_v13, 6  ;;  %v878_v29 = vrot.slane %v4138_v42, 6  ;;  %vm571_vm8 = vsmask.f32 3328  ;;  %1657 = vrot.lane.b32.xlu1 %v3328_v19, %s3829_s20 }
  0x69   : > { %vm572_vm9 = vsmask.f32 7440  ;;  %v1462_v55 = vsel %vm4152_vm14, %v3304_v18, %v1461_v20  ;;  %v883_v53 = vshrl.u32 %v857_v1, 16  ;;  %v886_v57 = vshll.u32 %v857_v1, 16 }
  0x6a   : > { %v1144_v30 = vshrl.u32 %v1052_v14, 16  ;;  %v1471_v31 = vsel %vm4152_vm14, %v1463_v22, %v1470_v3  ;;  %v875_v32 = vor.u32 %v874_v27, %v871_v26  ;;  %v879_v33 = vor.u32 %v878_v29, %v877_v12  ;;  %v858_v3 = vld [vmem:[#allocation2 + $0x14] sm:$0x3]  ;;  %v547_v27 = vld [vmem:[#allocation2] sm:$0xf]  ;;  %vm4251_vm15 = vmor %vm571_vm8, %vm572_vm9 }
  0x6b   : > { %v1147_v34 = vshll.u32 %v1052_v14, 16  ;;  %v3368_v35 = vcombine.low %v1462_v55, %v1471_v31  ;;  %v885_v37 = vrot.slane %v883_v53, 5  ;;  %v888_v38 = vrot.slane %v886_v57, 6 }
  0x6c   : > { %v1146_v40 = vrot.slane %v1144_v30, 6  ;;  %v876_v46 = vrot.slane %v875_v32, 4  ;;  %v881_v47 = vrot.slane %v879_v33, 4  ;;  %v1152_v51 = vrot.slane %v4140_v43, 6 }
  0x6d   : > { %v1149_v48 = vrot.slane %v1147_v34, 7  ;;  %1841 = vrot.lane.b32.xlu0 %v3368_v35, %s3830_s28  ;;  %v889_v54 = vor.u32 %v888_v38, %v885_v37  ;;  %v1153_v18 = vrot.slane %v4138_v42, 7  ;;  %v1160_v56 = vrot.slane %v1158_v16, 6 }
  0x6e   : > { %v1163_v59 = vrot.slane %v1161_v17, 7  ;;  %v880_v58 = vsel %vm4217_vm10, %v876_v46, %v879_v33  ;;  %v599_v0 = vshrl.u32 %v549_v45, 16  ;;  %v602_v1 = vshll.u32 %v549_v45, 16 }
  0x6f   : > { %v1150_v62 = vor.u32 %v1149_v48, %v1146_v40  ;;  %v890_v13 = vsel %vm4217_vm10, %v881_v47, %v889_v54  ;;  %v1154_v19 = vor.u32 %v1153_v18, %v1152_v51  ;;  %v610_v11 = vrot.slane %v4158_v5, 5  ;;  %v551_v54 = vld [vmem:[#allocation2 + $0x18] sm:$0xf] }
  0x70   : > { %v1164_v16 = vor.u32 %v1163_v59, %v1160_v56  ;;  %v3334_v17 = vcombine.low %v880_v58, %v890_v13  ;;  %v601_v22 = vrot.slane %v599_v0, 4  ;;  %v604_v26 = vrot.slane %v602_v1, 5 }
  0x71   : > { %v1151_v20 = vrot.slane %v1150_v62, 4  ;;  %v1156_v12 = vrot.slane %v1154_v19, 4  ;;  %v614_v29 = vrot.slane %v4161_v9, 4  ;;  %v618_v55 = vshll.u32 %v4142_v44, 16 }
  0x72   : > { %v892_v53 = vshrl.u32 %v4134_v39, 16  ;;  %1693 = vrot.lane.b32.xlu1 %v3334_v17, %s3830_s28  ;;  %v605_v30 = vor.u32 %v604_v26, %v601_v22  ;;  %v895_v31 = vshll.u32 %v4134_v39, 16  ;;  %v900_v32 = vrot.slane %v4161_v9, 5  ;;  %v1053_v22 = vld [vmem:[#allocation2 + $0xc] sm:$0xc] }
  0x73   : > { %v1155_v57 = vsel %vm4234_vm11, %v1151_v20, %v1154_v19  ;;  %v1165_v33 = vsel %vm4234_vm11, %v1156_v12, %v1164_v16  ;;  %v615_v44 = vor.u32 %v614_v29, %v610_v11  ;;  %v620_v35 = vrot.slane %v618_v55, 5 }
  0x74   : > { %v894_v37 = vrot.slane %v892_v53, 5  ;;  %v3350_v38 = vcombine.low %v1155_v57, %v1165_v33  ;;  %v606_v40 = vrot.slane %v605_v30, 4  ;;  %v897_v45 = vrot.slane %v895_v31, 6 }
  0x75   : > { %v901_v46 = vrot.slane %v4158_v5, 6  ;;  %v616_v39 = vrot.slane %v615_v44, 4  ;;  %v906_v47 = vshrl.u32 %v858_v3, 16  ;;  %v909_v48 = vshll.u32 %v858_v3, 16 }
  0x76   : > { %v575_v51 = vshrl.u32 %v547_v27, 16  ;;  %1757 = vrot.lane.b32.xlu0 %v3350_v38, %s3831_s14  ;;  %v611_v18 = vsel %vm4251_vm15, %v606_v40, %v610_v11  ;;  %v898_v56 = vor.u32 %v897_v45, %v894_v37  ;;  %v578_v58 = vshll.u32 %v547_v27, 16 }
  0x77   : > { %v902_v59 = vor.u32 %v901_v46, %v900_v32  ;;  %v621_v62 = vsel %vm4251_vm15, %v616_v39, %v620_v35  ;;  %v908_v0 = vrot.slane %v906_v47, 5  ;;  %v911_v1 = vrot.slane %v909_v48, 6 }
  0x78   : > { %v577_v13 = vrot.slane %v575_v51, 4  ;;  %v3319_v19 = vcombine.low %v611_v18, %v621_v62  ;;  %v899_v16 = vrot.slane %v898_v56, 4  ;;  %v580_v20 = vrot.slane %v578_v58, 5  ;;  %v3631_v58 = vld [vmem:[%s5387_s2 + $0x40] sm:$0xff]  }
  0x79   : > { %v904_v17 = vrot.slane %v902_v59, 4  ;;  %v912_v26 = vor.u32 %v911_v1, %v908_v0  ;;  %v586_v3 = vrot.slane %v4138_v42, 5  ;;  %v590_v12 = vrot.slane %v4140_v43, 4  ;;  %v3632_v62 = vld [vmem:[%s5387_s2] sm:$0xff]   ;;  %3450 = vmatprep.subr.bf16.mxu0 %v3631_v58 }
  0x7a   : > { %v594_v11 = vshll.u32 %v4112_v23, 16  ;;  %1615 = vrot.lane.b32.xlu1 %v3319_v19, %s3831_s14  ;;  %v903_v27 = vsel %vm4217_vm10, %v899_v16, %v902_v59  ;;  %v581_v29 = vor.u32 %v580_v20, %v577_v13  ;;  %v623_v55 = vshrl.u32 %v551_v54, 16  ;;  %v859_v20 = vld [vmem:[#allocation2 + $0x20] sm:$0x3]  ;;  %3451 = vmatpush3.bf16.msra.mxu0 %v3632_v62  ;;  %v4330_v62 = vld [vmem:[#allocation2 + $0x2c] sm:$0x1] }
  0x7b   : > { %v626_v53 = vshll.u32 %v551_v54, 16  ;;  %v913_v57 = vsel %vm4217_vm10, %v904_v17, %v912_v26  ;;  %v591_v30 = vor.u32 %v590_v12, %v586_v3  ;;  %v634_v32 = vrot.slane %v4187_v8, 5  ;;  %v1054_v26 = vld [vmem:[#allocation2 + $0x18] sm:$0xc]  ;;  %v3634_v12 = vld [vmem:[%s5387_s2 + $0x8] sm:$0xff]  }
  0x7c   : > { %v596_v31 = vrot.slane %v594_v11, 5  ;;  %v3335_v42 = vcombine.low %v903_v27, %v913_v57  ;;  %v582_v33 = vrot.slane %v581_v29, 4  ;;  %v625_v43 = vrot.slane %v623_v55, 4 }
  0x7d   : > { %v628_v44 = vrot.slane %v626_v53, 5  ;;  %v592_v23 = vrot.slane %v591_v30, 4  ;;  %v638_v35 = vrot.slane %v4192_v41, 4  ;;  %v642_v37 = vshll.u32 %v4174_v28, 16 }
  0x7e   : > { %v1167_v38 = vshrl.u32 %v1053_v22, 16  ;;  %1695 = vrot.lane.b32.xlu1 %v3335_v42, %s3830_s28  ;;  %v587_v40 = vsel %vm4251_vm15, %v582_v33, %v586_v3  ;;  %v1170_v46 = vshll.u32 %v1053_v22, 16  ;;  %v1175_v39 = vrot.slane %v4161_v9, 6  ;;  %v3633_v9 = vld [vmem:[%s5387_s2 + $0x48] sm:$0xff]   ;;  %v3646_v42 = vld [vmem:[%s5387_s2 + $0x80] sm:$0xff]  }
  0x7f   : > { %v629_v45 = vor.u32 %v628_v44, %v625_v43  ;;  %v597_v47 = vsel %vm4251_vm15, %v592_v23, %v596_v31  ;;  %v639_v48 = vor.u32 %v638_v35, %v634_v32  ;;  %v644_v51 = vrot.slane %v642_v37, 5  ;;  %3452 = vmatprep.subr.bf16.mxu0 %v3633_v9  ;;  %v3636_v35 = vld [vmem:[%s5387_s2 + $0x10] sm:$0xff]   ;;  %3533 = vmatprep.subr.bf16.mxu1 %v3646_v42  ;;  %v1055_v9 = vld [vmem:[#allocation2 + $0x24] sm:$0xc] }
  0x80   : > { %v1169_v54 = vrot.slane %v1167_v38, 6  ;;  %v3318_v18 = vcombine.low %v587_v40, %v597_v47  ;;  %v1172_v59 = vrot.slane %v1170_v46, 7  ;;  %v1176_v28 = vrot.slane %v4158_v5, 7  ;;  %3453 = vmatpush3.bf16.msra.mxu0 %v3634_v12  ;;  %v3637_v46 = vld [vmem:[%s5387_s2 + $0x58] sm:$0xff]   ;;  %3534 = vmatpush3.bf16.msra.mxu1 %v3646_v42 }
  0x81   : > { %v630_v56 = vrot.slane %v629_v45, 4  ;;  %v640_v0 = vrot.slane %v639_v48, 4  ;;  %v1183_v1 = vrot.slane %v1181_v6, 6  ;;  %v1186_v13 = vrot.slane %v1184_v7, 7 }
  0x82   : > { %v915_v5 = vshrl.u32 %v4163_v10, 16  ;;  %1613 = vrot.lane.b32.xlu0 %v3318_v18, %s3831_s14  ;;  %v1173_v16 = vor.u32 %v1172_v59, %v1169_v54  ;;  %v1177_v17 = vor.u32 %v1176_v28, %v1175_v39  ;;  %v918_v22 = vshll.u32 %v4163_v10, 16  ;;  %v3635_v10 = vld [vmem:[%s5387_s2 + $0x50] sm:$0xff]   ;;  %v3648_v39 = vld [vmem:[%s5387_s2 + $0x88] sm:$0xff]  }
  0x83   : > { %v635_v19 = vsel %vm4251_vm15, %v630_v56, %v634_v32  ;;  %v645_v6 = vsel %vm4251_vm15, %v640_v0, %v644_v51  ;;  %v1187_v3 = vor.u32 %v1186_v13, %v1183_v1  ;;  %v923_v7 = vrot.slane %v4192_v41, 5  ;;  %v553_v32 = vld [vmem:[#allocation2 + $0x24] sm:$0xf]  ;;  %v4325_v18 = vld [vmem:[#allocation2 + $0x28] sm:$0xf]  ;;  %3454 = vmatprep.subr.bf16.mxu0 %v3635_v10  ;;  %v3638_v0 = vld [vmem:[%s5387_s2 + $0x18] sm:$0xff]   ;;  %3535 = vmatprep.subr.bf16.mxu1 %v3648_v39 }
  0x84   : > { %v917_v61 = vrot.slane %v915_v5, 5  ;;  %v3320_v11 = vcombine.low %v635_v19, %v645_v6  ;;  %v1174_v27 = vrot.slane %v1173_v16, 4  ;;  %v1179_v29 = vrot.slane %v1177_v17, 4  ;;  %3455 = vmatpush3.bf16.msra.mxu0 %v3636_v35  ;;  %3536 = vmatpush3.bf16.msra.mxu1 %v3648_v39 }
  0x85   : > { %v920_v55 = vrot.slane %v918_v22, 6  ;;  %v924_v53 = vrot.slane %v4187_v8, 6  ;;  %v929_v57 = vshrl.u32 %v859_v20, 16  ;;  %v932_v30 = vshll.u32 %v859_v20, 16  ;;  %3456 = vmatprep.subr.bf16.mxu0 %v3637_v46 }
  0x86   : > { %v1190_v31 = vshrl.u32 %v1054_v26, 16  ;;  %1617 = vrot.lane.b32.xlu1 %v3320_v11, %s3831_s14  ;;  %v1178_v33 = vsel %vm4234_vm11, %v1174_v27, %v1177_v17  ;;  %v1188_v43 = vsel %vm4234_vm11, %v1179_v29, %v1187_v3  ;;  %v1193_v23 = vshll.u32 %v1054_v26, 16  ;;  %v3639_v3 = vld [vmem:[%s5387_s2 + $0x60] sm:$0xff]   ;;  %v4349_v11 = vld [vmem:[#allocation2 + $0x2c] sm:$0x7] }
  0x87   : > { %v921_v44 = vor.u32 %v920_v55, %v917_v61  ;;  %v3351_v37 = vcombine.low %v1178_v33, %v1188_v43  ;;  %v925_v38 = vor.u32 %v924_v53, %v923_v7  ;;  %v931_v40 = vrot.slane %v929_v57, 5 }
  0x88   : > { %v934_v45 = vrot.slane %v932_v30, 6  ;;  %v1192_v48 = vrot.slane %v1190_v31, 6  ;;  %v1195_v51 = vrot.slane %v1193_v23, 7  ;;  %v1198_v54 = vrot.slane %v4192_v41, 6  ;;  %3457 = vmatpush3.bf16.msra.mxu0 %v3638_v0  ;;  %v3641_v23 = vld [vmem:[%s5387_s2 + $0x68] sm:$0xff]  }
  0x89   : > { %v922_v47 = vrot.slane %v921_v44, 4  ;;  %1759 = vrot.lane.b32.xlu0 %v3351_v37, %s3831_s14  ;;  %v927_v56 = vrot.slane %v925_v38, 4  ;;  %v1199_v28 = vrot.slane %v4187_v8, 7  ;;  %v1204_v58 = vshrl.u32 %v4109_v21, 16  ;;  %3458 = vmatprep.subr.bf16.mxu0 %v3639_v3 }
  0x8a   : > { %v935_v59 = vor.u32 %v934_v45, %v931_v40  ;;  %v1196_v1 = vor.u32 %v1195_v51, %v1192_v48  ;;  %v1207_v13 = vshll.u32 %v4109_v21, 16  ;;  %v647_v5 = vshrl.u32 %v553_v32, 16  ;;  %v769_v45 = vld [vmem:[#allocation2 + $0x24] sm:$0xe] }
  0x8b   : > { %v926_v41 = vsel %vm4217_vm10, %v922_v47, %v925_v38  ;;  %v1200_v19 = vor.u32 %v1199_v28, %v1198_v54  ;;  %v1206_v16 = vrot.slane %v1204_v58, 6  ;;  %v650_v17 = vshll.u32 %v553_v32, 16  ;;  %v3640_v32 = vld [vmem:[%s5387_s2 + $0x20] sm:$0xff]   ;;  %v3642_v58 = vld [vmem:[%s5387_s2 + $0x28] sm:$0xff]  }
  0x8c   : > { %v936_v8 = vsel %vm4217_vm10, %v927_v56, %v935_v59  ;;  %v1197_v22 = vrot.slane %v1196_v1, 4  ;;  %v1209_v26 = vrot.slane %v1207_v13, 7  ;;  %v649_v6 = vrot.slane %v647_v5, 4  ;;  %v1330_v28 = vld [vmem:[#allocation2 + $0x24] sm:$0x8]  ;;  %3459 = vmatpush3.bf16.msra.mxu0 %v3640_v32  ;;  %v3643_v13 = vld [vmem:[%s5387_s2 + $0x70] sm:$0xff]  }
  0x8d   : > { %v3336_v20 = vcombine.low %v926_v41, %v936_v8  ;;  %v1202_v61 = vrot.slane %v1200_v19, 4  ;;  %v652_v21 = vrot.slane %v650_v17, 5  ;;  %v4344_v7 = vshll.u32 %v4325_v18, 16  ;;  %3460 = vmatprep.subr.bf16.mxu0 %v3641_v23 }
  0x8e   : > { %v4347_v12 = vshrl.u32 %v4325_v18, 16  ;;  %v1201_v27 = vsel %vm4234_vm11, %v1197_v22, %v1200_v19  ;;  %v1210_v29 = vor.u32 %v1209_v26, %v1206_v16  ;;  %v666_v55 = vshll.u32 %v4330_v62, 16 }
  0x8f   : > { %1697 = vrot.lane.b32.xlu1 %v3336_v20, %s3830_s28  ;;  %v1213_v10 = vshrl.u32 %v1055_v9, 16  ;;  %v653_v53 = vor.u32 %v652_v21, %v649_v6  ;;  %v658_v57 = vrot.slane %v4344_v7, 5  ;;  %v1216_v31 = vshll.u32 %v1055_v9, 16  ;;  %v860_v21 = vld [vmem:[#allocation2 + $0x2c] sm:$0x3] }
  0x90   : > { %v662_v30 = vrot.slane %v4347_v12, 4  ;;  %v1211_v42 = vsel %vm4234_vm11, %v1202_v61, %v1210_v29  ;;  %v668_v33 = vrot.slane %v666_v55, 5  ;;  %v1221_v44 = vrot.slane %v4347_v12, 6  ;;  %3461 = vmatpush3.bf16.msra.mxu0 %v3642_v58  ;;  %v4414_v58 = vld [vmem:[#allocation2 + $0x34] sm:$0xf] }
  0x91   : > { %v1215_v43 = vrot.slane %v1213_v10, 6  ;;  %v3352_v35 = vcombine.low %v1201_v27, %v1211_v42  ;;  %v654_v37 = vrot.slane %v653_v53, 4  ;;  %v1218_v40 = vrot.slane %v1216_v31, 7  ;;  %v3644_v27 = vld [vmem:[%s5387_s2 + $0x30] sm:$0xff]   ;;  %3462 = vmatprep.subr.bf16.mxu0 %v3643_v13 }
  0x92   : > { %v663_v38 = vor.u32 %v662_v30, %v658_v57  ;;  %v1222_v46 = vrot.slane %v4344_v7, 7  ;;  %v1227_v39 = vshrl.u32 %v4349_v11, 16  ;;  %v1230_v47 = vshll.u32 %v4349_v11, 16 }
  0x93   : > { %v3281_v48 = vrot.slane %v769_v45, 9  ;;  %1761 = vrot.lane.b32.xlu0 %v3352_v35, %s3831_s14  ;;  %v659_v51 = vsel %vm4251_vm15, %v654_v37, %v658_v57  ;;  %v1219_v56 = vor.u32 %v1218_v40, %v1215_v43  ;;  %v824_v59 = vrot.slane %v4325_v18, 5  ;;  %v3645_v57 = vld [vmem:[%s5387_s2 + $0x78] sm:$0xff]   ;;  %v4406_v37 = vld [vmem:[#allocation2 + $0x2c] sm:$0xf] }
  0x94   : > { %v664_v54 = vrot.slane %v663_v38, 4  ;;  %v1223_v9 = vor.u32 %v1222_v46, %v1221_v44  ;;  %v1229_v0 = vrot.slane %v1227_v39, 6  ;;  %v1232_v41 = vrot.slane %v1230_v47, 7  ;;  %3463 = vmatpush3.bf16.msra.mxu0 %v3644_v27  ;;  %v770_v27 = vld [vmem:[#allocation2 + $0x30] sm:$0xe] }
  0x95   : > { %v827_v1 = vrot.slane %v4330_v62, 5  ;;  %v1220_v8 = vrot.slane %v1219_v56, 4  ;;  %v825_v19 = vsel %vm4116_vm13, %v3281_v48, %v824_v59  ;;  %v826_v16 = vrot.slane %v824_v59, 4  ;;  %3464 = vmatprep.subr.bf16.mxu0 %v3645_v57  ;;  %v1331_v57 = vld [vmem:[#allocation2 + $0x30] sm:$0x8] }
  0x96   : > { %v669_v5 = vsel %vm4251_vm15, %v664_v54, %v668_v33  ;;  %v1225_v20 = vrot.slane %v1223_v9, 4  ;;  %v1233_v22 = vor.u32 %v1232_v41, %v1229_v0  ;;  %v3297_v26 = vrot.slane %v1330_v28, 11 }
  0x97   : > { %v3321_v17 = vcombine.low %v659_v51, %v669_v5  ;;  %v1224_v62 = vsel %vm4234_vm11, %v1220_v8, %v1223_v9  ;;  %v828_v6 = vsel %vm4116_vm13, %v826_v16, %v827_v1  ;;  %v1377_v3 = vrot.slane %v4325_v18, 7  ;;  %v555_v51 = vld [vmem:[#allocation2 + $0x30] sm:$0xf] }
  0x98   : > { %v1380_v61 = vrot.slane %v4349_v11, 7  ;;  %v1234_v29 = vsel %vm4234_vm11, %v1225_v20, %v1233_v22  ;;  %v3329_v55 = vcombine.low %v825_v19, %v828_v6  ;;  %v938_v10 = vshrl.u32 %v769_v45, 16  ;;  %v1056_v1 = vld [vmem:[#allocation2 + $0x30] sm:$0xc] }
  0x99   : > { %1619 = vrot.lane.b32.xlu1 %v3321_v17, %s3831_s14  ;;  %v941_v53 = vshll.u32 %v769_v45, 16  ;;  %v3353_v11 = vcombine.low %v1224_v62, %v1234_v29  ;;  %v1378_v30 = vsel %vm4088_vm12, %v3297_v26, %v1377_v3  ;;  %v1379_v31 = vrot.slane %v1377_v3, 4  ;;  %v3647_v45 = vld [vmem:[%s5387_s2 + $0x38] sm:$0xff]  }
  0x9a   : > { %v946_v32 = vrot.slane %v4347_v12, 5  ;;  %v940_v42 = vrot.slane %v938_v10, 5  ;;  %v947_v43 = vrot.slane %v4344_v7, 6  ;;  %v952_v44 = vshrl.u32 %v860_v21, 16  ;;  %3465 = vmatpush3.bf16.msra.mxu0 %v3647_v45 }
  0x9b   : > { %v943_v33 = vrot.slane %v941_v53, 6  ;;  %1763 = vrot.lane.b32.xlu0 %v3353_v11, %s3831_s14  ;;  %v1381_v23 = vsel %vm4088_vm12, %v1379_v31, %v1380_v61  ;;  %v955_v35 = vshll.u32 %v860_v21, 16  ;;  %v1473_v38 = vshrl.u32 %v1330_v28, 16 }
  0x9c   : > { %v1477_v40 = vrot.slane %v4347_v12, 7  ;;  %v3361_v46 = vcombine.low %v1378_v30, %v1381_v23  ;;  %v948_v47 = vor.u32 %v947_v43, %v946_v32  ;;  %v954_v48 = vrot.slane %v952_v44, 5 }
  0x9d   : > { %1659 = vrot.lane.b32.xlu1 %v3329_v55, %s3829_s20  ;;  %v944_v39 = vor.u32 %v943_v33, %v940_v42  ;;  %v957_v54 = vrot.slane %v955_v35, 6  ;;  %v3305_v56 = vrot.slane %v1473_v38, 11  ;;  %v1482_v0 = vshrl.u32 %v4406_v37, 16 }
  0x9e   : > { %v1478_v59 = vor.u32 %v1477_v40, %v4344_v7  ;;  %v1480_v28 = vrot.slane %v1477_v40, 4  ;;  %v950_v9 = vrot.slane %v948_v47, 4  ;;  %v1485_v41 = vshll.u32 %v4406_v37, 16 }
  0x9f   : > { %v945_v12 = vrot.slane %v944_v39, 4  ;;  %1803 = vrot.lane.b32.xlu0 %v3361_v46, %s3829_s20  ;;  %v958_v13 = vor.u32 %v957_v54, %v954_v48  ;;  %v482_v8 = vrot.slane %v4053_v49, 4  ;;  %v671_v19 = vshrl.u32 %v555_v51, 16 }
  0xa0   : > { %v1479_v5 = vsel %vm4152_vm14, %v3305_v56, %v1478_v59  ;;  %v1484_v16 = vrot.slane %v1482_v0, 7  ;;  %v674_v17 = vshll.u32 %v555_v51, 16  ;;  %v4425_v20 = vshll.u32 %v4414_v58, 16 }
  0xa1   : > { %v949_v7 = vsel %vm4217_vm10, %v945_v12, %v948_v47  ;;  %v959_v22 = vsel %vm4217_vm10, %v950_v9, %v958_v13  ;;  %537 = vst.msk [vmem:[#allocation2 + $0x38] sm:$0x3] %vm373_vm0, %v482_v8  ;;  %v673_v26 = vrot.slane %v671_v19, 4  ;;  %v4431_v62 = vshrl.u32 %v4414_v58, 16 }
  0xa2   : > { %v1236_v49 = vshrl.u32 %v1056_v1, 16  ;;  %v3337_v6 = vcombine.low %v949_v7, %v959_v22  ;;  %v1487_v3 = vor.u32 %v1485_v41, %v1484_v16  ;;  %v676_v61 = vrot.slane %v674_v17, 5 }
  0xa3   : > { %v682_v21 = vrot.slane %v4425_v20, 5  ;;  %v686_v29 = vrot.slane %v4431_v62, 4  ;;  %v1239_v10 = vshll.u32 %v1056_v1, 16  ;;  %v1244_v53 = vrot.slane %v4431_v62, 6 }
  0xa4   : > { %v1238_v55 = vrot.slane %v1236_v49, 6  ;;  %1699 = vrot.lane.b32.xlu1 %v3337_v6, %s3830_s28  ;;  %v1488_v11 = vsel %vm4152_vm14, %v1480_v28, %v1487_v3  ;;  %v677_v30 = vor.u32 %v676_v61, %v673_v26  ;;  %v1245_v31 = vrot.slane %v4425_v20, 7 }
  0xa5   : > { %v3282_v32 = vrot.slane %v770_v27, 9  ;;  %v3369_v42 = vcombine.low %v1479_v5, %v1488_v11  ;;  %v687_v33 = vor.u32 %v686_v29, %v682_v21  ;;  %v1241_v43 = vrot.slane %v1239_v10, 7 }
  0xa6   : > { %v831_v44 = vrot.slane %v4414_v58, 5  ;;  %v678_v23 = vrot.slane %v677_v30, 4  ;;  %v1246_v35 = vor.u32 %v1245_v31, %v1244_v53  ;;  %v3298_v38 = vrot.slane %v1331_v57, 11 }
  0xa7   : > { %v1384_v40 = vrot.slane %v4414_v58, 7  ;;  %1843 = vrot.lane.b32.xlu0 %v3369_v42, %s3830_s28  ;;  %v688_v45 = vrot.slane %v687_v33, 4  ;;  %v1242_v46 = vor.u32 %v1241_v43, %v1238_v55  ;;  %v961_v5 = vshrl.u32 %v770_v27, 16 }
  0xa8   : > { %v832_v39 = vsel %vm4116_vm13, %v3282_v32, %v831_v44  ;;  %v833_v47 = vrot.slane %v831_v44, 4  ;;  %v567_v48 = vld [vmem:[#allocation2 + $0x38] sm:$0x1]  ;;  %v683_v51 = vsel %vm4251_vm15, %v678_v23, %v682_v21  ;;  %v1248_v56 = vrot.slane %v1246_v35, 4 }
  0xa9   : > { %v1136_v54 = vld [vmem:[#allocation2 + $0x38] sm:$0x7]  ;;  %v4449_v59 = vsel %vm4088_vm12, %v3298_v38, %v1384_v40  ;;  %v1386_v28 = vrot.slane %v1384_v40, 4  ;;  %v690_v12 = vshll.u32 %v567_v48, 16  ;;  %v1243_v9 = vrot.slane %v1242_v46, 4 }
  0xaa   : > { %v1250_v0 = vshrl.u32 %v1136_v54, 16  ;;  %v1253_v41 = vshll.u32 %v1136_v54, 16  ;;  %v834_v1 = vrot.slane %v567_v48, 5  ;;  %v1387_v13 = vrot.slane %v1136_v54, 7  ;;  %v4457_v49 = vld [vmem:[#allocation2 + $0x38] sm:$0x3] }
  0xab   : > { %v964_v8 = vshll.u32 %v770_v27, 16  ;;  %v692_v19 = vrot.slane %v690_v12, 5  ;;  %v1247_v7 = vsel %vm4234_vm11, %v1243_v9, %v1246_v35  ;;  %5425 = vst [vmem:[#allocation9_spill] sm:$0xff] %v4457_v49  ;;  %v963_v6 = vrot.slane %v961_v5, 5  ;;  %v4464_v30 = vld [vmem:[#allocation2 + $0x38] sm:$0xf] }
  0xac   : > { %v1252_v16 = vrot.slane %v1250_v0, 6  ;;  %v1255_v17 = vrot.slane %v1253_v41, 7  ;;  %v835_v22 = vsel %vm4116_vm13, %v833_v47, %v834_v1  ;;  %v1388_v26 = vsel %vm4088_vm12, %v1386_v28, %v1387_v13  ;;  %v4479_v54 = vld [vmem:[#allocation2 + $0x3c] sm:$0xc] }
  0xad   : > { %v966_v3 = vrot.slane %v964_v8, 6  ;;  %v693_v61 = vsel %vm4251_vm15, %v688_v45, %v692_v19  ;;  %v3330_v27 = vcombine.low %v832_v39, %v835_v22  ;;  %v3362_v29 = vcombine.low %v4449_v59, %v1388_v26  ;;  %v4473_v39 = vld [vmem:[#allocation2 + $0x3c] sm:$0xf]  ;;  %5427 = vst [vmem:[#allocation11_spill] sm:$0xff] %v4479_v54 }
  0xae   : > { %v1256_v21 = vor.u32 %v1255_v17, %v1252_v16  ;;  %v3322_v55 = vcombine.low %v683_v51, %v693_v61  ;;  %v969_v53 = vrot.slane %v4431_v62, 5  ;;  %v970_v11 = vrot.slane %v4425_v20, 6  ;;  %5426 = vst [vmem:[#allocation10_spill] sm:$0xff] %v4473_v39  ;;  %v4489_v41 = vld [vmem:[#allocation2 + $0x3c] sm:$0x8] }
  0xaf   : > { %v967_v10 = vor.u32 %v966_v3, %v963_v6  ;;  %v975_v32 = vshrl.u32 %v4457_v49, 16  ;;  %v978_v42 = vshll.u32 %v4457_v49, 16  ;;  %v1490_v33 = vshrl.u32 %v1331_v57, 16  ;;  %v4497_v8 = vld [vmem:[#allocation2 + $0x3c] sm:$0xe] }
  0xb0   : > { %v1257_v31 = vsel %vm4234_vm11, %v1248_v56, %v1256_v21  ;;  %1621 = vrot.lane.b32.xlu1 %v3322_v55, %s3831_s14  ;;  %v971_v23 = vor.u32 %v970_v11, %v969_v53  ;;  %v1494_v35 = vrot.slane %v4431_v62, 7  ;;  %v1499_v46 = vshrl.u32 %v4464_v30, 16  ;;  %v4507_v3 = vld [vmem:[#allocation2 + $0x48] sm:$0xf] }
  0xb1   : > { %v3354_v43 = vcombine.low %v1247_v7, %v1257_v31  ;;  %v968_v44 = vrot.slane %v967_v10, 4  ;;  %v977_v38 = vrot.slane %v975_v32, 5  ;;  %v980_v40 = vrot.slane %v978_v42, 6  ;;  %5428 = vst [vmem:[#allocation12_spill] sm:$0xff] %v4507_v3  ;;  %v4517_v31 = vld [vmem:[#allocation2 + $0x48] sm:$0xc] }
  0xb2   : > { %v3306_v45 = vrot.slane %v1490_v33, 11  ;;  %v973_v57 = vrot.slane %v971_v23, 4  ;;  %v1495_v48 = vor.u32 %v1494_v35, %v4425_v20  ;;  %v1497_v51 = vrot.slane %v1494_v35, 4 }
  0xb3   : > { %1765 = vrot.lane.b32.xlu0 %v3354_v43, %s3831_s14  ;;  %v972_v47 = vsel %vm4217_vm10, %v968_v44, %v971_v23  ;;  %v981_v56 = vor.u32 %v980_v40, %v977_v38  ;;  %v1501_v62 = vrot.slane %v1499_v46, 7  ;;  %v1502_v59 = vshll.u32 %v4464_v30, 16  ;;  %v4522_v44 = vld [vmem:[%s3993_s19 + $0x70] sm:$0xff]  ;;  %v4525_v23 = vld [vmem:[%s3993_s19 + $0x78] sm:$0xff] }
  0xb4   : > { %v484_v28 = vrot.slane %v4055_v50, 4  ;;  %1661 = vrot.lane.b32.xlu1 %v3330_v27, %s3829_s20  ;;  %v1496_v12 = vsel %vm4152_vm14, %v3306_v45, %v1495_v48  ;;  %v487_v9 = vrot.slane %v4070_v60, 4  ;;  %v695_v0 = vshrl.u32 %v4473_v39, 16 }
  0xb5   : > { %v698_v20 = vshll.u32 %v4473_v39, 16  ;;  %v982_v1 = vsel %vm4217_vm10, %v973_v57, %v981_v56  ;;  %v1504_v13 = vor.u32 %v1502_v59, %v1501_v62  ;;  %v1259_v5 = vshrl.u32 %v4479_v54, 16 }
  0xb6   : > { %v486_v50 = vsel %vm4024_vm5, %v484_v28, %v4070_v60  ;;  %v3338_v19 = vcombine.low %v972_v47, %v982_v1  ;;  %540 = vst.msk [vmem:[#allocation2 + $0x44] sm:$0x3] %vm373_vm0, %v487_v9  ;;  %v697_v7 = vrot.slane %v695_v0, 4  ;;  %v1262_v17 = vshll.u32 %v4479_v54, 16 }
  0xb7   : > { %1805 = vrot.lane.b32.xlu0 %v3362_v29, %s3829_s20  ;;  %539 = vst.msk [vmem:[#allocation2 + $0x40] sm:$0xf] %vm523_vm4, %v486_v50  ;;  %v700_v16 = vrot.slane %v698_v20, 5  ;;  %v1505_v22 = vsel %vm4152_vm14, %v1497_v51, %v1504_v13  ;;  %v1261_v26 = vrot.slane %v1259_v5, 6  ;;  %v3283_v60 = vrot.slane %v4497_v8, 9 }
  0xb8   : > { %v3299_v6 = vrot.slane %v4489_v41, 11  ;;  %1701 = vrot.lane.b32.xlu1 %v3338_v19, %s3830_s28  ;;  %v3370_v61 = vcombine.low %v1496_v12, %v1505_v22  ;;  %v1264_v27 = vrot.slane %v1262_v17, 7  ;;  %v984_v29 = vshrl.u32 %v4497_v8, 16 }
  0xb9   : > { %v701_v21 = vor.u32 %v700_v16, %v697_v7  ;;  %v987_v55 = vshll.u32 %v4497_v8, 16  ;;  %v1507_v10 = vshrl.u32 %v4489_v41, 16  ;;  %v489_v53 = vrot.slane %v4058_v52, 4 }
  0xba   : > { %v490_v11 = vrot.slane %v3447_v25, 6  ;;  %v1265_v42 = vor.u32 %v1264_v27, %v1261_v26  ;;  %v986_v33 = vrot.slane %v984_v29, 5  ;;  %v719_v43 = vshrl.u32 %v4507_v3, 16 }
  0xbb   : > { %1845 = vrot.lane.b32.xlu0 %v3370_v61, %s3830_s28  ;;  %v702_v32 = vrot.slane %v701_v21, 4  ;;  %v989_v35 = vrot.slane %v987_v55, 6  ;;  %v4527_v38 = vrot.slane %v1507_v10, 11  ;;  %v722_v45 = vshll.u32 %v4507_v3, 16 }
  0xbc   : > { %v491_v52 = vsel %vm4024_vm5, %v489_v53, %v490_v11  ;;  %v492_v2 = vrot.slane %v490_v11, 4  ;;  %v1266_v25 = vrot.slane %v1265_v42, 4  ;;  %v4532_v40 = vrot.slane %v719_v43, 4 }
  0xbd   : > { %542 = vst.msk [vmem:[#allocation2 + $0x4c] sm:$0xf] %vm523_vm4, %v491_v52  ;;  %v1282_v46 = vshrl.u32 %v4517_v31, 16  ;;  %v568_v57 = vld [vmem:[#allocation2 + $0x44] sm:$0x1]  ;;  %v990_v51 = vor.u32 %v989_v35, %v986_v33  ;;  %v3448_v56 = vpack.c.bf16 %v4522_v44, %v4522_v44  ;;  %v3449_v62 = vpack.c.bf16 %v4525_v23, %v4525_v23 }
  0xbe   : > { %v4536_v47 = vld [vmem:[#allocation2 + $0x40] sm:$0xf]  ;;  %v1137_v48 = vld [vmem:[#allocation2 + $0x44] sm:$0x7]  ;;  %543 = vst.msk [vmem:[#allocation2 + $0x50] sm:$0x3] %vm373_vm0, %v492_v2 }
  0xbf   : > { %v704_v59 = vshll.u32 %v4536_v47, 16  ;;  %v708_v28 = vshrl.u32 %v4536_v47, 16  ;;  %v714_v12 = vshll.u32 %v568_v57, 16  ;;  %v1273_v9 = vshrl.u32 %v1137_v48, 16  ;;  %v4553_v53 = vld [vmem:[#allocation2 + $0x44] sm:$0x3] }
  0xc0   : > { %v1276_v0 = vshll.u32 %v1137_v48, 16  ;;  %v838_v20 = vrot.slane %v4536_v47, 5  ;;  %v841_v41 = vrot.slane %v568_v57, 5  ;;  %v1391_v1 = vrot.slane %v4536_v47, 7  ;;  %5429 = vst [vmem:[#allocation13_spill] sm:$0xff] %v4553_v53 }
  0xc1   : > { %v706_v13 = vrot.slane %v704_v59, 5  ;;  %v710_v50 = vrot.slane %v708_v28, 4  ;;  %v716_v5 = vrot.slane %v714_v12, 5  ;;  %v1267_v8 = vrot.slane %v708_v28, 6  ;;  %v4561_v52 = vld [vmem:[#allocation2 + $0x44] sm:$0xf] }
  0xc2   : > { %v1268_v19 = vrot.slane %v704_v59, 7  ;;  %v1275_v7 = vrot.slane %v1273_v9, 6  ;;  %v1278_v16 = vrot.slane %v1276_v0, 7  ;;  %v839_v17 = vsel %vm4116_vm13, %v3283_v60, %v838_v20  ;;  %v3707_v23 = vld [vmem:[#allocation2 + $0x8] sm:$0x3] }
  0xc3   : > { %v707_v22 = vsel %vm4251_vm15, %v702_v32, %v706_v13  ;;  %v711_v26 = vor.u32 %v710_v50, %v706_v13  ;;  %v840_v61 = vrot.slane %v838_v20, 4  ;;  %v1392_v21 = vsel %vm4088_vm12, %v3299_v6, %v1391_v1 }
  0xc4   : > { %v1269_v27 = vor.u32 %v1268_v19, %v1267_v8  ;;  %v1279_v29 = vor.u32 %v1278_v16, %v1275_v7  ;;  %v1393_v55 = vrot.slane %v1391_v1, 4  ;;  %v1394_v10 = vrot.slane %v1137_v48, 7  ;;  %v4570_v50 = vld [vmem:[#allocation2 + $0x4c] sm:$0xf] }
  0xc5   : > { %v712_v11 = vrot.slane %v711_v26, 4  ;;  %v842_v42 = vsel %vm4116_vm13, %v840_v61, %v841_v41  ;;  %v991_v33 = vrot.slane %v990_v51, 4  ;;  %v992_v60 = vrot.slane %v708_v28, 5  ;;  %v569_v16 = vld [vmem:[#allocation2 + $0x50] sm:$0x1] }
  0xc6   : > { %v1270_v32 = vsel %vm4234_vm11, %v1266_v25, %v1269_v27  ;;  %v1271_v43 = vrot.slane %v1269_v27, 4  ;;  %v3331_v35 = vcombine.low %v839_v17, %v842_v42  ;;  %v1395_v6 = vsel %vm4088_vm12, %v1393_v55, %v1394_v10 }
  0xc7   : > { %v717_v2 = vsel %vm4251_vm15, %v712_v11, %v716_v5  ;;  %v3363_v57 = vcombine.low %v1392_v21, %v1395_v6  ;;  %v993_v48 = vrot.slane %v704_v59, 6  ;;  %v998_v12 = vshrl.u32 %v4553_v53, 16 }
  0xc8   : > { %v3323_v9 = vcombine.low %v707_v22, %v717_v2  ;;  %v1280_v51 = vsel %vm4234_vm11, %v1271_v43, %v1279_v29  ;;  %v1001_v25 = vshll.u32 %v4553_v53, 16  ;;  %v1511_v0 = vrot.slane %v708_v28, 7 }
  0xc9   : > { %v3355_v20 = vcombine.low %v1270_v32, %v1280_v51  ;;  %v994_v41 = vor.u32 %v993_v48, %v992_v60  ;;  %v1000_v1 = vrot.slane %v998_v12, 5  ;;  %v1516_v13 = vshrl.u32 %v4561_v52, 16 }
  0xca   : > { %1623 = vrot.lane.b32.xlu1 %v3323_v9, %s3831_s14  ;;  %v1003_v5 = vrot.slane %v1001_v25, 6  ;;  %v1512_v8 = vor.u32 %v1511_v0, %v704_v59  ;;  %v1514_v19 = vrot.slane %v1511_v0, 4  ;;  %v1519_v7 = vshll.u32 %v4561_v52, 16  ;;  %v772_v0 = vld [vmem:[#allocation2 + $0x48] sm:$0xe] }
  0xcb   : > { %1767 = vrot.lane.b32.xlu0 %v3355_v20, %s3831_s14  ;;  %v995_v28 = vsel %vm4217_vm10, %v991_v33, %v994_v41  ;;  %v996_v17 = vrot.slane %v994_v41, 4  ;;  %v1518_v22 = vrot.slane %v1516_v13, 7  ;;  %v724_v26 = vrot.slane %v722_v45, 5  ;;  %v1138_v33 = vld [vmem:[#allocation2 + $0x50] sm:$0x7] }
  0xcc   : > { %v1004_v61 = vor.u32 %v1003_v5, %v1000_v1  ;;  %v1513_v21 = vsel %vm4152_vm14, %v4527_v38, %v1512_v8  ;;  %v4583_v59 = vshll.u32 %v4570_v50, 16  ;;  %v4586_v27 = vshrl.u32 %v4570_v50, 16  ;;  %v1333_v13 = vld [vmem:[#allocation2 + $0x48] sm:$0x8]  ;;  %v4606_v5 = vpop.permute.xlu0 %1799 }
  0xcd   : > { %v1521_v29 = vor.u32 %v1519_v7, %v1518_v22  ;;  %v725_v55 = vor.u32 %v724_v26, %v4532_v40  ;;  %v738_v10 = vshll.u32 %v569_v16, 16  ;;  %v1284_v11 = vrot.slane %v1282_v46, 6 }
  0xce   : > { %1663 = vrot.lane.b32.xlu1 %v3331_v35, %s3829_s20  ;;  %v1005_v45 = vsel %vm4217_vm10, %v996_v17, %v1004_v61  ;;  %v730_v38 = vrot.slane %v4583_v59, 5  ;;  %v734_v42 = vrot.slane %v4586_v27, 4  ;;  %v1285_v60 = vshll.u32 %v4517_v31, 16 }
  0xcf   : > { %1807 = vrot.lane.b32.xlu0 %v3363_v57, %s3829_s20  ;;  %v3339_v32 = vcombine.low %v995_v28, %v1005_v45  ;;  %v1522_v40 = vsel %vm4152_vm14, %v1514_v19, %v1521_v29  ;;  %v726_v43 = vrot.slane %v725_v55, 4  ;;  %v740_v46 = vrot.slane %v738_v10, 5 }
  0xd0   : > { %v3371_v6 = vcombine.low %v1513_v21, %v1522_v40  ;;  %v735_v35 = vor.u32 %v734_v42, %v730_v38  ;;  %v1287_v2 = vrot.slane %v1285_v60, 7  ;;  %v1290_v48 = vrot.slane %v4586_v27, 6  ;;  %v4618_v42 = vld [vmem:[#allocation2 + $0x50] sm:$0x3] }
  0xd1   : > { %v731_v12 = vsel %vm4251_vm15, %v726_v43, %v730_v38  ;;  %v1291_v9 = vrot.slane %v4583_v59, 7  ;;  %v1296_v51 = vshrl.u32 %v1138_v33, 16  ;;  %v1299_v25 = vshll.u32 %v1138_v33, 16 }
  0xd2   : > { %1703 = vrot.lane.b32.xlu1 %v3339_v32, %s3830_s28  ;;  %v736_v57 = vrot.slane %v735_v35, 4  ;;  %v1288_v20 = vor.u32 %v1287_v2, %v1284_v11  ;;  %v3284_v41 = vrot.slane %v772_v0, 9  ;;  %v845_v1 = vrot.slane %v4570_v50, 5 }
  0xd3   : > { %1847 = vrot.lane.b32.xlu0 %v3371_v6, %s3830_s28  ;;  %v1292_v8 = vor.u32 %v1291_v9, %v1290_v48  ;;  %v1298_v19 = vrot.slane %v1296_v51, 6  ;;  %v1301_v7 = vrot.slane %v1299_v25, 7  ;;  %v848_v28 = vrot.slane %v569_v16, 5 }
  0xd4   : > { %v741_v17 = vsel %vm4251_vm15, %v736_v57, %v740_v46  ;;  %v1289_v22 = vrot.slane %v1288_v20, 4  ;;  %v846_v26 = vsel %vm4116_vm13, %v3284_v41, %v845_v1  ;;  %v847_v61 = vrot.slane %v845_v1, 4  ;;  %v4623_v46 = vpop.permute.xlu1 %1797  ;;  %v4636_v20 = vld [vmem:[#allocation2 + $0x50] sm:$0xf] }
  0xd5   : > { %v3324_v21 = vcombine.low %v731_v12, %v741_v17  ;;  %v1294_v29 = vrot.slane %v1292_v8, 4  ;;  %v1302_v55 = vor.u32 %v1301_v7, %v1298_v19  ;;  %v3300_v10 = vrot.slane %v1333_v13, 11  ;;  %5430 = vst [vmem:[#allocation14_spill] sm:$0xff] %v4636_v20 }
  0xd6   : > { %v1293_v11 = vsel %vm4234_vm11, %v1289_v22, %v1292_v8  ;;  %v849_v45 = vsel %vm4116_vm13, %v847_v61, %v848_v28  ;;  %v1398_v16 = vrot.slane %v4570_v50, 7  ;;  %v1401_v38 = vrot.slane %v1138_v33, 7  ;;  %v4628_v33 = vpop.permute.xlu0 %1801 }
  0xd7   : > { %1625 = vrot.lane.b32.xlu1 %v3324_v21, %s3831_s14  ;;  %v1303_v60 = vsel %vm4234_vm11, %v1294_v29, %v1302_v55  ;;  %v3332_v32 = vcombine.low %v846_v26, %v849_v45  ;;  %v1007_v40 = vshrl.u32 %v772_v0, 16  ;;  %v1010_v43 = vshll.u32 %v772_v0, 16 }
  0xd8   : > { %v3356_v6 = vcombine.low %v1293_v11, %v1303_v60  ;;  %v1399_v35 = vsel %vm4088_vm12, %v3300_v10, %v1398_v16  ;;  %v1400_v2 = vrot.slane %v1398_v16, 4  ;;  %v1015_v48 = vrot.slane %v4586_v27, 5  ;;  %v4643_v10 = vpop.permute.xlu1 %1653  ;;  %v3705_v60 = vld [vmem:[#allocation2] sm:$0xc] }
  0xd9   : > { %v1009_v12 = vrot.slane %v1007_v40, 5  ;;  %v1012_v9 = vrot.slane %v1010_v43, 6  ;;  %v1016_v51 = vrot.slane %v4583_v59, 6  ;;  %v1021_v25 = vshrl.u32 %v4618_v42, 16  ;;  %v4656_v40 = vld [vmem:[#allocation2 + $0x4] sm:$0xf] }
  0xda   : > { %1769 = vrot.lane.b32.xlu0 %v3356_v6, %s3831_s14  ;;  %v1402_v0 = vsel %vm4088_vm12, %v1400_v2, %v1401_v38  ;;  %v1024_v57 = vshll.u32 %v4618_v42, 16  ;;  %v1524_v41 = vshrl.u32 %v1333_v13, 16  ;;  %v1528_v1 = vrot.slane %v4586_v27, 7  ;;  %v4652_v45 = vpop.permute.xlu0 %1837 }
  0xdb   : > { %1665 = vrot.lane.b32.xlu1 %v3332_v32, %s3829_s20  ;;  %v3364_v8 = vcombine.low %v1399_v35, %v1402_v0  ;;  %v1013_v19 = vor.u32 %v1012_v9, %v1009_v12  ;;  %v1017_v7 = vor.u32 %v1016_v51, %v1015_v48  ;;  %v1023_v28 = vrot.slane %v1021_v25, 5  ;;  %v3708_v0 = vld [vmem:[#allocation2 + $0xc] sm:$0xc] }
  0xdc   : > { %v1026_v17 = vrot.slane %v1024_v57, 6  ;;  %v3308_v22 = vrot.slane %v1524_v41, 11  ;;  %v1529_v26 = vor.u32 %v1528_v1, %v4583_v59  ;;  %v1533_v29 = vshrl.u32 %v4636_v20, 16  ;;  %v4671_v25 = vpop.permute.xlu1 %1655 }
  0xdd   : > { %v1014_v61 = vrot.slane %v1013_v19, 4  ;;  %v1019_v21 = vrot.slane %v1017_v7, 4  ;;  %v1536_v55 = vshll.u32 %v4636_v20, 16  ;;  %v1531_v13 = vrot.slane %v1528_v1, 4 }
  0xde   : > { %1809 = vrot.lane.b32.xlu0 %v3364_v8, %s3829_s20  ;;  %v1027_v27 = vor.u32 %v1026_v17, %v1023_v28  ;;  %v493_v11 = vrot.slane %v3448_v56, 6  ;;  %v495_v59 = vrot.slane %v3449_v62, 6  ;;  %v1535_v38 = vrot.slane %v1533_v29, 7  ;;  %v4673_v1 = vpop.permute.xlu0 %1839  ;;  %v3710_v17 = vld [vmem:[#allocation2 + $0x14] sm:$0x3] }
  0xdf   : > { %v1018_v16 = vsel %vm4217_vm10, %v1014_v61, %v1017_v7  ;;  %v3286_v32 = vrot.slane %v3705_v60, 10  ;;  %v1078_v43 = vrot.slane %v4656_v40, 6  ;;  %v1081_v62 = vrot.slane %v3707_v23, 6  ;;  %v4683_v7 = vld [vmem:[#allocation2 + $0x10] sm:$0xf] }
  0xe0   : > { %v1028_v44 = vsel %vm4217_vm10, %v1019_v21, %v1027_v27  ;;  %v494_v56 = vrot.slane %v493_v11, 4  ;;  %v497_v6 = vrot.slane %v495_v59, 4  ;;  %544 = vst.msk [vmem:[#allocation2 + $0x54] sm:$0xc] %vm382_vm1, %v493_v11  ;;  %v1530_v2 = vsel %vm4152_vm14, %v3308_v22, %v1529_v26  ;;  %v3711_v26 = vld [vmem:[#allocation2 + $0x8] sm:$0xf] }
  0xe1   : > { %v3340_v35 = vcombine.low %v1018_v16, %v1028_v44  ;;  %v1538_v48 = vor.u32 %v1536_v55, %v1535_v38  ;;  %v1080_v12 = vrot.slane %v1078_v43, 4  ;;  %v3287_v57 = vrot.slane %v3708_v0, 10  ;;  %v3712_v21 = vld [vmem:[#allocation2 + $0x14] sm:$0xf]  ;;  %v4689_v27 = vld [vmem:[#allocation2 + $0x1c] sm:$0xf]  ;;  %v4721_v0 = vpop.permute.xlu1 %1657 }
  0xe2   : > { %v496_v9 = vsel %vm4024_vm5, %v494_v56, %v495_v59  ;;  %546 = vst.msk [vmem:[#allocation2 + $0x5c] sm:$0x3] %vm373_vm0, %v497_v6  ;;  %v4677_v8 = vsel %vm4024_vm5, %v3286_v32, %v1078_v43  ;;  %v1085_v28 = vrot.slane %v4683_v7, 6  ;;  %v1088_v22 = vrot.slane %v3710_v17, 6  ;;  %v4700_v60 = vld [vmem:[#allocation2] sm:$0xf] }
  0xe3   : > { %1705 = vrot.lane.b32.xlu1 %v3340_v35, %s3830_s28  ;;  %v1539_v51 = vsel %vm4152_vm14, %v1531_v13, %v1538_v48  ;;  %545 = vst.msk [vmem:[#allocation2 + $0x58] sm:$0xf] %vm523_vm4, %v496_v9  ;;  %v4681_v19 = vsel %vm4024_vm5, %v1080_v12, %v1081_v62  ;;  %v3374_v61 = vcombine.low %v4656_v40, %v3711_v26  ;;  %vm1877_vm0 = vcmask 261120   ;;  %v3715_v44 = vld [vmem:[#allocation2 + $0x20] sm:$0xf]  ;;  %5432 = vst [vmem:[#allocation16_spill] sm:$0xff] %v4721_v0 }
  0xe4   : > { %v3372_v41 = vcombine.low %v1530_v2, %v1539_v51  ;;  %v3375_v29 = vcombine.low %v4683_v7, %v3712_v21  ;;  %v1087_v55 = vrot.slane %v1085_v28, 4  ;;  %v4706_v43 = vsel %vm4024_vm5, %v3287_v57, %v1085_v28 }
  0xe5   : > { %3537 = vmatprep.mubr.msk.bf16.mxu1 %vm1877_vm0, %v3374_v61  ;;  %v3376_v56 = vcombine.low %v4689_v27, %v3715_v44  ;;  %vm1902_vm1 = vcmask 523264   ;;  %vm1919_vm4 = vcmask 785408   ;;  %vm2940_vm2 = vcmask 1045509  }
  0xe6   : > { %1849 = vrot.lane.b32.xlu0 %v3372_v41, %s3830_s28  ;;  %3538 = vmatmul.mubr.msk.bf16.vlgmr.msra.gmra.mrb[0].mxu1 %vm1877_vm0, %v3375_v29  ;;  %v4725_v57 = vsel %vm4024_vm5, %v1087_v55, %v1088_v22  ;;  %v3377_v41 = vcombine.low %v4325_v18, %v4406_v37  ;;  %v4732_v29 = vpop.permute.xlu0 %1841  ;;  %vm2942_vm3 = vcmask 1046534   ;;  %vm2944_vm6 = vcmask 1047559  }
  0xe7   : > { %v4692_v11 = vld [vmem:[#allocation2 + $0x54] sm:$0xf]  ;;  %3541 = vmatprep.mubr.msk.bf16.mxu1 %vm1877_vm0, %v3376_v56 }
  0xe8   : > { %5431 = vst [vmem:[#allocation15_spill] sm:$0xff] %v4692_v11  ;;  %v4694_v59 = vld [vmem:[#allocation2 + $0x54] sm:$0xc]  ;;  %v743_v6 = vshrl.u32 %v4692_v11, 16  ;;  %v746_v23 = vshll.u32 %v4692_v11, 16 }
  0xe9   : > { %v4696_v16 = vld [vmem:[#allocation2 + $0x54] sm:$0xe]  ;;  %v1305_v62 = vshrl.u32 %v4694_v59, 16  ;;  %v1308_v35 = vshll.u32 %v4694_v59, 16  ;;  %v570_v48 = vld [vmem:[#allocation2 + $0x5c] sm:$0x1] }
  0xea   : > { %v4714_v2 = vld [vmem:[#allocation2 + $0x54] sm:$0x8]  ;;  %v4717_v12 = vld [vmem:[#allocation2 + $0x5c] sm:$0x7]  ;;  %v3285_v9 = vrot.slane %v4696_v16, 9  ;;  %v745_v17 = vrot.slane %v743_v6, 4  ;;  %v1758_v11 = vpop.permute.xlu0 %1757 }
  0xeb   : > { %v3301_v51 = vrot.slane %v4714_v2, 11  ;;  %v4730_v28 = vld [vmem:[#allocation2 + $0x58] sm:$0xf]  ;;  %v748_v26 = vrot.slane %v746_v23, 5  ;;  %v762_v61 = vshll.u32 %v570_v48, 16  ;;  %v1307_v21 = vrot.slane %v1305_v62, 6 }
  0xec   : > { %v4735_v44 = vshll.u32 %v4730_v28, 16  ;;  %v4738_v13 = vshrl.u32 %v4730_v28, 16  ;;  %v1310_v22 = vrot.slane %v1308_v35, 7  ;;  %v1319_v55 = vshrl.u32 %v4717_v12, 16  ;;  %v4770_v24 = vld [vmem:[#allocation2 + $0x5c] sm:$0xf] }
  0xed   : > { %v749_v56 = vor.u32 %v748_v26, %v745_v17  ;;  %v764_v32 = vrot.slane %v762_v61, 5  ;;  %v1322_v18 = vshll.u32 %v4717_v12, 16  ;;  %v852_v37 = vrot.slane %v4730_v28, 5  ;;  %v4749_v61 = vpop.permute.xlu1 %1693 }
  0xee   : > { %v754_v6 = vrot.slane %v4735_v44, 5  ;;  %v758_v23 = vrot.slane %v4738_v13, 4  ;;  %v1311_v62 = vor.u32 %v1310_v22, %v1307_v21  ;;  %v1313_v38 = vrot.slane %v4738_v13, 6  ;;  %3542 = vmatmul.mubr.msk.bf16.gmra.mrb[4].mxu1 %vm1877_vm0, %v3377_v41 }
  0xef   : > { %v750_v3 = vrot.slane %v749_v56, 4  ;;  %v1314_v39 = vrot.slane %v4735_v44, 7  ;;  %v1321_v53 = vrot.slane %v1319_v55, 6  ;;  %v1324_v35 = vrot.slane %v1322_v18, 7 }
  0xf0   : > { %v759_v54 = vor.u32 %v758_v23, %v754_v6  ;;  %v1312_v49 = vrot.slane %v1311_v62, 4  ;;  %v853_v17 = vsel %vm4116_vm13, %v3285_v9, %v852_v37  ;;  %v854_v26 = vrot.slane %v852_v37, 4 }
  0xf1   : > { %v755_v0 = vsel %vm4251_vm15, %v750_v3, %v754_v6  ;;  %v1315_v20 = vor.u32 %v1314_v39, %v1313_v38  ;;  %v1325_v21 = vor.u32 %v1324_v35, %v1321_v53  ;;  %v855_v22 = vrot.slane %v570_v48, 5 }
  0xf2   : > { %v760_v55 = vrot.slane %v759_v54, 4  ;;  %v1405_v56 = vrot.slane %v4730_v28, 7  ;;  %v1408_v18 = vrot.slane %v4717_v12, 7  ;;  %v1030_v9 = vshrl.u32 %v4696_v16, 16  ;;  %v4766_v12 = vld [vmem:[#allocation2 + $0x5c] sm:$0x3] }
  0xf3   : > { %v1316_v37 = vsel %vm4234_vm11, %v1312_v49, %v1315_v20  ;;  %v1317_v23 = vrot.slane %v1315_v20, 4  ;;  %v856_v39 = vsel %vm4116_vm13, %v854_v26, %v855_v22  ;;  %v1033_v3 = vshll.u32 %v4696_v16, 16 }
  0xf4   : > { %v765_v53 = vsel %vm4251_vm15, %v760_v55, %v764_v32  ;;  %v3333_v54 = vcombine.low %v853_v17, %v856_v39  ;;  %v1406_v38 = vsel %vm4088_vm12, %v3301_v51, %v1405_v56  ;;  %v1407_v48 = vrot.slane %v1405_v56, 4  ;;  %v1616_v51 = vpop.permute.xlu1 %1615  ;;  %v1614_v26 = vpop.permute.xlu0 %1613 }
  0xf5   : > { %v3325_v41 = vcombine.low %v755_v0, %v765_v53  ;;  %v1326_v49 = vsel %vm4234_vm11, %v1317_v23, %v1325_v21  ;;  %v1032_v20 = vrot.slane %v1030_v9, 5  ;;  %v1035_v6 = vrot.slane %v1033_v3, 6 }
  0xf6   : > { %v3357_v62 = vcombine.low %v1316_v37, %v1326_v49  ;;  %v1409_v34 = vsel %vm4088_vm12, %v1407_v48, %v1408_v18  ;;  %v1038_v16 = vrot.slane %v4738_v13, 5  ;;  %v1039_v32 = vrot.slane %v4735_v44, 6 }
  0xf7   : > { %1627 = vrot.lane.b32.xlu1 %v3325_v41, %s3831_s14  ;;  %v3365_v35 = vcombine.low %v1406_v38, %v1409_v34  ;;  %v1036_v0 = vor.u32 %v1035_v6, %v1032_v20  ;;  %v1044_v14 = vshrl.u32 %v4766_v12, 16  ;;  %v1047_v17 = vshll.u32 %v4766_v12, 16  ;;  %v3716_v6 = vld [vmem:[#allocation2 + $0x18] sm:$0xc]  ;;  %v3717_v34 = vld [vmem:[#allocation2 + $0x20] sm:$0x3] }
  0xf8   : > { %1771 = vrot.lane.b32.xlu0 %v3357_v62, %s3831_s14  ;;  %v1040_v21 = vor.u32 %v1039_v32, %v1038_v16  ;;  %v1541_v4 = vshrl.u32 %v4714_v2, 16  ;;  %v1545_v22 = vrot.slane %v4738_v13, 7  ;;  %v1550_v55 = vshrl.u32 %v4770_v24, 16  ;;  %v1696_v20 = vpop.permute.xlu1 %1695 }
  0xf9   : > { %v1037_v56 = vrot.slane %v1036_v0, 4  ;;  %v1046_v18 = vrot.slane %v1044_v14, 5  ;;  %v1049_v9 = vrot.slane %v1047_v17, 6  ;;  %v1553_v37 = vshll.u32 %v4770_v24, 16  ;;  %v3718_v17 = vld [vmem:[#allocation2 + $0xc] sm:$0xf] }
  0xfa   : > { %v1042_v23 = vrot.slane %v1040_v21, 4  ;;  %v3309_v39 = vrot.slane %v1541_v4, 11  ;;  %v1546_v3 = vor.u32 %v1545_v22, %v4735_v44  ;;  %v1548_v53 = vrot.slane %v1545_v22, 4 }
  0xfb   : > { %1667 = vrot.lane.b32.xlu1 %v3333_v54, %s3829_s20  ;;  %v1041_v38 = vsel %vm4217_vm10, %v1037_v56, %v1040_v21  ;;  %v1050_v2 = vor.u32 %v1049_v9, %v1046_v18  ;;  %v1552_v48 = vrot.slane %v1550_v55, 7  ;;  %v5433_v13 = vcombine.low %v4677_v8, %v4681_v19  ;;  %v1760_v32 = vpop.permute.xlu0 %1759  ;;  %v3719_v56 = vld [vmem:[#allocation2 + $0x18] sm:$0xf] }
  0xfc   : > { %1811 = vrot.lane.b32.xlu0 %v3365_v35, %s3829_s20  ;;  %v5434_v44 = vcombine.low %v4700_v60, %v4656_v40  ;;  %v3288_v62 = vrot.slane %v3716_v6, 10  ;;  %v1095_v16 = vrot.slane %v3717_v34, 6  ;;  %v1547_v19 = vsel %vm4152_vm14, %v3309_v39, %v1546_v3  ;;  %s3429_s20 = sshll.u32 %s3906_s13, 7 }
  0xfd   : > { %v1946_v41 = vsel %vm1877_vm0, %v5433_v13, %v1758_v11  ;;  %v1051_v8 = vsel %vm4217_vm10, %v1042_v23, %v1050_v2  ;;  %v1555_v11 = vor.u32 %v1553_v37, %v1552_v48  ;;  %v3343_v60 = vcombine.low %v4706_v43, %v4725_v57  ;;  %v3720_v13 = vld [vmem:[#allocation2 + $0x28] sm:$0xf] }
  0xfe   : > { %v1969_v49 = vsel %vm1902_vm1, %v1946_v41, %v4623_v46  ;;  %v1880_v54 = vsel %vm1877_vm0, %v5434_v44, %v1614_v26  ;;  %v3341_v35 = vcombine.low %v1041_v38, %v1051_v8  ;;  %v5435_v0 = vrot.slane %v4689_v27, 6 }
  0xff   : > { %v1985_v46 = vsel %vm1919_vm4, %v1969_v49, %v4652_v45  ;;  %v1904_v40 = vsel %vm1902_vm1, %v1880_v54, %v4643_v10  ;;  %v1556_v14 = vsel %vm4152_vm14, %v1548_v53, %v1555_v11  ;;  %v3311_v26 = vcombine.low %v3718_v17, %v4683_v7  ;;  %v5438_v49 = vld [vmem:[#allocation14_spill] sm:$0xff] }
 0x100   : > { %2215 = vmatprep.mubr.bf16.mxu0 %v1985_v46  ;;  %v1094_v36 = vrot.slane %v5435_v0, 4  ;;  %v1921_v45 = vsel %vm1919_vm4, %v1904_v40, %v4749_v61  ;;  %1707 = vrot.lane.b32.xlu1 %v3341_v35, %s3830_s28  ;;  %v3373_v21 = vcombine.low %v1547_v19, %v1556_v14  ;;  %v1949_v10 = vsel %vm1877_vm0, %v3343_v60, %v1760_v32  ;;  %v1618_v61 = vpop.permute.xlu1 %1617  ;;  %v3722_v46 = vld [vmem:[#allocation2 + $0x2c] sm:$0x3] }
 0x101   : > { %2216 = vmatmul.mubr.bf16.vlgmr.msra.gmra.mrb[0].mxu0 %v1921_v45  ;;  %v1971_v43 = vsel %vm1902_vm1, %v1949_v10, %v4606_v5  ;;  %v5436_v57 = vmov %v5435_v0  ;;  %v1883_v22 = vsel %vm1877_vm0, %v3311_v26, %v1616_v51  ;;  %v3378_v5 = vcombine.low %v4414_v58, %v4464_v30  ;;  %v3723_v26 = vld [vmem:[#allocation2 + $0x24] sm:$0xf] }
 0x102   : > { %v1093_v63 = vsel %vm4024_vm5, %v3288_v62, %v5436_v57  ;;  %v1096_v7 = vsel %vm4024_vm5, %v1094_v36, %v1095_v16  ;;  %1851 = vrot.lane.b32.xlu0 %v3373_v21, %s3830_s28  ;;  %v1988_v4 = vsel %vm1919_vm4, %v1971_v43, %v4673_v1  ;;  %v3312_v18 = vcombine.low %v3719_v56, %v4689_v27  ;;  %v3721_v62 = vld [vmem:[#allocation2 + $0x24] sm:$0xc]  ;;  %v5439_v16 = vld [vmem:[#allocation16_spill] sm:$0xff] }
 0x103   : > { %2223 = vmatprep.mubr.bf16.mxu0 %v1988_v4  ;;  %v3344_v55 = vcombine.low %v1093_v63, %v1096_v7  ;;  %v1906_v9 = vsel %vm1902_vm1, %v1883_v22, %v4671_v25  ;;  %v3379_v37 = vcombine.low %v4536_v47, %v4561_v52  ;;  %3545 = vmatprep.mubr.msk.bf16.mxu1 %vm1877_vm0, %v3378_v5  ;;  %v3292_v1 = vrot.slane %v4517_v31, 10  ;;  %v3724_v22 = vld [vmem:[#allocation2 + $0x34] sm:$0xf]  ;;  %v3725_v5 = vld [vmem:[#allocation2 + $0x30] sm:$0xc] }
 0x104   : > { %v1924_v39 = vsel %vm1919_vm4, %v1906_v9, %v1696_v20  ;;  %v1120_v51 = vrot.slane %v4570_v50, 6  ;;  %v1123_v58 = vrot.slane %v4618_v42, 6  ;;  %v1698_v30 = vpop.permute.xlu1 %1697  ;;  %v3293_v25 = vrot.slane %v4694_v59, 10  ;;  %v5437_v42 = vld [vmem:[#allocation15_spill] sm:$0xff]  ;;  %v5440_v9 = vld [vmem:[#allocation9_spill] sm:$0xff] }
 0x105   : > { %v1762_v23 = vpop.permute.xlu0 %1761  ;;  %3546 = vmatmul.mubr.msk.bf16.gmra.mrb[8].mxu1 %vm1877_vm0, %v3379_v37  ;;  %v3317_v38 = vcombine.low %v5437_v42, %v4730_v28  ;;  %v1127_v2 = vrot.slane %v4730_v28, 6  ;;  %v1130_v48 = vrot.slane %v4766_v12, 6  ;;  %v1886_v59 = vsel %vm1877_vm0, %v3312_v18, %v1618_v61 }
 0x106   : > { %v1952_v27 = vsel %vm1877_vm0, %v3344_v55, %v1762_v23  ;;  %v4849_v3 = vsel %vm4024_vm5, %v3292_v1, %v1120_v51  ;;  %v1122_v31 = vrot.slane %v1120_v51, 4  ;;  %v1099_v41 = vrot.slane %v3720_v13, 6 }
 0x107   : > { %v1973_v52 = vsel %vm1902_vm1, %v1952_v27, %v4628_v33  ;;  %v3380_v20 = vcombine.low %v4570_v50, %v5438_v49  ;;  %v4868_v44 = vsel %vm4024_vm5, %v3293_v25, %v1127_v2  ;;  %v1129_v12 = vrot.slane %v1127_v2, 4  ;;  %v3726_v27 = vld [vmem:[#allocation2 + $0x30] sm:$0xf] }
 0x108   : > { %v1991_v53 = vsel %vm1919_vm4, %v1973_v52, %v4732_v29  ;;  %v4860_v33 = vsel %vm4024_vm5, %v1122_v31, %v1123_v58  ;;  %v3381_v54 = vcombine.low %v4730_v28, %v4770_v24  ;;  %v3289_v34 = vrot.slane %v3721_v62, 10  ;;  %v5442_v62 = vld [vmem:[#allocation13_spill] sm:$0xff] }
 0x109   : > { %2224 = vmatmul.mubr.bf16.gmra.mrb[4].mxu0 %v1924_v39  ;;  %v3348_v29 = vcombine.low %v4849_v3, %v4860_v33  ;;  %3549 = vmatprep.mubr.msk.bf16.mxu1 %vm1877_vm0, %v3380_v20  ;;  %v1908_v8 = vsel %vm1902_vm1, %v1886_v59, %v5439_v16  ;;  %v4877_v19 = vsel %vm4024_vm5, %v1129_v12, %v1130_v48  ;;  %v1101_v11 = vrot.slane %v1099_v41, 4  ;;  %v5441_v12 = vld [vmem:[#allocation11_spill] sm:$0xff] }
 0x10a   : > { %2231 = vmatprep.mubr.bf16.mxu0 %v1991_v53  ;;  %v1102_v32 = vrot.slane %v3722_v46, 6  ;;  %v1927_v40 = vsel %vm1919_vm4, %v1908_v8, %v1698_v30  ;;  %v3349_v24 = vcombine.low %v4868_v44, %v4877_v19  ;;  %v1100_v60 = vsel %vm4024_vm5, %v3289_v34, %v1099_v41 }
 0x10b   : > { %v1620_v6 = vpop.permute.xlu1 %1619  ;;  %v3313_v45 = vcombine.low %v3723_v26, %v3720_v13  ;;  %v1106_v55 = vrot.slane %v3724_v22, 6  ;;  %v3290_v56 = vrot.slane %v3725_v5, 10  ;;  %v1109_v37 = vrot.slane %v5440_v9, 6 }
 0x10c   : > { %v1103_v0 = vsel %vm4024_vm5, %v1101_v11, %v1102_v32  ;;  %v3314_v25 = vcombine.low %v3726_v27, %v3724_v22  ;;  %v1113_v20 = vrot.slane %v4536_v47, 6  ;;  %v1116_v34 = vrot.slane %v5442_v62, 6  ;;  %v5443_v32 = vld [vmem:[#allocation10_spill] sm:$0xff] }
 0x10d   : > { %v1764_v35 = vpop.permute.xlu0 %1763  ;;  %3550 = vmatmul.mubr.msk.bf16.gmra.mrb[12].mxu1 %vm1877_vm0, %v3381_v54  ;;  %v3345_v17 = vcombine.low %v1100_v60, %v1103_v0  ;;  %v1889_v43 = vsel %vm1877_vm0, %v3313_v45, %v1620_v6  ;;  %v1108_v18 = vrot.slane %v1106_v55, 4  ;;  %v1107_v39 = vsel %vm4024_vm5, %v3290_v56, %v1106_v55 }
 0x10e   : > { %v3291_v54 = vrot.slane %v5441_v12, 10  ;;  %v1115_v6 = vrot.slane %v1113_v20, 4  ;;  %vm2932_vm12 = vcmask 1041409   ;;  %vm2934_vm13 = vcmask 1042434  }
 0x10f   : > { %v1660_v36 = vpop.permute.xlu1 %1659  ;;  %v1955_v21 = vsel %vm1877_vm0, %v3345_v17, %v1764_v35  ;;  %v1110_v1 = vsel %vm4024_vm5, %v1108_v18, %v1109_v37  ;;  %v3315_v35 = vcombine.low %v5443_v32, %v4536_v47  ;;  %vm2936_vm14 = vcmask 1043459  }
 0x110   : > { %v1910_v7 = vsel %vm1902_vm1, %v1889_v43, %v1660_v36  ;;  %v3346_v30 = vcombine.low %v1107_v39, %v1110_v1  ;;  %v1114_v8 = vsel %vm4024_vm5, %v3291_v54, %v1113_v20  ;;  %v1117_v11 = vsel %vm4024_vm5, %v1115_v6, %v1116_v34 }
 0x111   : > { %2232 = vmatmul.mubr.bf16.gmra.mrb[8].mxu0 %v1927_v40  ;;  %v1804_v14 = vpop.permute.xlu0 %1803  ;;  %v3347_v40 = vcombine.low %v1114_v8, %v1117_v11  ;;  %vm3833_vm5 = vmmov 0  }
 0x112   : > { %v1975_v57 = vsel %vm1902_vm1, %v1955_v21, %v1804_v14 }
 0x116   : > { %v1700_v10 = vpop.permute.xlu1 %1699 }
 0x117   : > { %v1930_v4 = vsel %vm1919_vm4, %v1910_v7, %v1700_v10 }
 0x119   : > { %v1844_v63 = vpop.permute.xlu0 %1843 }
 0x11a   : > { %v1994_v61 = vsel %vm1919_vm4, %v1975_v57, %v1844_v63  ;;  %v5444_v63 = vld [vmem:[#allocation12_spill] sm:$0xff] }
 0x11b   : > { %2239 = vmatprep.mubr.bf16.mxu0 %v1994_v61  ;;  %v3316_v7 = vcombine.low %v5444_v63, %v4570_v50 }
 0x11c   : > { %2240 = vmatmul.mubr.bf16.gmra.mrb[12].mxu0 %v1930_v4 }
 0x122   : > { %v1622_v23 = vpop.permute.xlu1 %1621 }
 0x123   : > { %v1892_v2 = vsel %vm1877_vm0, %v3314_v25, %v1622_v23 }
 0x125   : > { %v1766_v51 = vpop.permute.xlu0 %1765 }
 0x126   : > { %v1662_v58 = vpop.permute.xlu1 %1661  ;;  %v1958_v31 = vsel %vm1877_vm0, %v3346_v30, %v1766_v51 }
 0x127   : > { %v1912_v13 = vsel %vm1902_vm1, %v1892_v2, %v1662_v58 }
 0x129   : > { %v1806_v52 = vpop.permute.xlu0 %1805 }
 0x12a   : > { %v1702_v53 = vpop.permute.xlu1 %1701  ;;  %v1977_v48 = vsel %vm1902_vm1, %v1958_v31, %v1806_v52 }
 0x12b   : > { %v1933_v49 = vsel %vm1919_vm4, %v1912_v13, %v1702_v53 }
 0x12d   : > { %v1846_v59 = vpop.permute.xlu0 %1845 }
 0x12e   : > { %v1997_v41 = vsel %vm1919_vm4, %v1977_v48, %v1846_v59  ;;  %v4949_v48 = vld [vmem:[%s5388_s3] ss:$0 sm:$0xff] }
 0x12f   : > { %2247 = vmatprep.mubr.bf16.mxu0 %v1997_v41 }
 0x130   : > { %2248 = vmatmul.mubr.bf16.gmra.mrb[16].mxu0 %v1933_v49 }
 0x13c   : > { %v1624_v16 = vpop.permute.xlu1 %1623 }
 0x13d   : > { %v1768_v46 = vpop.permute.xlu0 %1767  ;;  %v1895_v36 = vsel %vm1877_vm0, %v3315_v35, %v1624_v16 }
 0x13e   : > { %v1961_v14 = vsel %vm1877_vm0, %v3347_v40, %v1768_v46 }
 0x140   : > { %v1664_v60 = vpop.permute.xlu1 %1663 }
 0x141   : > { %v1808_v0 = vpop.permute.xlu0 %1807  ;;  %v1914_v17 = vsel %vm1902_vm1, %v1895_v36, %v1664_v60 }
 0x142   : > { %v1979_v45 = vsel %vm1902_vm1, %v1961_v14, %v1808_v0 }
 0x144   : > { %v1704_v26 = vpop.permute.xlu1 %1703 }
 0x145   : > { %v1848_v21 = vpop.permute.xlu0 %1847  ;;  %v1936_v15 = vsel %vm1919_vm4, %v1914_v17, %v1704_v26  ;;  %v3651_v17 = vld [vmem:[%s5390_s5] sm:$0xff]   ;;  %v5404_v26 = vmov 0.0  }
 0x146   : > { %v2000_v10 = vsel %vm1919_vm4, %v1979_v45, %v1848_v21  ;;  %3553 = vmatprep.subr.bf16.mxu1 %v5404_v26  ;;  %3557 = vmatprep.mubr.msk.bf16.mxu1 %vm3833_vm5, %v5404_v26 }
 0x147   : > { %2255 = vmatprep.mubr.bf16.mxu0 %v2000_v10  ;;  %3554 = vmatpush3.bf16.msra.mxu1 %v3651_v17 }
 0x148   : > { %2256 = vmatmul.mubr.bf16.gmra.mrb[20].mxu0 %v1936_v15  ;;  %3555 = vmatprep.subr.bf16.mxu1 %v5404_v26 }
 0x149   : > { %v1626_v47 = vpop.permute.xlu1 %1625 }
 0x14a   : > { %v1898_v22 = vsel %vm1877_vm0, %v3316_v7, %v1626_v47  ;;  %v3652_v7 = vld [vmem:[%s5390_s5 + $0x8] sm:$0xff]  }
 0x14b   : > { %3556 = vmatpush3.bf16.msra.mxu1 %v3652_v7 }
 0x14c   : > { %v1770_v43 = vpop.permute.xlu0 %1769  ;;  %3561 = vmatprep.subr.bf16.mxu1 %v5404_v26 }
 0x14d   : > { %v1666_v57 = vpop.permute.xlu1 %1665  ;;  %v1964_v55 = vsel %vm1877_vm0, %v3348_v29, %v1770_v43 }
 0x14e   : > { %v1916_v5 = vsel %vm1902_vm1, %v1898_v22, %v1666_v57 }
 0x150   : > { %v1810_v61 = vpop.permute.xlu0 %1809 }
 0x151   : > { %v1981_v56 = vsel %vm1902_vm1, %v1964_v55, %v1810_v61 }
 0x155   : > { %v1706_v4 = vpop.permute.xlu1 %1705 }
 0x156   : > { %v1939_v9 = vsel %vm1919_vm4, %v1916_v5, %v1706_v4 }
 0x158   : > { %v1850_v18 = vpop.permute.xlu0 %1849 }
 0x159   : > { %v2003_v37 = vsel %vm1919_vm4, %v1981_v56, %v1850_v18 }
 0x15a   : > { %2263 = vmatprep.mubr.bf16.mxu0 %v2003_v37 }
 0x15b   : > { %2264 = vmatmul.mubr.bf16.gmra.mrb[24].mxu0 %v1939_v9 }
 0x169   : > { %v1628_v50 = vpop.permute.xlu1 %1627 }
 0x16a   : > { %v1772_v23 = vpop.permute.xlu0 %1771  ;;  %v1901_v3 = vsel %vm1877_vm0, %v3317_v38, %v1628_v50 }
 0x16b   : > { %v1967_v29 = vsel %vm1877_vm0, %v3349_v24, %v1772_v23 }
 0x16d   : > { %v1668_v39 = vpop.permute.xlu1 %1667 }
 0x16e   : > { %v1812_v1 = vpop.permute.xlu0 %1811  ;;  %v1918_v51 = vsel %vm1902_vm1, %v1901_v3, %v1668_v39 }
 0x16f   : > { %v1983_v58 = vsel %vm1902_vm1, %v1967_v29, %v1812_v1 }
 0x172   : > { %v1708_v33 = vpop.permute.xlu1 %1707 }
 0x173   : > { %v1942_v27 = vsel %vm1919_vm4, %v1918_v51, %v1708_v33 }
 0x174   : > { %v1852_v30 = vpop.permute.xlu0 %1851 }
 0x175   : > { %v2006_v25 = vsel %vm1919_vm4, %v1983_v58, %v1852_v30 }
 0x176   : > { %2271 = vmatprep.mubr.bf16.mxu0 %v2006_v25 }
 0x177   : > { %2272 = vmatmul.mubr.bf16.gmra.mrb[28].mxu0 %v1942_v27 }
 0x1b9   : > { %v3539_v28 = vpop.f32.mrb[0].mxu1 }
 0x1ba   : > { %v2314_v42 = vpop.f32.mrb[1].mxu1 }
 0x1bb   : > { %v3540_v38 = vpop.f32.mrb[2].mxu1 }
 0x1bc   : > { %v2317_v52 = vpop.f32.mrb[3].mxu1 }
 0x1c1   : > { %v4942_v31 = vpop.f32.mrb[4].mxu1 }
 0x1c2   : > { %v2330_v44 = vpop.f32.mrb[5].mxu1 }
 0x1c3   : > { %v4944_v19 = vpop.f32.mrb[6].mxu1 }
 0x1c4   : > { %v2333_v24 = vpop.f32.mrb[7].mxu1 }
 0x1d4   : > { %v3466_v53 = vpop.f32.mrb[0].mxu0 }
 0x1d5   : > { %v3467_v2 = vpop.f32.mrb[1].mxu0 }
 0x1d6   : > { %v3468_v59 = vadd.f32 %v3467_v2, %v3466_v53  ;;  %v3469_v13 = vpop.f32.mrb[2].mxu0 }
 0x1d7   : > { %v3470_v41 = vpop.f32.mrb[3].mxu0 }
 0x1d8   : > { %v3471_v49 = vadd.f32 %v3470_v41, %v3469_v13  ;;  %v2218_v20 = vadd.f32 %v3468_v59, %v4949_v48  ;;  %v4959_v34 = vpop.f32.mrb[8].mxu1 }
 0x1d9   : > { %v2346_v8 = vpop.f32.mrb[9].mxu1 }
 0x1da   : > { %v4952_v12 = vadd.f32 %v2314_v42, %v2218_v20  ;;  %v2221_v54 = vadd.f32 %v3471_v49, %v4949_v48  ;;  %v4963_v32 = vpop.f32.mrb[10].mxu1 }
 0x1db   : > { %v2349_v40 = vpop.f32.mrb[11].mxu1 }
 0x1dc   : > { %v4955_v6 = vadd.f32 %v2317_v52, %v2221_v54  ;;  %2452 = vrot.lane.b32.xlu0 %v4952_v12, %s3830_s28  ;;  %v3472_v62 = vpop.f32.mrb[4].mxu0  ;;  %v2820_v7 = vsel %vm1877_vm0, %v4952_v12, -inf }
 0x1dd   : > { %v3473_v16 = vpop.f32.mrb[5].mxu0 }
 0x1de   : > { %v3474_v11 = vadd.f32 %v3473_v16, %v3472_v62  ;;  %2454 = vrot.lane.b32.xlu1 %v4955_v6, %s3830_s28  ;;  %v3475_v46 = vpop.f32.mrb[6].mxu0  ;;  %v2821_v17 = vsel %vm1877_vm0, %v4955_v6, -inf }
 0x1df   : > { %v3476_v35 = vpop.f32.mrb[7].mxu0 }
 0x1e0   : > { %v2226_v60 = vadd.f32 %v3474_v11, %v4949_v48  ;;  %v3477_v0 = vadd.f32 %v3476_v35, %v3475_v46  ;;  %v4977_v15 = vpop.f32.mrb[12].mxu1 }
 0x1e1   : > { %v4979_v47 = vpop.f32.mrb[13].mxu1 }
 0x1e2   : > { %v2229_v36 = vadd.f32 %v3477_v0, %v4949_v48  ;;  %v4967_v14 = vadd.f32 %v3539_v28, %v2226_v60  ;;  %v4984_v63 = vpop.f32.mrb[14].mxu1 }
 0x1e3   : > { %v2365_v4 = vpop.f32.mrb[15].mxu1 }
 0x1e4   : > { %2456 = vrot.lane.b32.xlu0 %v4967_v14, %s3830_s28  ;;  %v3478_v45 = vpop.f32.mrb[8].mxu0  ;;  %v4975_v21 = vadd.f32 %v3540_v38, %v2229_v36 }
 0x1e5   : > { %v3479_v10 = vpop.f32.mrb[9].mxu0 }
 0x1e6   : > { %v3480_v43 = vadd.f32 %v3479_v10, %v3478_v45  ;;  %2458 = vrot.lane.b32.xlu1 %v4975_v21, %s3830_s28  ;;  %v3481_v57 = vpop.f32.mrb[10].mxu0  ;;  %v2829_v45 = vsel %vm1877_vm0, %v4967_v14, -inf }
 0x1e7   : > { %v3482_v61 = vpop.f32.mrb[11].mxu0 }
 0x1e8   : > { %v3483_v22 = vadd.f32 %v3482_v61, %v3481_v57  ;;  %v2234_v55 = vadd.f32 %v3480_v43, %v4949_v48 }
 0x1ea   : > { %v4993_v5 = vadd.f32 %v2330_v44, %v2234_v55  ;;  %v2237_v56 = vadd.f32 %v3483_v22, %v4949_v48  ;;  %v2822_v55 = vmax.f32 %v2820_v7, %v2821_v17 }
 0x1ec   : > { %v4996_v18 = vadd.f32 %v2333_v24, %v2237_v56  ;;  %2460 = vrot.lane.b32.xlu0 %v4993_v5, %s3830_s28  ;;  %v2838_v43 = vsel %vm1877_vm0, %v4993_v5, -inf }
 0x1ee   : > { %2462 = vrot.lane.b32.xlu1 %v4996_v18, %s3830_s28  ;;  %v2839_v36 = vsel %vm1877_vm0, %v4996_v18, -inf }
 0x1ef   : > { %v3484_v9 = vpop.f32.mrb[12].mxu0  ;;  %v2840_v61 = vmax.f32 %v2838_v43, %v2839_v36 }
 0x1f0   : > { %v3485_v37 = vpop.f32.mrb[13].mxu0 }
 0x1f1   : > { %v3486_v50 = vadd.f32 %v3485_v37, %v3484_v9  ;;  %v3487_v23 = vpop.f32.mrb[14].mxu0 }
 0x1f2   : > { %v3488_v39 = vpop.f32.mrb[15].mxu0 }
 0x1f3   : > { %v2242_v1 = vadd.f32 %v3486_v50, %v4949_v48  ;;  %v3489_v3 = vadd.f32 %v3488_v39, %v3487_v23 }
 0x1f5   : > { %v2245_v33 = vadd.f32 %v3489_v3, %v4949_v48  ;;  %v5005_v29 = vadd.f32 %v4942_v31, %v2242_v1 }
 0x1f7   : > { %2464 = vrot.lane.b32.xlu0 %v5005_v29, %s3830_s28  ;;  %v5010_v51 = vadd.f32 %v4944_v19, %v2245_v33  ;;  %v2841_v33 = vrot.slane %v2840_v61, 4 }
 0x1f9   : > { %2466 = vrot.lane.b32.xlu1 %v5010_v51, %s3830_s28  ;;  %v2848_v10 = vsel %vm1877_vm0, %v5010_v51, -inf }
 0x203   : > { %v3490_v58 = vpop.f32.mrb[16].mxu0 }
 0x204   : > { %v3491_v30 = vpop.f32.mrb[17].mxu0 }
 0x205   : > { %v3492_v27 = vadd.f32 %v3491_v30, %v3490_v58  ;;  %v3493_v25 = vpop.f32.mrb[18].mxu0  ;;  %v2823_v30 = vrot.slane %v2822_v55, 4 }
 0x206   : > { %v3494_v28 = vpop.f32.mrb[19].mxu0 }
 0x207   : > { %v3495_v42 = vadd.f32 %v3494_v28, %v3493_v25  ;;  %v2250_v38 = vadd.f32 %v3492_v27, %v4949_v48 }
 0x209   : > { %v5015_v52 = vadd.f32 %v2346_v8, %v2250_v38  ;;  %v2253_v31 = vadd.f32 %v3495_v42, %v4949_v48  ;;  %v2842_v38 = vmax.f32 %v2840_v61, %v2841_v33 }
 0x20b   : > { %v5018_v44 = vadd.f32 %v2349_v40, %v2253_v31  ;;  %2468 = vrot.lane.b32.xlu0 %v5015_v52, %s3830_s28  ;;  %v2856_v9 = vsel %vm1877_vm0, %v5015_v52, -inf }
 0x20d   : > { %2470 = vrot.lane.b32.xlu1 %v5018_v44, %s3830_s28  ;;  %v2857_v57 = vsel %vm1877_vm0, %v5018_v44, -inf }
 0x20e   : > { %v2858_v50 = vmax.f32 %v2856_v9, %v2857_v57 }
 0x210   : > { %v2859_v25 = vrot.slane %v2858_v50, 4 }
 0x21b   : > { %v3496_v19 = vpop.f32.mrb[20].mxu0 }
 0x21c   : > { %v3497_v24 = vpop.f32.mrb[21].mxu0 }
 0x21d   : > { %v3498_v53 = vadd.f32 %v3497_v24, %v3496_v19  ;;  %v3499_v2 = vpop.f32.mrb[22].mxu0  ;;  %v2824_v19 = vmax.f32 %v2822_v55, %v2823_v30 }
 0x21e   : > { %v3500_v59 = vpop.f32.mrb[23].mxu0 }
 0x21f   : > { %v2258_v13 = vadd.f32 %v3498_v53, %v4949_v48  ;;  %v3501_v41 = vadd.f32 %v3500_v59, %v3499_v2  ;;  %v2860_v53 = vmax.f32 %v2858_v50, %v2859_v25 }
 0x221   : > { %v2261_v49 = vadd.f32 %v3501_v41, %v4949_v48  ;;  %v5027_v20 = vadd.f32 %v4959_v34, %v2258_v13  ;;  %v2843_v13 = vrot.slane %v2842_v38, 2 }
 0x223   : > { %2472 = vrot.lane.b32.xlu0 %v5027_v20, %s3830_s28  ;;  %v5032_v54 = vadd.f32 %v4963_v32, %v2261_v49  ;;  %v2830_v32 = vsel %vm1877_vm0, %v4975_v21, -inf  ;;  %v2865_v23 = vsel %vm1877_vm0, %v5027_v20, -inf  ;;  %v2844_v36 = vmax.f32 %v2842_v38, %v2843_v13 }
 0x225   : > { %2474 = vrot.lane.b32.xlu1 %v5032_v54, %s3830_s28  ;;  %v2866_v22 = vsel %vm1877_vm0, %v5032_v54, -inf  ;;  %v2845_v55 = vrot.slane %v2844_v36, 1 }
 0x226   : > { %v2867_v1 = vmax.f32 %v2865_v23, %v2866_v22 }
 0x227   : > { %v2846_v33 = vmax.f32 %v2844_v36, %v2845_v55  ;;  %v2377_v55 = vlaneseq }
 0x228   : > { %v2868_v42 = vrot.slane %v2867_v1, 4 }
 0x22a   : > { %v2869_v59 = vmax.f32 %v2867_v1, %v2868_v42 }
 0x22e   : > { %v3502_v62 = vpop.f32.mrb[24].mxu0 }
 0x22f   : > { %v3503_v16 = vpop.f32.mrb[25].mxu0 }
 0x230   : > { %v3504_v8 = vadd.f32 %v3503_v16, %v3502_v62  ;;  %v3505_v11 = vpop.f32.mrb[26].mxu0  ;;  %v2825_v62 = vrot.slane %v2824_v19, 2 }
 0x231   : > { %v3506_v46 = vpop.f32.mrb[27].mxu0 }
 0x232   : > { %v3507_v35 = vadd.f32 %v3506_v46, %v3505_v11  ;;  %v2266_v40 = vadd.f32 %v3504_v8, %v4949_v48  ;;  %v2861_v11 = vrot.slane %v2860_v53, 2 }
 0x234   : > { %v5038_v34 = vadd.f32 %v4979_v47, %v2266_v40  ;;  %v2269_v60 = vadd.f32 %v3507_v35, %v4949_v48  ;;  %v2831_v47 = vmax.f32 %v2829_v45, %v2830_v32  ;;  %v2862_v57 = vmax.f32 %v2860_v53, %v2861_v11 }
 0x236   : > { %v5041_v0 = vadd.f32 %v2365_v4, %v2269_v60  ;;  %2476 = vrot.lane.b32.xlu0 %v5038_v34, %s3830_s28  ;;  %v2847_v4 = vsel %vm1877_vm0, %v5005_v29, -inf  ;;  %v2832_v39 = vrot.slane %v2831_v47, 4  ;;  %v2874_v3 = vsel %vm1877_vm0, %v5038_v34, -inf }
 0x237   : > { %v2849_v56 = vmax.f32 %v2847_v4, %v2848_v10  ;;  %v2870_v60 = vrot.slane %v2869_v59, 2  ;;  %v2863_v23 = vrot.slane %v2862_v57, 1 }
 0x238   : > { %2478 = vrot.lane.b32.xlu1 %v5041_v0, %s3830_s28  ;;  %v2875_v37 = vsel %vm1877_vm0, %v5041_v0, -inf  ;;  %v2833_v28 = vmax.f32 %v2831_v47, %v2832_v39  ;;  %v2826_v47 = vmax.f32 %v2824_v19, %v2825_v62 }
 0x239   : > { %v2876_v58 = vmax.f32 %v2874_v3, %v2875_v37  ;;  %v2850_v27 = vrot.slane %v2849_v56, 4  ;;  %v2871_v22 = vmax.f32 %v2869_v59, %v2870_v60  ;;  %v2864_v25 = vmax.f32 %v2862_v57, %v2863_v23 }
 0x23a   : > { %v2834_v2 = vrot.slane %v2833_v28, 2  ;;  %v2827_v37 = vrot.slane %v2826_v47, 1 }
 0x23b   : > { %v2877_v31 = vrot.slane %v2876_v58, 4  ;;  %v2851_v24 = vmax.f32 %v2849_v56, %v2850_v27  ;;  %v2872_v1 = vrot.slane %v2871_v22, 1  ;;  %v2908_v59 = vpack.c.bf16 %v2864_v25, %v2864_v25 }
 0x23c   : > { %v2835_v40 = vmax.f32 %v2833_v28, %v2834_v2  ;;  %v2828_v30 = vmax.f32 %v2826_v47, %v2827_v37 }
 0x23d   : > { %v2878_v41 = vmax.f32 %v2876_v58, %v2877_v31  ;;  %v2852_v16 = vrot.slane %v2851_v24, 2  ;;  %v2873_v42 = vmax.f32 %v2871_v22, %v2872_v1  ;;  %v2906_v31 = vpack.c.bf16 %v2846_v33, %v2846_v33 }
 0x23e   : > { %v2836_v4 = vrot.slane %v2835_v40, 1 }
 0x23f   : > { %v2879_v17 = vrot.slane %v2878_v41, 2  ;;  %v2853_v43 = vmax.f32 %v2851_v24, %v2852_v16  ;;  %v2904_v24 = vpack.c.bf16 %v2828_v30, %v2828_v30  ;;  %v2926_v62 = vunpack.c.l.b16 %v2906_v31 }
 0x241   : > { %v2880_v56 = vmax.f32 %v2878_v41, %v2879_v17  ;;  %v2854_v50 = vrot.slane %v2853_v43, 1  ;;  %v2909_v41 = vpack.c.bf16 %v2873_v42, %v2873_v42 }
 0x243   : > { %v2881_v58 = vrot.slane %v2880_v56, 1  ;;  %v2929_v60 = vunpack.c.l.b16 %v2909_v41 }
 0x245   : > { %v2882_v19 = vmax.f32 %v2880_v56, %v2881_v58  ;;  %v5102_v56 = vshrl.u32 %v2377_v55, 7 }
 0x247   : > { %v2910_v16 = vpack.c.bf16 %v2882_v19, %v2882_v19  ;;  %v5110_v23 = vadd.s32 8, %v5102_v56 }
 0x249   : > { %v2930_v17 = vunpack.c.l.b16 %v2910_v16 }
 0x24a   : > { %v3508_v49 = vpop.f32.mrb[28].mxu0 }
 0x24b   : > { %v3509_v8 = vpop.f32.mrb[29].mxu0 }
 0x24c   : > { %v3510_v46 = vadd.f32 %v3509_v8, %v3508_v49  ;;  %v3511_v35 = vpop.f32.mrb[30].mxu0  ;;  %v2924_v8 = vunpack.c.l.b16 %v2904_v24 }
 0x24d   : > { %v3512_v32 = vpop.f32.mrb[31].mxu0 }
 0x24e   : > { %v2274_v45 = vadd.f32 %v3510_v46, %v4949_v48  ;;  %v3513_v10 = vadd.f32 %v3512_v32, %v3511_v35  ;;  %v2928_v35 = vunpack.c.l.b16 %v2908_v59  ;;  %v2453_v37 = vpop.permute.xlu0 %2452 }
 0x250   : > { %v2277_v7 = vadd.f32 %v3513_v10, %v4949_v48  ;;  %v5078_v61 = vadd.f32 %v4977_v15, %v2274_v45  ;;  %v2837_v15 = vmax.f32 %v2835_v40, %v2836_v4 }
 0x252   : > { %2480 = vrot.lane.b32.xlu0 %v5078_v61, %s3830_s28  ;;  %v5083_v9 = vadd.f32 %v4984_v63, %v2277_v7  ;;  %v2883_v39 = vsel %vm1877_vm0, %v5078_v61, -inf  ;;  %v2855_v63 = vmax.f32 %v2853_v43, %v2854_v50  ;;  %v2905_v28 = vpack.c.bf16 %v2837_v15, %v2837_v15  ;;  %v2455_v50 = vpop.permute.xlu1 %2454 }
 0x254   : > { %2482 = vrot.lane.b32.xlu1 %v5083_v9, %s3830_s28  ;;  %v2884_v48 = vsel %vm1877_vm0, %v5083_v9, -inf  ;;  %v2907_v53 = vpack.c.bf16 %v2855_v63, %v2855_v63  ;;  %v2925_v13 = vunpack.c.l.b16 %v2905_v28  ;;  %s3261_s28 = sshll.u32 %s3906_s13, 3 }
 0x255   : > { %v2885_v3 = vmax.f32 %v2883_v39, %v2884_v48  ;;  %p368_p6 = scmp.lt.s32.totalorder %s3261_s28, 15 }
 0x256   : > { %v2927_v11 = vunpack.c.l.b16 %v2907_v53  ;;  %v2933_v40 = vsel %vm2932_vm12, %v2925_v13, %v2924_v8  ;;  %v2457_v39 = vpop.permute.xlu0 %2456 }
 0x257   : > { %v2886_v27 = vrot.slane %v2885_v3, 4  ;;  %v2935_v36 = vsel %vm2934_vm13, %v2926_v62, %v2933_v40  ;;  %s5454_s28 = smov (!%p368_p6, %s3261_s28), 15 }
 0x258   : > { %v2937_v45 = vsel %vm2936_vm14, %v2927_v11, %v2935_v36  ;;  %s5107_s24 = scalar_lea.vmem %s5386_s1, %s5454_s28  ;;  %v2459_v48 = vpop.permute.xlu1 %2458  ;;  %s5341_s28 = scalar_lea.hbm %s5394_s9, %s3429_s20 }
 0x259   : > { %v2887_v38 = vmax.f32 %v2885_v3, %v2886_v27  ;;  %v2939_v47 = vsel %vm1352_vm7, %v2928_v35, %v2937_v45  ;;  %v3409_v15 = vld [vmem:[%s5107_s24] ss:$0 sm:$0xff]  ;;  %v3410_v1 = vld [vmem:[%s5107_s24 + $0x1] ss:$0 sm:$0xff]  ;;  %v3411_v30 = vld [vmem:[%s5107_s24 + $0x2] ss:$0 sm:$0xff] }
 0x25a   : > { %v2941_v43 = vsel %vm2940_vm2, %v2929_v60, %v2939_v47  ;;  %vm2421_vm8 = vcmp.lt.s32.totalorder %v5110_v23, %v3409_v15  ;;  %vm2420_vm9 = vcmp.lt.s32.totalorder %v5102_v56, %v3409_v15  ;;  %vm2423_vm10 = vcmp.lt.s32.totalorder %v5110_v23, %v3410_v1  ;;  %v3412_v25 = vld [vmem:[%s5107_s24 + $0x3] ss:$0 sm:$0xff]  ;;  %v3413_v24 = vld [vmem:[%s5107_s24 + $0x4] ss:$0 sm:$0xff] }
 0x25b   : > { %v2888_v2 = vrot.slane %v2887_v38, 2  ;;  %v2943_v7 = vsel %vm2942_vm3, %v2930_v17, %v2941_v43  ;;  %v5117_v58 = vsel %vm2421_vm8, %v2455_v50, -1e+09  ;;  %vm2422_vm11 = vcmp.lt.s32.totalorder %v5102_v56, %v3410_v1  ;;  %v3653_v15 = vld [vmem:[%s5389_s4] sm:$0xff]  }
 0x25c   : > { %vm2425_vm15 = vcmp.lt.s32.totalorder %v5110_v23, %v3411_v30  ;;  %v5122_v63 = vsel %vm2420_vm9, %v2453_v37, -1e+09  ;;  %v5124_v27 = vsel %vm2423_vm10, %v2459_v48, -1e+09  ;;  %v2517_v28 = vsel %vm1877_vm0, %v5117_v58, -inf }
 0x25d   : > { %v2889_v49 = vmax.f32 %v2887_v38, %v2888_v2  ;;  %vm2424_vm1 = vcmp.lt.s32.totalorder %v5102_v56, %v3411_v30  ;;  %vm2427_vm4 = vcmp.lt.s32.totalorder %v5110_v23, %v3412_v25  ;;  %v5131_v31 = vsel %vm2422_vm11, %v2457_v39, -1e+09 }
 0x25e   : > { %v2461_v3 = vpop.permute.xlu0 %2460  ;;  %v2516_v53 = vsel %vm1877_vm0, %v5122_v63, -inf  ;;  %v2526_v2 = vsel %vm1877_vm0, %v5124_v27, -inf  ;;  %vm2426_vm8 = vcmp.lt.s32.totalorder %v5102_v56, %v3412_v25  ;;  %vm2429_vm9 = vcmp.lt.s32.totalorder %v5110_v23, %v3413_v24 }
 0x25f   : > { %v2890_v46 = vrot.slane %v2889_v49, 1  ;;  %v2518_v59 = vmax.f32 %v2516_v53, %v2517_v28  ;;  %v5142_v13 = vsel %vm2424_vm1, %v2461_v3, -1e+09  ;;  %vm2428_vm10 = vcmp.lt.s32.totalorder %v5102_v56, %v3413_v24  ;;  %v3414_v24 = vld [vmem:[%s5107_s24 + $0x5] ss:$0 sm:$0xff] }
 0x260   : > { %v2463_v33 = vpop.permute.xlu1 %2462  ;;  %v2534_v40 = vsel %vm1877_vm0, %v5142_v13, -inf  ;;  %vm2430_vm11 = vcmp.lt.s32.totalorder %v5102_v56, %v3414_v24 }
 0x261   : > { %v2891_v32 = vmax.f32 %v2889_v49, %v2890_v46  ;;  %v5133_v19 = vsel %vm2425_vm15, %v2463_v33, -1e+09  ;;  %v2525_v49 = vsel %vm1877_vm0, %v5131_v31, -inf  ;;  %v3654_v33 = vld [vmem:[%s5389_s4 + $0x8] sm:$0xff]   ;;  %vm2431_vm15 = vcmp.lt.s32.totalorder %v5110_v23, %v3414_v24 }
 0x262   : > { %v2535_v62 = vsel %vm1877_vm0, %v5133_v19, -inf  ;;  %v2527_v11 = vmax.f32 %v2525_v49, %v2526_v2 }
 0x263   : > { %v2911_v10 = vpack.c.bf16 %v2891_v32, %v2891_v32  ;;  %v2519_v32 = vrot.slane %v2518_v59, 4  ;;  %v2536_v36 = vmax.f32 %v2534_v40, %v2535_v62 }
 0x264   : > { %v2528_v47 = vrot.slane %v2527_v11, 4 }
 0x265   : > { %v2931_v57 = vunpack.c.l.b16 %v2911_v10 }
 0x266   : > { %v2529_v55 = vmax.f32 %v2527_v11, %v2528_v47 }
 0x267   : > { %v2945_v4 = vsel %vm2944_vm6, %v2931_v57, %v2943_v7  ;;  %v2520_v7 = vmax.f32 %v2518_v59, %v2519_v32 }
 0x268   : > { %v2946_v22 = vpack.c.b16 %v2945_v4, %v2945_v4  ;;  %v2537_v4 = vrot.slane %v2536_v36, 4  ;;  %v2530_v1 = vrot.slane %v2529_v55, 2 }
 0x269   : > { %v2465_v42 = vpop.permute.xlu0 %2464  ;;  %v2521_v50 = vrot.slane %v2520_v7, 2 }
 0x26a   : > { %3558 = vmatmul.mubr.msk.bf16.vlgmr.msra.gmra.mrb[16].mxu1 %vm1877_vm0, %v2946_v22  ;;  %v5151_v46 = vsel %vm2426_vm8, %v2465_v42, -1e+09  ;;  %v2538_v39 = vmax.f32 %v2536_v36, %v2537_v4  ;;  %v2531_v42 = vmax.f32 %v2529_v55, %v2530_v1 }
 0x26b   : > { %3565 = vmatprep.mubr.msk.bf16.mxu1 %vm3833_vm5, %v5404_v26  ;;  %v2467_v38 = vpop.permute.xlu1 %2466  ;;  %v2543_v45 = vsel %vm1877_vm0, %v5151_v46, -inf  ;;  %3562 = vmatpush3.bf16.msra.mxu1 %v3653_v15  ;;  %v2522_v30 = vmax.f32 %v2520_v7, %v2521_v50 }
 0x26c   : > { %v5144_v41 = vsel %vm2427_vm4, %v2467_v38, -1e+09  ;;  %3563 = vmatprep.subr.bf16.mxu1 %v5404_v26  ;;  %v2539_v25 = vrot.slane %v2538_v39, 2  ;;  %v2532_v49 = vrot.slane %v2531_v42, 1 }
 0x26d   : > { %v2544_v60 = vsel %vm1877_vm0, %v5144_v41, -inf  ;;  %v2523_v53 = vrot.slane %v2522_v30, 1 }
 0x26e   : > { %v2545_v43 = vmax.f32 %v2543_v45, %v2544_v60  ;;  %v2540_v2 = vmax.f32 %v2538_v39, %v2539_v25  ;;  %v2533_v36 = vmax.f32 %v2531_v42, %v2532_v49 }
 0x26f   : > { %3564 = vmatpush3.bf16.msra.mxu1 %v3654_v33 }
 0x270   : > { %v2546_v37 = vrot.slane %v2545_v43, 4  ;;  %3569 = vmatprep.subr.bf16.mxu1 %v5404_v26  ;;  %v2541_v11 = vrot.slane %v2540_v2, 1 }
 0x272   : > { %v2547_v3 = vmax.f32 %v2545_v43, %v2546_v37  ;;  %v2542_v7 = vmax.f32 %v2540_v2, %v2541_v11  ;;  %v2590_v37 = vsub.f32 %v5131_v31, %v2533_v36  ;;  %v3415_v2 = vld [vmem:[%s5107_s24 + $0x6] ss:$0 sm:$0xff] }
 0x273   : > { %vm2432_vm1 = vcmp.lt.s32.totalorder %v5102_v56, %v3415_v2  ;;  %vm2433_vm4 = vcmp.lt.s32.totalorder %v5110_v23, %v3415_v2 }
 0x274   : > { %v2548_v38 = vrot.slane %v2547_v3, 2  ;;  %v2592_v1 = vsub.f32 %v5142_v13, %v2542_v7  ;;  %v2608_v25 = vmul.f32 1.442695, %v2590_v37 }
 0x276   : > { %v2549_v62 = vmax.f32 %v2547_v3, %v2548_v38  ;;  %v2612_v38 = vmul.f32 1.442695, %v2592_v1 }
 0x278   : > { %v2550_v45 = vrot.slane %v2549_v62, 1 }
 0x27a   : > { %v2551_v50 = vmax.f32 %v2549_v62, %v2550_v45 }
 0x27c   : > { %v2595_v31 = vsub.f32 %v5144_v41, %v2551_v50 }
 0x27d   : > { %v2469_v16 = vpop.permute.xlu0 %2468 }
 0x27e   : > { %v5159_v17 = vsel %vm2428_vm10, %v2469_v16, -1e+09  ;;  %v2618_v49 = vmul.f32 1.442695, %v2595_v31 }
 0x27f   : > { %v2471_v8 = vpop.permute.xlu1 %2470  ;;  %v2552_v57 = vsel %vm1877_vm0, %v5159_v17, -inf }
 0x280   : > { %v5153_v35 = vsel %vm2429_vm9, %v2471_v8, -1e+09  ;;  %v2524_v8 = vmax.f32 %v2522_v30, %v2523_v53 }
 0x281   : > { %v2553_v10 = vsel %vm1877_vm0, %v5153_v35, -inf }
 0x282   : > { %v2554_v22 = vmax.f32 %v2552_v57, %v2553_v10  ;;  %v2588_v57 = vsub.f32 %v5122_v63, %v2524_v8  ;;  %v2589_v55 = vsub.f32 %v5117_v58, %v2524_v8  ;;  %v2593_v63 = vsub.f32 %v5133_v19, %v2542_v7 }
 0x284   : > { %v2555_v48 = vrot.slane %v2554_v22, 4  ;;  %v2604_v15 = vmul.f32 1.442695, %v2588_v57  ;;  %v2606_v30 = vmul.f32 1.442695, %v2589_v55 }
 0x285   : > { %v2614_v13 = vmul.f32 1.442695, %v2593_v63 }
 0x286   : > { %v2556_v28 = vmax.f32 %v2554_v22, %v2555_v48  ;;  %v2591_v48 = vsub.f32 %v5124_v27, %v2533_v36  ;;  %3657 = vpow2.f32 %v2604_v15 }
 0x287   : > { %3659 = vpow2.f32 %v2606_v30 }
 0x288   : > { %v2557_v59 = vrot.slane %v2556_v28, 2  ;;  %v2610_v58 = vmul.f32 1.442695, %v2591_v48  ;;  %3661 = vpow2.f32 %v2608_v25 }
 0x28a   : > { %v2558_v40 = vmax.f32 %v2556_v28, %v2557_v59  ;;  %v2594_v28 = vsub.f32 %v5151_v46, %v2551_v50  ;;  %3663 = vpow2.f32 %v2610_v58 }
 0x28b   : > { %3665 = vpow2.f32 %v2612_v38 }
 0x28c   : > { %v2559_v4 = vrot.slane %v2558_v40, 1  ;;  %v2616_v59 = vmul.f32 1.442695, %v2594_v28  ;;  %3667 = vpow2.f32 %v2614_v13 }
 0x28e   : > { %v2560_v3 = vmax.f32 %v2558_v40, %v2559_v4  ;;  %3669 = vpow2.f32 %v2616_v59 }
 0x28f   : > { %3671 = vpow2.f32 %v2618_v49 }
 0x290   : > { %v2596_v27 = vsub.f32 %v5159_v17, %v2560_v3  ;;  %v2597_v53 = vsub.f32 %v5153_v35, %v2560_v3  ;;  %v5193_v45 = vpop.eup %3657 }
 0x291   : > { %v2636_v1 = vsel %vm1877_vm0, %v5193_v45, 0.0 }
 0x292   : > { %v2620_v46 = vmul.f32 1.442695, %v2596_v27  ;;  %v2622_v41 = vmul.f32 1.442695, %v2597_v53 }
 0x294   : > { %3673 = vpow2.f32 %v2620_v46 }
 0x295   : > { %v2473_v16 = vpop.permute.xlu0 %2472  ;;  %3675 = vpow2.f32 %v2622_v41 }
 0x296   : > { %v2510_v60 = vsel %vm2430_vm11, %v2473_v16, -1e+09 }
 0x297   : > { %v2475_v32 = vpop.permute.xlu1 %2474  ;;  %v2561_v47 = vsel %vm1877_vm0, %v2510_v60, -inf }
 0x298   : > { %v2511_v10 = vsel %vm2431_vm15, %v2475_v32, -1e+09 }
 0x299   : > { %v2562_v43 = vsel %vm1877_vm0, %v2511_v10, -inf }
 0x29a   : > { %v2563_v22 = vmax.f32 %v2561_v47, %v2562_v43 }
 0x29c   : > { %v2564_v39 = vrot.slane %v2563_v22, 4 }
 0x29e   : > { %v2565_v33 = vmax.f32 %v2563_v22, %v2564_v39 }
 0x2a0   : > { %v2566_v42 = vrot.slane %v2565_v33, 2 }
 0x2a2   : > { %v2567_v24 = vmax.f32 %v2565_v33, %v2566_v42 }
 0x2a4   : > { %v2568_v19 = vrot.slane %v2567_v24, 1 }
 0x2a6   : > { %v2569_v62 = vmax.f32 %v2567_v24, %v2568_v19 }
 0x2a8   : > { %v2598_v17 = vsub.f32 %v2510_v60, %v2569_v62  ;;  %v2599_v16 = vsub.f32 %v2511_v10, %v2569_v62  ;;  %v2477_v8 = vpop.permute.xlu0 %2476  ;;  %v5197_v60 = vpop.eup %3659 }
 0x2a9   : > { %v2512_v35 = vsel %vm2432_vm1, %v2477_v8, -1e+09  ;;  %v5199_v57 = vpop.eup %3661  ;;  %v2637_v3 = vsel %vm1877_vm0, %v5197_v60, 0.0 }
 0x2aa   : > { %v2624_v11 = vmul.f32 1.442695, %v2598_v17  ;;  %v2626_v40 = vmul.f32 1.442695, %v2599_v16  ;;  %v2479_v32 = vpop.permute.xlu1 %2478  ;;  %v2570_v47 = vsel %vm1877_vm0, %v2512_v35, -inf  ;;  %v5201_v7 = vpop.eup %3663  ;;  %v2645_v30 = vsel %vm1877_vm0, %v5199_v57, 0.0 }
 0x2ab   : > { %v2513_v36 = vsel %vm2433_vm4, %v2479_v32, -1e+09  ;;  %v5203_v22 = vpop.eup %3665  ;;  %v2646_v63 = vsel %vm1877_vm0, %v5201_v7, 0.0  ;;  %v2638_v58 = vadd.f32 %v2637_v3, %v2636_v1 }
 0x2ac   : > { %3677 = vpow2.f32 %v2624_v11  ;;  %v2571_v43 = vsel %vm1877_vm0, %v2513_v36, -inf  ;;  %v5205_v55 = vpop.eup %3667  ;;  %v2654_v31 = vsel %vm1877_vm0, %v5203_v22, 0.0  ;;  %v2647_v24 = vadd.f32 %v2646_v63, %v2645_v30 }
 0x2ad   : > { %3679 = vpow2.f32 %v2626_v40  ;;  %v2572_v10 = vmax.f32 %v2570_v47, %v2571_v43  ;;  %v5207_v50 = vpop.eup %3669  ;;  %v2655_v38 = vsel %vm1877_vm0, %v5205_v55, 0.0  ;;  %v2639_v41 = vrot.slane %v2638_v58, 4 }
 0x2ae   : > { %v5209_v39 = vpop.eup %3671  ;;  %v2663_v13 = vsel %vm1877_vm0, %v5207_v50, 0.0  ;;  %v2656_v49 = vadd.f32 %v2655_v38, %v2654_v31  ;;  %v2648_v11 = vrot.slane %v2647_v24, 4 }
 0x2af   : > { %v2573_v4 = vrot.slane %v2572_v10, 4  ;;  %v5211_v15 = vpop.eup %3673  ;;  %v2664_v53 = vsel %vm1877_vm0, %v5209_v39, 0.0 }
 0x2b0   : > { %v5217_v33 = vpop.eup %3675  ;;  %v2672_v2 = vsel %vm1877_vm0, %v5211_v15, 0.0  ;;  %v2665_v17 = vadd.f32 %v2664_v53, %v2663_v13  ;;  %v2649_v1 = vadd.f32 %v2648_v11, %v2647_v24 }
 0x2b1   : > { %v2574_v37 = vmax.f32 %v2572_v10, %v2573_v4  ;;  %v2673_v59 = vsel %vm1877_vm0, %v5217_v33, 0.0  ;;  %v2657_v10 = vrot.slane %v2656_v49, 4  ;;  %v3416_v4 = vld [vmem:[%s5107_s24 + $0x7] ss:$0 sm:$0xff]  ;;  %s3260_s24 = sshll.u32 %s3989_s29, 3 }
 0x2b2   : > { %v2674_v40 = vadd.f32 %v2673_v59, %v2672_v2  ;;  %vm2434_vm8 = vcmp.lt.s32.totalorder %v5102_v56, %v3416_v4  ;;  %vm2435_vm9 = vcmp.lt.s32.totalorder %v5110_v23, %v3416_v4  ;;  %v2650_v31 = vrot.slane %v2649_v1, 2  ;;  %s365_s14 = scalar_lea.vmem [#allocation6], %s3260_s24  ;;  %s3761_s24 = sshll.u32 %s3834_s23, 4  ;;  %s3762_s24 = int_to_ptr.vmem [resolvable:$false] %s3761_s24 }
 0x2b3   : > { %v2575_v48 = vrot.slane %v2574_v37, 2  ;;  %v2658_v63 = vadd.f32 %v2657_v10, %v2656_v49  ;;  %s3172_s17 = sshll.u32 %s365_s14, 4  ;;  %s3763_s16 = scalar_lea.vmem %s3762_s24, 256  ;;  %s5343_s17 = int_to_ptr.vmem [resolvable:$true] %s3172_s17 }
 0x2b4   : > { %v2675_v3 = vrot.slane %v2674_v40, 4  ;;  %v2651_v56 = vadd.f32 %v2650_v31, %v2649_v1  ;;  %s3757_s13 = scalar_lea.vmem %s5343_s17, 128  ;;  %p3764_p10 = scmp.lt.s32.totalorder %s5343_s17, %s3762_s24 }
 0x2b5   : > { %v2576_v25 = vmax.f32 %v2574_v37, %v2575_v48  ;;  %v2640_v37 = vadd.f32 %v2639_v41, %v2638_v58  ;;  %v2666_v48 = vrot.slane %v2665_v17, 4  ;;  %v2659_v58 = vrot.slane %v2658_v63, 2  ;;  %p3758_p11 = scmp.ne.s32.totalorder %s5343_s17, %s3757_s13  ;;  %p3765_p0 = scmp.lt.s32.totalorder %s3763_s16, %s3757_s13 }
 0x2b6   : > { %v5223_v28 = vpop.eup %3677  ;;  %v2676_v38 = vadd.f32 %v2675_v3, %v2674_v40 }
 0x2b7   : > { %v5225_v42 = vpop.eup %3679  ;;  %v2577_v27 = vrot.slane %v2576_v25, 1  ;;  %v2681_v46 = vsel %vm1877_vm0, %v5223_v28, 0.0  ;;  %p3759_p13 = pnand %p3758_p11, %p5446_p12  ;;  %p3766_p2 = por %p3765_p0, %p3764_p10 }
 0x2b8   : > { %v2682_v62 = vsel %vm1877_vm0, %v5225_v42, 0.0  ;;  %v2677_v49 = vrot.slane %v2676_v38, 2 }
 0x2b9   : > { %v2578_v19 = vmax.f32 %v2576_v25, %v2577_v27  ;;  %v2683_v32 = vadd.f32 %v2682_v62, %v2681_v46  ;;  %v2641_v25 = vrot.slane %v2640_v37, 2  ;;  %p3760_p8 = pneg %p3759_p13 }
 0x2ba   : > { %v2678_v10 = vadd.f32 %v2677_v49, %v2676_v38 }
 0x2bb   : > { %v2600_v16 = vsub.f32 %v2512_v35, %v2578_v19  ;;  %v2601_v8 = vsub.f32 %v2513_v36, %v2578_v19  ;;  %v2684_v30 = vrot.slane %v2683_v32, 4  ;;  %v2667_v35 = vadd.f32 %v2666_v48, %v2665_v17  ;;  %p3767_p4 = pnand %p3766_p2, %p3760_p8 }
 0x2bc   : > { %v2642_v59 = vadd.f32 %v2641_v25, %v2640_v37  ;;  %v2679_v31 = vrot.slane %v2678_v10, 1 }
 0x2bd   : > { %v2628_v47 = vmul.f32 1.442695, %v2600_v16  ;;  %v2630_v43 = vmul.f32 1.442695, %v2601_v8  ;;  %v2685_v13 = vadd.f32 %v2684_v30, %v2683_v32  ;;  %v2668_v24 = vrot.slane %v2667_v35, 2 }
 0x2be   : > { %v2660_v16 = vadd.f32 %v2659_v58, %v2658_v63  ;;  %v2643_v40 = vrot.slane %v2642_v59, 1  ;;  %v2680_v38 = vadd.f32 %v2679_v31, %v2678_v10 }
 0x2bf   : > { %3681 = vpow2.f32 %v2628_v47  ;;  %v2686_v17 = vrot.slane %v2685_v13, 2  ;;  %v2669_v32 = vadd.f32 %v2668_v24, %v2667_v35 }
 0x2c0   : > { %3683 = vpow2.f32 %v2630_v43  ;;  %v2652_v43 = vrot.slane %v2651_v56, 1  ;;  %v2661_v1 = vrot.slane %v2660_v16, 1  ;;  %v2644_v25 = vadd.f32 %v2643_v40, %v2642_v59 }
 0x2c1   : > { %v2687_v48 = vadd.f32 %v2686_v17, %v2685_v13 }
 0x2c2   : > { %v2653_v63 = vadd.f32 %v2652_v43, %v2651_v56  ;;  %3685 = vrcp.f32 %v2644_v25 }
 0x2c4   : > { %v2481_v36 = vpop.permute.xlu0 %2480  ;;  %3687 = vrcp.f32 %v2653_v63 }
 0x2c5   : > { %v2514_v27 = vsel %vm2434_vm8, %v2481_v36, -1e+09  ;;  %v2670_v36 = vrot.slane %v2669_v32, 1 }
 0x2c6   : > { %v2483_v53 = vpop.permute.xlu1 %2482  ;;  %v2579_v19 = vsel %vm1877_vm0, %v2514_v27, -inf }
 0x2c7   : > { %v2515_v2 = vsel %vm2435_vm9, %v2483_v53, -1e+09  ;;  %v2671_v26 = vadd.f32 %v2670_v36, %v2669_v32 }
 0x2c8   : > { %v2580_v46 = vsel %vm1877_vm0, %v2515_v2, -inf }
 0x2c9   : > { %v2581_v62 = vmax.f32 %v2579_v19, %v2580_v46  ;;  %v5248_v41 = vpop.eup %3681  ;;  %v2688_v19 = vrot.slane %v2687_v48, 1  ;;  %v2662_v46 = vadd.f32 %v2661_v1, %v2660_v16 }
 0x2ca   : > { %v5250_v23 = vpop.eup %3683  ;;  %v2690_v8 = vsel %vm1877_vm0, %v5248_v41, 0.0 }
 0x2cb   : > { %v2582_v11 = vrot.slane %v2581_v62, 4  ;;  %v2691_v47 = vsel %vm1877_vm0, %v5250_v23, 0.0  ;;  %v2689_v13 = vadd.f32 %v2688_v19, %v2687_v48  ;;  %3689 = vrcp.f32 %v2662_v46 }
 0x2cc   : > { %v2692_v4 = vadd.f32 %v2691_v47, %v2690_v8  ;;  %3691 = vrcp.f32 %v2671_v26  ;;  %v3686_v16 = vpop.eup %3685 }
 0x2cd   : > { %v2583_v37 = vmax.f32 %v2581_v62, %v2582_v11  ;;  %3693 = vrcp.f32 %v2680_v38  ;;  %v2716_v43 = vmul.f32 %v3686_v16, %v5193_v45 }
 0x2ce   : > { %v2693_v3 = vrot.slane %v2692_v4, 4  ;;  %3695 = vrcp.f32 %v2689_v13  ;;  %v3688_v32 = vpop.eup %3687 }
 0x2cf   : > { %v2584_v30 = vrot.slane %v2583_v37, 2 }
 0x2d0   : > { %v2694_v53 = vadd.f32 %v2693_v3, %v2692_v4  ;;  %v2717_v4 = vmul.f32 %v3686_v16, %v5197_v60  ;;  %v2732_v3 = vmul.f32 %v2716_v43, %v4952_v12 }
 0x2d1   : > { %v2585_v58 = vmax.f32 %v2583_v37, %v2584_v30 }
 0x2d2   : > { %v2695_v35 = vrot.slane %v2694_v53, 2  ;;  %v2733_v45 = vmul.f32 %v2717_v4, %v4955_v6 }
 0x2d3   : > { %v2586_v24 = vrot.slane %v2585_v58, 1 }
 0x2d4   : > { %v2696_v49 = vadd.f32 %v2695_v35, %v2694_v53 }
 0x2d5   : > { %v2587_v62 = vmax.f32 %v2585_v58, %v2586_v24  ;;  %v3690_v47 = vpop.eup %3689  ;;  %v2749_v58 = vsel %vm1877_vm0, %v2733_v45, 0.0 }
 0x2d6   : > { %v2697_v17 = vrot.slane %v2696_v49, 1  ;;  %v3692_v10 = vpop.eup %3691  ;;  %v2720_v48 = vmul.f32 %v3690_v47, %v5203_v22  ;;  %v2721_v30 = vmul.f32 %v3690_v47, %v5205_v55 }
 0x2d7   : > { %v2602_v8 = vsub.f32 %v2514_v27, %v2587_v62  ;;  %v2603_v59 = vsub.f32 %v2515_v2, %v2587_v62  ;;  %v2718_v27 = vmul.f32 %v3688_v32, %v5199_v57  ;;  %v3694_v26 = vpop.eup %3693  ;;  %v2719_v2 = vmul.f32 %v3688_v32, %v5201_v7 }
 0x2d8   : > { %v2698_v56 = vadd.f32 %v2697_v17, %v2696_v49  ;;  %v3696_v37 = vpop.eup %3695  ;;  %v2722_v60 = vmul.f32 %v3692_v10, %v5207_v50  ;;  %v2723_v57 = vmul.f32 %v3692_v10, %v5209_v39  ;;  %v2724_v22 = vmul.f32 %v3694_v26, %v5211_v15 }
 0x2d9   : > { %v2632_v11 = vmul.f32 1.442695, %v2602_v8  ;;  %v2634_v40 = vmul.f32 1.442695, %v2603_v59  ;;  %v2734_v36 = vmul.f32 %v2718_v27, %v4967_v14  ;;  %v2735_v7 = vmul.f32 %v2719_v2, %v4975_v21 }
 0x2da   : > { %3697 = vrcp.f32 %v2698_v56  ;;  %v2725_v12 = vmul.f32 %v3694_v26, %v5217_v33  ;;  %v2736_v31 = vmul.f32 %v2720_v48, %v4993_v5  ;;  %v2726_v6 = vmul.f32 %v3696_v37, %v5223_v28 }
 0x2db   : > { %3699 = vpow2.f32 %v2632_v11  ;;  %v2727_v14 = vmul.f32 %v3696_v37, %v5225_v42  ;;  %v2737_v39 = vmul.f32 %v2721_v30, %v4996_v18  ;;  %v2748_v33 = vsel %vm1877_vm0, %v2732_v3, 0.0 }
 0x2dc   : > { %3701 = vpow2.f32 %v2634_v40  ;;  %v2738_v5 = vmul.f32 %v2722_v60, %v5005_v29  ;;  %v2739_v28 = vmul.f32 %v2723_v57, %v5010_v51  ;;  %v2757_v42 = vsel %vm1877_vm0, %v2734_v36, 0.0 }
 0x2dd   : > { %v2740_v19 = vmul.f32 %v2724_v22, %v5015_v52  ;;  %v2741_v46 = vmul.f32 %v2725_v12, %v5018_v44  ;;  %v2742_v35 = vmul.f32 %v2726_v6, %v5027_v20  ;;  %v2743_v24 = vmul.f32 %v2727_v14, %v5032_v54 }
 0x2de   : > { %v2767_v38 = vsel %vm1877_vm0, %v2737_v39, 0.0  ;;  %v2775_v52 = vsel %vm1877_vm0, %v2738_v5, 0.0  ;;  %v2776_v44 = vsel %vm1877_vm0, %v2739_v28, 0.0  ;;  %v2750_v20 = vadd.f32 %v2749_v58, %v2748_v33 }
 0x2df   : > { %v2784_v13 = vsel %vm1877_vm0, %v2740_v19, 0.0  ;;  %v2785_v17 = vsel %vm1877_vm0, %v2741_v46, 0.0  ;;  %v2793_v54 = vsel %vm1877_vm0, %v2742_v35, 0.0  ;;  %v2794_v56 = vsel %vm1877_vm0, %v2743_v24, 0.0 }
 0x2e0   : > { %v2786_v16 = vadd.f32 %v2785_v17, %v2784_v13  ;;  %v2795_v47 = vadd.f32 %v2794_v56, %v2793_v54  ;;  %v2751_v27 = vrot.slane %v2750_v20, 4 }
 0x2e2   : > { %v2787_v37 = vrot.slane %v2786_v16, 4  ;;  %v2752_v45 = vadd.f32 %v2751_v27, %v2750_v20 }
 0x2e4   : > { %v3698_v1 = vpop.eup %3697  ;;  %v2788_v60 = vadd.f32 %v2787_v37, %v2786_v16 }
 0x2e5   : > { %v5263_v25 = vpop.eup %3699  ;;  %v2728_v21 = vmul.f32 %v3698_v1, %v5248_v41  ;;  %v2729_v15 = vmul.f32 %v3698_v1, %v5250_v23  ;;  %v2758_v41 = vsel %vm1877_vm0, %v2735_v7, 0.0  ;;  %v2766_v23 = vsel %vm1877_vm0, %v2736_v31, 0.0 }
 0x2e6   : > { %v5269_v63 = vpop.eup %3701  ;;  %v2699_v55 = vsel %vm1877_vm0, %v5263_v25, 0.0  ;;  %v2759_v62 = vadd.f32 %v2758_v41, %v2757_v42  ;;  %v2768_v59 = vadd.f32 %v2767_v38, %v2766_v23  ;;  %v2796_v1 = vrot.slane %v2795_v47, 4 }
 0x2e7   : > { %v2700_v50 = vsel %vm1877_vm0, %v5269_v63, 0.0  ;;  %v2744_v29 = vmul.f32 %v2728_v21, %v5038_v34  ;;  %v2745_v51 = vmul.f32 %v2729_v15, %v5041_v0  ;;  %v2777_v34 = vadd.f32 %v2776_v44, %v2775_v52 }
 0x2e8   : > { %v2701_v53 = vadd.f32 %v2700_v50, %v2699_v55  ;;  %v2760_v32 = vrot.slane %v2759_v62, 4  ;;  %v2769_v10 = vrot.slane %v2768_v59, 4  ;;  %v2797_v7 = vadd.f32 %v2796_v1, %v2795_v47 }
 0x2e9   : > { %v2802_v0 = vsel %vm1877_vm0, %v2744_v29, 0.0  ;;  %v2803_v11 = vsel %vm1877_vm0, %v2745_v51, 0.0  ;;  %v2778_v26 = vrot.slane %v2777_v34, 4  ;;  %v2753_v55 = vrot.slane %v2752_v45, 2 }
 0x2ea   : > { %v2702_v18 = vrot.slane %v2701_v53, 4  ;;  %v2804_v4 = vadd.f32 %v2803_v11, %v2802_v0  ;;  %v2761_v48 = vadd.f32 %v2760_v32, %v2759_v62  ;;  %v2770_v3 = vadd.f32 %v2769_v10, %v2768_v59 }
 0x2eb   : > { %v2779_v36 = vadd.f32 %v2778_v26, %v2777_v34  ;;  %v2789_v6 = vrot.slane %v2788_v60, 2  ;;  %v2798_v50 = vrot.slane %v2797_v7, 2 }
 0x2ec   : > { %v2703_v49 = vadd.f32 %v2702_v18, %v2701_v53  ;;  %v2805_v30 = vrot.slane %v2804_v4, 4  ;;  %v2762_v57 = vrot.slane %v2761_v48, 2  ;;  %v2771_v22 = vrot.slane %v2770_v3, 2 }
 0x2ed   : > { %v2780_v31 = vrot.slane %v2779_v36, 2  ;;  %v2754_v53 = vadd.f32 %v2753_v55, %v2752_v45  ;;  %v2790_v58 = vadd.f32 %v2789_v6, %v2788_v60  ;;  %v2799_v19 = vadd.f32 %v2798_v50, %v2797_v7 }
 0x2ee   : > { %v2704_v8 = vrot.slane %v2703_v49, 2  ;;  %v2806_v12 = vadd.f32 %v2805_v30, %v2804_v4  ;;  %v2763_v14 = vadd.f32 %v2762_v57, %v2761_v48  ;;  %v2772_v39 = vadd.f32 %v2771_v22, %v2770_v3 }
 0x2ef   : > { %v2781_v33 = vadd.f32 %v2780_v31, %v2779_v36  ;;  %v2755_v35 = vrot.slane %v2754_v53, 1  ;;  %v2791_v38 = vrot.slane %v2790_v58, 1  ;;  %v5445_v55 = vmov 0.0  }
 0x2f0   : > { %v2705_v40 = vadd.f32 %v2704_v8, %v2703_v49  ;;  %v2807_v21 = vrot.slane %v2806_v12, 2  ;;  %v2764_v42 = vrot.slane %v2763_v14, 1  ;;  %v2773_v46 = vrot.slane %v2772_v39, 1 }
 0x2f1   : > { %v2782_v24 = vrot.slane %v2781_v33, 1  ;;  %v2756_v62 = vadd.f32 %v2755_v35, %v2754_v53  ;;  %v2792_v8 = vadd.f32 %v2791_v38, %v2790_v58  ;;  %v3423_v53 = vld [vmem:[%s5391_s6] ss:$0 sm:$0xff] }
 0x2f2   : > { %v2706_v43 = vrot.slane %v2705_v40, 1  ;;  %v2808_v23 = vadd.f32 %v2807_v21, %v2806_v12  ;;  %v2765_v49 = vadd.f32 %v2764_v42, %v2763_v14  ;;  %v2774_v44 = vadd.f32 %v2773_v46, %v2772_v39  ;;  %v3655_v39 = vld [vmem:[%s5392_s7] sm:$0xff]   ;;  %v3656_v21 = vld [vmem:[%s5392_s7 + $0x8] sm:$0xff]  }
 0x2f3   : > { %v2783_v13 = vadd.f32 %v2782_v24, %v2781_v33  ;;  %v2892_v56 = vpack.c.bf16 %v2756_v62, %v2756_v62  ;;  %v2896_v11 = vpack.c.bf16 %v2792_v8, %v2792_v8 }
 0x2f4   : > { %v2707_v2 = vadd.f32 %v2706_v43, %v2705_v40  ;;  %v2894_v59 = vpack.c.bf16 %v2774_v44, %v2774_v44 }
 0x2f5   : > { %v2895_v34 = vpack.c.bf16 %v2783_v13, %v2783_v13  ;;  %v3010_v10 = vunpack.c.l.b16 %v2892_v56  ;;  %v3014_v26 = vunpack.c.l.b16 %v2896_v11 }
 0x2f6   : > { %3703 = vrcp.f32 %v2707_v2  ;;  %v3012_v47 = vunpack.c.l.b16 %v2894_v59 }
 0x2f7   : > { %v3013_v4 = vunpack.c.l.b16 %v2895_v34 }
 0x300   : > { %v3704_v15 = vpop.eup %3703 }
 0x301   : > { %v2730_v5 = vmul.f32 %v3704_v15, %v5263_v25  ;;  %v2731_v28 = vmul.f32 %v3704_v15, %v5269_v63  ;;  %v2800_v25 = vrot.slane %v2799_v19, 1  ;;  %v2809_v63 = vrot.slane %v2808_v23, 1 }
 0x303   : > { %v2746_v18 = vmul.f32 %v2730_v5, %v5078_v61  ;;  %v2747_v41 = vmul.f32 %v2731_v28, %v5083_v9  ;;  %v2893_v61 = vpack.c.bf16 %v2765_v49, %v2765_v49  ;;  %v2801_v9 = vadd.f32 %v2800_v25, %v2799_v19 }
 0x304   : > { %v2810_v54 = vadd.f32 %v2809_v63, %v2808_v23 }
 0x305   : > { %v2811_v29 = vsel %vm1877_vm0, %v2746_v18, 0.0  ;;  %v2812_v51 = vsel %vm1877_vm0, %v2747_v41, 0.0  ;;  %v3011_v40 = vunpack.c.l.b16 %v2893_v61  ;;  %v2897_v32 = vpack.c.bf16 %v2801_v9, %v2801_v9  ;;  %v3424_v18 = vld [vmem:[%s5393_s8] ss:$0 sm:$0xff] }
 0x306   : > { %v2813_v52 = vadd.f32 %v2812_v51, %v2811_v29  ;;  %v2898_v43 = vpack.c.bf16 %v2810_v54, %v2810_v54 }
 0x307   : > { %v3015_v37 = vunpack.c.l.b16 %v2897_v32  ;;  %v3018_v48 = vsel %vm2932_vm12, %v3011_v40, %v3010_v10 }
 0x308   : > { %v2814_v17 = vrot.slane %v2813_v52, 4  ;;  %v3016_v1 = vunpack.c.l.b16 %v2898_v43  ;;  %v3019_v3 = vsel %vm2934_vm13, %v3012_v47, %v3018_v48 }
 0x309   : > { %v3020_v45 = vsel %vm2936_vm14, %v3013_v4, %v3019_v3 }
 0x30a   : > { %v2815_v20 = vadd.f32 %v2814_v17, %v2813_v52  ;;  %v3021_v36 = vsel %vm1352_vm7, %v3014_v26, %v3020_v45 }
 0x30b   : > { %v3022_v57 = vsel %vm2940_vm2, %v3015_v37, %v3021_v36 }
 0x30c   : > { %v2816_v0 = vrot.slane %v2815_v20, 2  ;;  %v3023_v7 = vsel %vm2942_vm3, %v3016_v1, %v3022_v57 }
 0x30e   : > { %v2817_v16 = vadd.f32 %v2816_v0, %v2815_v20 }
 0x310   : > { %v2818_v27 = vrot.slane %v2817_v16, 1 }
 0x312   : > { %v2819_v2 = vadd.f32 %v2818_v27, %v2817_v16 }
 0x314   : > { %v2899_v30 = vpack.c.bf16 %v2819_v2, %v2819_v2 }
 0x316   : > { %v3017_v60 = vunpack.c.l.b16 %v2899_v30 }
 0x318   : > { %v3024_v22 = vsel %vm2944_vm6, %v3017_v60, %v3023_v7 }
 0x319   : > { %v3025_v12 = vpack.c.b16 %v3024_v22, %v3024_v22 }
 0x31b   : > { %3566 = vmatmul.mubr.msk.bf16.vlgmr.msra.gmra.mrb[20].mxu1 %vm1877_vm0, %v3025_v12 }
 0x31c   : > { %3573 = vmatprep.mubr.msk.bf16.mxu1 %vm3833_vm5, %v5445_v55  ;;  %3570 = vmatpush3.bf16.msra.mxu1 %v3655_v39 }
 0x31d   : > { %3571 = vmatprep.subr.bf16.mxu1 %v5445_v55 }
 0x320   : > { %3572 = vmatpush3.bf16.msra.mxu1 %v3656_v21 }
 0x33d   : > { %v2996_v31 = vpop.f32.mrb[16].mxu1 }
 0x33e   : > { %v3559_v6 = vpop.f32.mrb[17].mxu1 }
 0x33f   : > { %v2999_v14 = vpop.f32.mrb[18].mxu1 }
 0x340   : > { %v3560_v50 = vpop.f32.mrb[19].mxu1 }
 0x3ee   : > { %v3075_v15 = vpop.f32.mrb[20].mxu1 }
 0x3ef   : > { %v3076_v33 = vadd.f32 %v3075_v15, %v2996_v31  ;;  %v3567_v58 = vpop.f32.mrb[21].mxu1 }
 0x3f0   : > { %v3078_v5 = vpop.f32.mrb[22].mxu1 }
 0x3f1   : > { %v3088_v28 = vadd.f32 %v3423_v53, %v3076_v33  ;;  %v3568_v42 = vpop.f32.mrb[23].mxu1 }
 0x3f3   : > { %v3089_v19 = vmax.f32 %v3088_v28, 0.0 }
 0x3f5   : > { %v3090_v46 = vpack.c.bf16 %v3089_v19, %v3089_v19 }
 0x3f7   : > { %3574 = vmatmul.mubr.msk.bf16.vlgmr.msra.gmra.mrb[24].mxu1 %vm1877_vm0, %v3090_v46 }
 0x4ca   : > { %v3151_v41 = vpop.f32.mrb[24].mxu1 }
 0x4cb   : > { %v3152_v23 = vadd.f32 %v3424_v18, %v3151_v41  ;;  %v3575_v35 = vpop.f32.mrb[25].mxu1 }
 0x4cc   : > { %v3154_v24 = vpop.f32.mrb[26].mxu1 }
 0x4cd   : > { %3157 = vst [vmem:[%s365_s14] sm:$0xff] %v3152_v23  ;;  %v3576_v38 = vpop.f32.mrb[27].mxu1 }
 0x4ce   : > { %3770 = shalt.err (!%p3767_p4)
}
 0x4cf   : > { %s3771_s29 = scalar_lea.hbm %s5341_s28, 128  ;;  %s3775_s14 = scalar_lea.hbm %s5394_s9, 256 }
 0x4d0   : > { %p3772_p5 = scmp.ne.s32.totalorder %s5341_s28, %s3771_s29  ;;  %p3776_p1 = scmp.lt.u32.totalorder %s5341_s28, %s5394_s9 }
 0x4d1   : > { %p3777_p3 = scmp.lt.u32.totalorder %s3775_s14, %s3771_s29  ;;  %p3779_p11 = scmp.lt.u32.totalorder %s3771_s29, %s5341_s28 }
 0x4d2   : > { %p3773_p7 = pnand %p3772_p5, %p5446_p12 }
 0x4d3   : > { %p3778_p6 = por %p3777_p3, %p3776_p1 }
 0x4d4   : > { %p3774_p9 = pneg %p3773_p7 }
 0x4d5   : > { %p3780_p13 = por %p3779_p11, %p3778_p6 }
 0x4d7   : > { %p3781_p8 = pnand %p3780_p13, %p3774_p9 }
 0x4d9   : > { %3784 = shalt.err (!%p3781_p8)
}
 0x4da   : > { %3579 = dma.vmem_to_hbm [thread:$0]  (%p5446_p12), %s5343_s17, 128, %s5341_s28, %s3159_s25  }
 0x4db PF: > { %s3184_s13 = sand.u32 1, %s3811_s30   ;;  %p5447_p10 = scmp.ne.s32.totalorder %s5409_s22, 0 }
 0x4dc   : > { %p5448_p0 = scmp.ge.s32.totalorder %s3823_s12, 2  ;;  %s3185_s23 = scalar_lea.sflag [#allocation5], %s3184_s13 }
 0x4de   : > { %p3586_p2 = pnand %p5448_p0, %p5447_p10 }
 0x4e0   : > { %3806 = dma.done.wait (!%p3586_p2), %s3185_s23, 128  }
 0x4e1   : > { %3808 = vsyncadd (!%p3586_p2), %s3185_s23, 4294967168  ;;  %p22_p4 = scmp.ge.s32.totalorder %s3910_s15, 4   ;;  %s5449_s30 = smov %s3815_s10 }
 0x4e2   : > { %s5450_s10 = smov %s3819_s11  ;;  %s5451_s11 = smov %s3922_s18 }
 0x4e3   : > { %s5452_s12 = smov %s3910_s15  ;;  %24 = sbr.rel (!%p22_p4) target bundleno = 5 (0x5), region = 104 }
 0x4ea   :  { %3190 = vsyncpa [#allocation4], 1 }
 0x4eb   :  { %3192 = vsyncpa [#allocation4 + $0x1], 1 }
 0x4ec   :  { %3193 = vsyncpa [#allocation5], 1 }
 0x4ed   :  { %3195 = vsyncpa [#allocation5 + $0x1], 1 }

</bundles_post_ra>
